<compile_context>
chip_gen: v5e
topology: v5e:2x2
jax: 0.10.0
libtpu: 0.0.40
codegen_flags: <defaults>
</compile_context>

<pallas_src>
import functools
import math

import jax
import jax.numpy as jnp
from jax import lax
from jax.experimental import pallas as pl
from jax.experimental.pallas import tpu as pltpu

LN_EPS = 1e-5
INV_SQRT2 = 1.0 / math.sqrt(2.0)


def _round_up(x, m):
    return ((x + m - 1) // m) * m


def _layernorm_f32(x_ref, g_ref, b_ref):
    """LayerNorm in f32 (biased variance, eps inside rsqrt: matches torch.nn.LayerNorm)."""
    x = x_ref[...].astype(jnp.float32)
    mean = jnp.mean(x, axis=-1, keepdims=True)
    xc = x - mean
    var = jnp.mean(xc * xc, axis=-1, keepdims=True)
    y = xc * lax.rsqrt(var + LN_EPS)
    return y * g_ref[...].astype(jnp.float32) + b_ref[...].astype(jnp.float32)


def _gelu_exact(h):
    """Exact (erf) GELU: matches nn.GELU() default."""
    return 0.5 * h * (1.0 + lax.erf(h * INV_SQRT2))


# ---------------------------------------------------------------------------
# Fast path: whole hidden dim resident (nk == 1), 1-D token grid, fully fused.
# ---------------------------------------------------------------------------
def _ffn_kernel_fused(x_ref, g_ref, b_ref, w1_ref, b1_ref, w2_ref, b2_ref, o_ref,
                      *, matmul_dtype):
    y = _layernorm_f32(x_ref, g_ref, b_ref)
    h = jnp.dot(y.astype(matmul_dtype), w1_ref[...], preferred_element_type=jnp.float32)
    h = _gelu_exact(h + b1_ref[...].astype(jnp.float32))
    # Dropout(p=0.0) == identity.
    out = jnp.dot(h.astype(w2_ref.dtype), w2_ref[...], preferred_element_type=jnp.float32)
    o_ref[...] = (out + b2_ref[...].astype(jnp.float32)).astype(o_ref.dtype)


# ---------------------------------------------------------------------------
# Streaming path: hidden dim split into nk slabs (reduction grid axis, last).
# ---------------------------------------------------------------------------
def _ffn_kernel_stream(x_ref, g_ref, b_ref, w1_ref, b1_ref, w2_ref, b2_ref, o_ref,
                       y_scr, acc_scr):
    k = pl.program_id(1)
    nk = pl.num_programs(1)

    @pl.when(k == 0)
    def _init():
        # LayerNorm once per token tile; cache in matmul dtype for reuse across slabs.
        y_scr[...] = _layernorm_f32(x_ref, g_ref, b_ref).astype(y_scr.dtype)
        # Fold the second bias into the accumulator init (one broadcast per token tile).
        acc_scr[...] = jnp.broadcast_to(b2_ref[...].astype(jnp.float32), acc_scr.shape)

    # Linear(dim -> tk slab of hidden), f32 MXU accumulation.
    h = jnp.dot(y_scr[...], w1_ref[...], preferred_element_type=jnp.float32)
    h = _gelu_exact(h + b1_ref[...].astype(jnp.float32))
    # Dropout(p=0.0) == identity.

    # Linear(tk slab of hidden -> out_dim), accumulate over the hidden axis.
    acc_scr[...] += jnp.dot(h.astype(w2_ref.dtype), w2_ref[...],
                            preferred_element_type=jnp.float32)

    @pl.when(k == nk - 1)
    def _finalize():
        o_ref[...] = acc_scr[...].astype(o_ref.dtype)


def feedforward_pallas(x, params, *, tm=256, tk=512, matmul_dtype=jnp.bfloat16):
    """x: (B, S, dim) -> (B, S, out_dim)."""
    gamma, beta, w1, b1, w2, b2 = params
    B, S, dim = x.shape
    hidden = w1.shape[1]
    out_dim = w2.shape[1]
    n_tok = B * S

    # --- tile sizing ---
    tm = max(8, (int(tm) // 8) * 8)          # sublane-aligned token tile
    tm = min(tm, _round_up(n_tok, 8))        # don't over-tile tiny inputs
    n_pad = _round_up(n_tok, tm)

    tk = min(int(tk), hidden)
    if hidden % tk != 0 or (tk % 128 != 0 and tk != hidden):
        tk = hidden                          # fall back to a single resident hidden slab
    nk = hidden // tk

    xf = x.reshape(n_tok, dim)
    if n_pad != n_tok:
        xf = jnp.pad(xf, ((0, n_pad - n_tok), (0, 0)))

    # 1-D params as (1, C) lane-aligned rows; weights cast to matmul dtype up front so
    # HBM traffic / VMEM residency are halved on the bf16 path.
    g2 = gamma.reshape(1, dim).astype(jnp.float32)
    be2 = beta.reshape(1, dim).astype(jnp.float32)
    w1m = w1.astype(matmul_dtype)
    w2m = w2.astype(matmul_dtype)
    b1_2 = b1.reshape(1, hidden).astype(jnp.float32)
    b2_2 = b2.reshape(1, out_dim).astype(jnp.float32)

    flops = 2 * n_pad * dim * hidden + 2 * n_pad * hidden * out_dim
    bytes_accessed = (xf.size * xf.dtype.itemsize
                      + w1m.size * w1m.dtype.itemsize
                      + w2m.size * w2m.dtype.itemsize
                      + (2 * dim + hidden + out_dim) * 4
                      + n_pad * out_dim * x.dtype.itemsize)
    cost = pl.CostEstimate(flops=flops, transcendentals=n_pad * hidden,
                           bytes_accessed=bytes_accessed)

    if nk == 1:
        # Fully fused: weights stay resident, no accumulator scratch, 1-D parallel grid.
        grid_spec = pltpu.PrefetchScalarGridSpec(
            num_scalar_prefetch=0,
            grid=(n_pad // tm,),
            in_specs=[
                pl.BlockSpec((tm, dim), lambda i: (i, 0)),            # x tile
                pl.BlockSpec((1, dim), lambda i: (0, 0)),             # LN gamma
                pl.BlockSpec((1, dim), lambda i: (0, 0)),             # LN beta
                pl.BlockSpec((dim, hidden), lambda i: (0, 0)),        # W1 (resident)
                pl.BlockSpec((1, hidden), lambda i: (0, 0)),          # b1
                pl.BlockSpec((hidden, out_dim), lambda i: (0, 0)),    # W2 (resident)
                pl.BlockSpec((1, out_dim), lambda i: (0, 0)),         # b2
            ],
            out_specs=pl.BlockSpec((tm, out_dim), lambda i: (i, 0)),
        )
        kernel = functools.partial(_ffn_kernel_fused, matmul_dtype=matmul_dtype)
        dim_sem = ("parallel",)
    else:
        grid_spec = pltpu.PrefetchScalarGridSpec(
            num_scalar_prefetch=0,
            grid=(n_pad // tm, nk),
            in_specs=[
                pl.BlockSpec((tm, dim), lambda i, k: (i, 0)),         # x tile
                pl.BlockSpec((1, dim), lambda i, k: (0, 0)),          # LN gamma
                pl.BlockSpec((1, dim), lambda i, k: (0, 0)),          # LN beta
                pl.BlockSpec((dim, tk), lambda i, k: (0, k)),         # W1 slab
                pl.BlockSpec((1, tk), lambda i, k: (0, k)),           # b1 slab
                pl.BlockSpec((tk, out_dim), lambda i, k: (k, 0)),     # W2 slab
                pl.BlockSpec((1, out_dim), lambda i, k: (0, 0)),      # b2
            ],
            out_specs=pl.BlockSpec((tm, out_dim), lambda i, k: (i, 0)),
            scratch_shapes=[
                pltpu.VMEM((tm, dim), matmul_dtype),      # cached LayerNorm output
                pltpu.VMEM((tm, out_dim), jnp.float32),   # output accumulator
            ],
        )
        kernel = _ffn_kernel_stream
        dim_sem = ("parallel", "arbitrary")

    out = pl.pallas_call(
        kernel,
        out_shape=jax.ShapeDtypeStruct((n_pad, out_dim), x.dtype),
        grid_spec=grid_spec,
        compiler_params=pltpu.CompilerParams(
            dimension_semantics=dim_sem,
            vmem_limit_bytes=64 * 1024 * 1024,
        ),
        cost_estimate=cost,
    )(xf, g2, be2, w1m, b1_2, w2m, b2_2)

    if n_pad != n_tok:
        out = out[:n_tok]
    return out.reshape(B, S, out_dim)


def init_params(key, dim, hidden_dim, out_dim, dtype=jnp.float32):
    """Deterministic init mirroring PyTorch defaults (uniform linears, LN affine=1/0)."""
    k1, k2, k3, k4 = jax.random.split(key, 4)
    gamma = jnp.ones((dim,), dtype)
    beta = jnp.zeros((dim,), dtype)

    bound1 = 1.0 / math.sqrt(dim)
    w1 = jax.random.uniform(k1, (dim, hidden_dim), dtype, -bound1, bound1)
    b1 = jax.random.uniform(k2, (hidden_dim,), dtype, -bound1, bound1)

    bound2 = 1.0 / math.sqrt(hidden_dim)
    w2 = jax.random.uniform(k3, (hidden_dim, out_dim), dtype, -bound2, bound2)
    b2 = jax.random.uniform(k4, (out_dim,), dtype, -bound2, bound2)
    return (gamma, beta, w1, b1, w2, b2)


def feedforward_ref(x, params):
    gamma, beta, w1, b1, w2, b2 = params
    xf = x.astype(jnp.float32)
    mean = jnp.mean(xf, axis=-1, keepdims=True)
    var = jnp.mean((xf - mean) ** 2, axis=-1, keepdims=True)
    y = (xf - mean) * lax.rsqrt(var + LN_EPS) * gamma + beta
    h = y @ w1 + b1
    h = 0.5 * h * (1.0 + lax.erf(h * INV_SQRT2))
    return (h @ w2 + b2).astype(x.dtype)


if __name__ == "__main__":
    B, S = 2, 64
    dim, hidden_dim, out_dim = 128, 512, 256

    key = jax.random.PRNGKey(0)
    kx, kp = jax.random.split(key)
    x = jax.random.normal(kx, (B, S, dim), jnp.float32)
    params = init_params(kp, dim, hidden_dim, out_dim)

    ref = feedforward_ref(x, params)

    # f32 exact-parity path, exercising the streaming (nk=2) hidden-dim accumulation.
    out_f32 = jax.block_until_ready(
        feedforward_pallas(x, params, tm=256, tk=256, matmul_dtype=jnp.float32))
    assert out_f32.shape == (B, S, out_dim)
    assert jnp.allclose(out_f32, ref, atol=1e-4, rtol=1e-4)

    # Default bf16-MXU path (f32 accumulation), fully fused fast path (nk=1).
    out_bf16 = jax.block_until_ready(feedforward_pallas(x, params, tm=256))
    assert out_bf16.shape == (B, S, out_dim)
    assert jnp.allclose(out_bf16, ref, atol=3e-2, rtol=3e-2)

    print("KERNEL_OK")
</pallas_src>

<mosaic_0001>
module attributes {stable_mosaic.version = 11 : i64} {
  func.func @_ffn_kernel_stream(%arg0: i32, %arg1: i32, %arg2: memref<128x128xf32, #tpu.memory_space<vmem>>, %arg3: memref<1x128xf32, #tpu.memory_space<vmem>>, %arg4: memref<1x128xf32, #tpu.memory_space<vmem>>, %arg5: memref<128x256xf32, #tpu.memory_space<vmem>>, %arg6: memref<1x256xf32, #tpu.memory_space<vmem>>, %arg7: memref<256x256xf32, #tpu.memory_space<vmem>>, %arg8: memref<1x256xf32, #tpu.memory_space<vmem>>, %arg9: memref<128x256xf32, #tpu.memory_space<vmem>>, %arg10: memref<128x128xf32, #tpu.memory_space<vmem>>, %arg11: memref<128x256xf32, #tpu.memory_space<vmem>>) attributes {dimension_semantics = [#tpu.dimension_semantics<parallel>, #tpu.dimension_semantics<arbitrary>], iteration_bounds = array<i64: 1, 2>, scalar_prefetch = 0 : i64, scratch_operands = 2 : i64, tpu.core_type = #tpu.core_type<tc>, window_params = [{transform_indices = @transform_0, window_bounds = array<i64: 128, 128>}, {pipeline_mode = #tpu.pipeline_mode<synchronous>, transform_indices = @transform_1, window_bounds = array<i64: 1, 128>}, {pipeline_mode = #tpu.pipeline_mode<synchronous>, transform_indices = @transform_2, window_bounds = array<i64: 1, 128>}, {transform_indices = @transform_3, window_bounds = array<i64: 128, 256>}, {transform_indices = @transform_4, window_bounds = array<i64: 1, 256>}, {transform_indices = @transform_5, window_bounds = array<i64: 256, 256>}, {pipeline_mode = #tpu.pipeline_mode<synchronous>, transform_indices = @transform_6, window_bounds = array<i64: 1, 256>}, {transform_indices = @transform_7, window_bounds = array<i64: 128, 256>}]} {
    %c0_i32 = arith.constant 0 : i32
    %0 = arith.cmpi eq, %arg1, %c0_i32 : i32
    %1 = arith.extui %0 : i1 to i32
    %c0_i32_0 = arith.constant 0 : i32
    %2 = arith.cmpi ne, %1, %c0_i32_0 : i32
    scf.if %2 {
      %c0_17 = arith.constant 0 : index
      %c0_18 = arith.constant 0 : index
      %25 = vector.load %arg2[%c0_17, %c0_18] : memref<128x128xf32, #tpu.memory_space<vmem>>, vector<128x128xf32>
      %cst_19 = arith.constant dense<0.000000e+00> : vector<128xf32>
      %26 = vector.multi_reduction <add>, %25, %cst_19 [1] : vector<128x128xf32> to vector<128xf32>
      %27 = vector.shape_cast %26 : vector<128xf32> to vector<128x1xf32>
      %cst_20 = arith.constant 1.280000e+02 : f32
      %28 = vector.broadcast %cst_20 : f32 to vector<128x1xf32>
      %29 = arith.divf %27, %28 : vector<128x1xf32>
      %30 = vector.broadcast %29 : vector<128x1xf32> to vector<128x128xf32>
      %31 = arith.subf %25, %30 : vector<128x128xf32>
      %32 = arith.mulf %31, %31 : vector<128x128xf32>
      %cst_21 = arith.constant dense<0.000000e+00> : vector<128xf32>
      %33 = vector.multi_reduction <add>, %32, %cst_21 [1] : vector<128x128xf32> to vector<128xf32>
      %34 = vector.shape_cast %33 : vector<128xf32> to vector<128x1xf32>
      %cst_22 = arith.constant 1.280000e+02 : f32
      %35 = vector.broadcast %cst_22 : f32 to vector<128x1xf32>
      %36 = arith.divf %34, %35 : vector<128x1xf32>
      %cst_23 = arith.constant 9.99999974E-6 : f32
      %37 = vector.broadcast %cst_23 : f32 to vector<128x1xf32>
      %38 = arith.addf %36, %37 : vector<128x1xf32>
      %39 = math.rsqrt %38 : vector<128x1xf32>
      %40 = vector.broadcast %39 : vector<128x1xf32> to vector<128x128xf32>
      %41 = arith.mulf %31, %40 : vector<128x128xf32>
      %c0_24 = arith.constant 0 : index
      %c0_25 = arith.constant 0 : index
      %42 = vector.load %arg3[%c0_24, %c0_25] : memref<1x128xf32, #tpu.memory_space<vmem>>, vector<1x128xf32>
      %43 = vector.broadcast %42 : vector<1x128xf32> to vector<128x128xf32>
      %44 = arith.mulf %41, %43 : vector<128x128xf32>
      %c0_26 = arith.constant 0 : index
      %c0_27 = arith.constant 0 : index
      %45 = vector.load %arg4[%c0_26, %c0_27] : memref<1x128xf32, #tpu.memory_space<vmem>>, vector<1x128xf32>
      %46 = vector.broadcast %45 : vector<1x128xf32> to vector<128x128xf32>
      %47 = arith.addf %44, %46 : vector<128x128xf32>
      %c0_28 = arith.constant 0 : index
      %c0_29 = arith.constant 0 : index
      %48 = vector.load %arg10[%c0_28, %c0_29] : memref<128x128xf32, #tpu.memory_space<vmem>>, vector<128x128xf32>
      tpu.vector_store %arg10[%c0_28, %c0_29], %47 {strides = array<i32>} : memref<128x128xf32, #tpu.memory_space<vmem>>, vector<128x128xf32>,
      %c0_30 = arith.constant 0 : index
      %c0_31 = arith.constant 0 : index
      %49 = vector.load %arg8[%c0_30, %c0_31] : memref<1x256xf32, #tpu.memory_space<vmem>>, vector<1x256xf32>
      %50 = vector.shape_cast %49 : vector<1x256xf32> to vector<1x256xf32>
      %51 = vector.broadcast %50 : vector<1x256xf32> to vector<128x256xf32>
      %c0_32 = arith.constant 0 : index
      %c0_33 = arith.constant 0 : index
      %52 = vector.load %arg11[%c0_32, %c0_33] : memref<128x256xf32, #tpu.memory_space<vmem>>, vector<128x256xf32>
      tpu.vector_store %arg11[%c0_32, %c0_33], %51 {strides = array<i32>} : memref<128x256xf32, #tpu.memory_space<vmem>>, vector<128x256xf32>,
    } else {
    }
    %c0 = arith.constant 0 : index
    %c0_1 = arith.constant 0 : index
    %3 = vector.load %arg10[%c0, %c0_1] : memref<128x128xf32, #tpu.memory_space<vmem>>, vector<128x128xf32>
    %c0_2 = arith.constant 0 : index
    %c0_3 = arith.constant 0 : index
    %4 = vector.load %arg5[%c0_2, %c0_3] : memref<128x256xf32, #tpu.memory_space<vmem>>, vector<128x256xf32>
    %cst = arith.constant dense<0.000000e+00> : vector<128x256xf32>
    %5 = tpu.matmul %3, %4, %cst {dimension_numbers = #tpu.dot_dimension_numbers<[1], [0], [0], [1], [0, 0, 1, 1], [], []>} : vector<128x128xf32>, vector<128x256xf32>, vector<128x256xf32> -> vector<128x256xf32>
    %c0_4 = arith.constant 0 : index
    %c0_5 = arith.constant 0 : index
    %6 = vector.load %arg6[%c0_4, %c0_5] : memref<1x256xf32, #tpu.memory_space<vmem>>, vector<1x256xf32>
    %7 = vector.broadcast %6 : vector<1x256xf32> to vector<128x256xf32>
    %8 = arith.addf %5, %7 : vector<128x256xf32>
    %cst_6 = arith.constant 5.000000e-01 : f32
    %9 = vector.broadcast %cst_6 : f32 to vector<128x256xf32>
    %10 = arith.mulf %9, %8 : vector<128x256xf32>
    %cst_7 = arith.constant 0.707106769 : f32
    %11 = vector.broadcast %cst_7 : f32 to vector<128x256xf32>
    %12 = arith.mulf %8, %11 : vector<128x256xf32>
    %13 = math.erf %12 : vector<128x256xf32>
    %cst_8 = arith.constant 1.000000e+00 : f32
    %14 = vector.broadcast %cst_8 : f32 to vector<128x256xf32>
    %15 = arith.addf %14, %13 : vector<128x256xf32>
    %16 = arith.mulf %10, %15 : vector<128x256xf32>
    %c0_9 = arith.constant 0 : index
    %c0_10 = arith.constant 0 : index
    %17 = vector.load %arg11[%c0_9, %c0_10] : memref<128x256xf32, #tpu.memory_space<vmem>>, vector<128x256xf32>
    %c0_11 = arith.constant 0 : index
    %c0_12 = arith.constant 0 : index
    %18 = vector.load %arg7[%c0_11, %c0_12] : memref<256x256xf32, #tpu.memory_space<vmem>>, vector<256x256xf32>
    %cst_13 = arith.constant dense<0.000000e+00> : vector<128x256xf32>
    %19 = tpu.matmul %16, %18, %cst_13 {dimension_numbers = #tpu.dot_dimension_numbers<[1], [0], [0], [1], [0, 0, 1, 1], [], []>} : vector<128x256xf32>, vector<256x256xf32>, vector<128x256xf32> -> vector<128x256xf32>
    %20 = arith.addf %17, %19 : vector<128x256xf32>
    %c0_14 = arith.constant 0 : index
    %c0_15 = arith.constant 0 : index
    %21 = vector.load %arg11[%c0_14, %c0_15] : memref<128x256xf32, #tpu.memory_space<vmem>>, vector<128x256xf32>
    tpu.vector_store %arg11[%c0_14, %c0_15], %20 {strides = array<i32>} : memref<128x256xf32, #tpu.memory_space<vmem>>, vector<128x256xf32>,
    %c1_i32 = arith.constant 1 : i32
    %22 = arith.cmpi eq, %arg1, %c1_i32 : i32
    %23 = arith.extui %22 : i1 to i32
    %c0_i32_16 = arith.constant 0 : i32
    %24 = arith.cmpi ne, %23, %c0_i32_16 : i32
    scf.if %24 {
      %c0_17 = arith.constant 0 : index
      %c0_18 = arith.constant 0 : index
      %25 = vector.load %arg11[%c0_17, %c0_18] : memref<128x256xf32, #tpu.memory_space<vmem>>, vector<128x256xf32>
      %c0_19 = arith.constant 0 : index
      %c0_20 = arith.constant 0 : index
      %26 = vector.load %arg9[%c0_19, %c0_20] : memref<128x256xf32, #tpu.memory_space<vmem>>, vector<128x256xf32>
      tpu.vector_store %arg9[%c0_19, %c0_20], %25 {strides = array<i32>} : memref<128x256xf32, #tpu.memory_space<vmem>>, vector<128x256xf32>,
    } else {
    }
    return
  }
  func.func @transform_0(%arg0: i32, %arg1: i32) -> (i32, i32) {
    %c0_i32 = arith.constant 0 : i32
    %c0_i32_0 = arith.constant 0 : i32
    return %arg0, %c0_i32 : i32, i32
  }
  func.func @transform_1(%arg0: i32, %arg1: i32) -> (i32, i32) {
    %c0_i32 = arith.constant 0 : i32
    %c0_i32_0 = arith.constant 0 : i32
    %c0_i32_1 = arith.constant 0 : i32
    return %c0_i32, %c0_i32_0 : i32, i32
  }
  func.func @transform_2(%arg0: i32, %arg1: i32) -> (i32, i32) {
    %c0_i32 = arith.constant 0 : i32
    %c0_i32_0 = arith.constant 0 : i32
    %c0_i32_1 = arith.constant 0 : i32
    return %c0_i32, %c0_i32_0 : i32, i32
  }
  func.func @transform_3(%arg0: i32, %arg1: i32) -> (i32, i32) {
    %c0_i32 = arith.constant 0 : i32
    %c0_i32_0 = arith.constant 0 : i32
    return %c0_i32, %arg1 : i32, i32
  }
  func.func @transform_4(%arg0: i32, %arg1: i32) -> (i32, i32) {
    %c0_i32 = arith.constant 0 : i32
    %c0_i32_0 = arith.constant 0 : i32
    return %c0_i32, %arg1 : i32, i32
  }
  func.func @transform_5(%arg0: i32, %arg1: i32) -> (i32, i32) {
    %c0_i32 = arith.constant 0 : i32
    %c0_i32_0 = arith.constant 0 : i32
    return %arg1, %c0_i32 : i32, i32
  }
  func.func @transform_6(%arg0: i32, %arg1: i32) -> (i32, i32) {
    %c0_i32 = arith.constant 0 : i32
    %c0_i32_0 = arith.constant 0 : i32
    %c0_i32_1 = arith.constant 0 : i32
    return %c0_i32, %c0_i32_0 : i32, i32
  }
  func.func @transform_7(%arg0: i32, %arg1: i32) -> (i32, i32) {
    %c0_i32 = arith.constant 0 : i32
    %c0_i32_0 = arith.constant 0 : i32
    return %arg0, %c0_i32 : i32, i32
  }
}

</mosaic_0001>

<bundles_post_ra>
// kernel: tpu_custom_call.1
= control target key start
LH: loop header
LB: loop body
LE: loop exit
PB: predicated region body
PF: predicated region fallthrough
CT: control target
= control target key end

     0   :  { %s5801_s0 = inlined_call_operand.hbm [shape: f32[128,128], index: 0, kind: input, shape index: {}]   ;;  %s5802_s1 = inlined_call_operand.hbm [shape: f32[1,128], index: 1, kind: input, shape index: {}]   ;;  %s5803_s2 = inlined_call_operand.vmem [shape: f32[1,128], index: 2, kind: input, shape index: {}]   ;;  %s5804_s3 = inlined_call_operand.hbm [shape: f32[128,512], index: 3, kind: input, shape index: {}]   ;;  %s5805_s4 = inlined_call_operand.hbm [shape: f32[1,512], index: 4, kind: input, shape index: {}]   ;;  %s5806_s5 = inlined_call_operand.hbm [shape: f32[512,256], index: 5, kind: input, shape index: {}]   ;;  %s5807_s6 = inlined_call_operand.vmem [shape: f32[1,256], index: 6, kind: input, shape index: {}]   ;;  %s5808_s7 = inlined_call_operand.hbm [shape: f32[128,256], index: 7, kind: output, shape index: {}]  }
   0x1   :  { %5835 = sst [smem:[#allocation72_spill]] %s5801_s0 }
   0x2   :  { %5836 = sst [smem:[#allocation73_spill]] %s5804_s3 }
   0x3   :  { %5837 = sst [smem:[#allocation74_spill]] %s5808_s7 }
   0x4   :  { %12 = vsyncpa [#allocation5], 0 }
   0x5   :  { %13 = vsyncpa [#allocation8], 0 }
   0x6   :  { %14 = vsyncpa [#allocation6], 0  ;;  %s3667_s24 = smov 0   ;;  %s3669_s25 = smov 0  }
   0x7   :  { %s3671_s26 = smov 0   ;;  %s3673_s27 = smov 0  }
   0x8   :  { %s3675_s28 = smov 0   ;;  %s3677_s29 = smov 0  }
   0x9 LB: > { %5838 = sst [smem:[#allocation17_spill]] %s3614_s29  ;;  %s3696_s30 = sadd.s32 4294967295, %s3614_s29   ;;  %s3614_s29 = sphi %s3677_s29, %s20_s29   ;;  %s3610_s28 = sphi %s3675_s28, %s6046_s28   ;;  %s3606_s27 = sphi %s3673_s27, %s6045_s27   ;;  %s3602_s26 = sphi %s3671_s26, %s6044_s26   ;;  %s3598_s25 = sphi %s3669_s25, %s6043_s25   ;;  %s3594_s24 = sphi %s3667_s24, %s6042_s24  }
   0xa   : > { %s107_s8 = sadd.s32 1, %s3602_s26  ;;  %p114_p0 = scmp.ne.s32.totalorder %s3602_s26, %s3598_s25 }
   0xb   : > { %p115_p1 = scmp.eq.s32.totalorder %s3614_s29, 0  ;;  %p120_p2 = scmp.ne.s32.totalorder %s3598_s25, %s3594_s24 }
   0xc   : > { %p121_p3 = scmp.eq.s32.totalorder %s3696_s30, 0  ;;  %p3081_p5 = scmp.ge.s32.totalorder %s3614_s29, 1 }
   0xd   : > { %p3704_p4 = por %p115_p1, %p114_p0  ;;  %p230_p7 = scmp.lt.s32.totalorder %s3614_s29, 3 }
   0xe   : > { %p3711_p6 = por %p121_p3, %p120_p2  ;;  %s5841_s0 = sld [smem:[#allocation72_spill]] }
   0xf   : > { %p3719_p8 = pnand %p3081_p5, %p230_p7  ;;  %s3616_s15 = smov [#allocation4]  }
  0x10   : > { %s246_s16 = sshll.u32 %s3616_s15, 4  ;;  %p3210_p11 = scmp.lt.s32.totalorder %s3614_s29, 2  ;;  %s247_s16 = int_to_ptr.vmem [resolvable:$true] %s246_s16 }
  0x11   : > { %p3191_p9 = pneg %p3719_p8  ;;  %s3617_s18 = smov 128  }
  0x12   : > { %s3618_s19 = smov 8   ;;  %p3736_p12 = pnand %p3210_p11, %p3704_p4 }
  0x13   : > { %p3727_p10 = pnand %p3191_p9, %p121_p3  ;;  %s29_s21 = sadd.s32 1, %s3610_s28 }
  0x14   : > { %s244_s13 = sshll.u32 %s5841_s0, 4  ;;  %p30_p13 = scmp.ge.s32.totalorder %s29_s21, 2  ;;  %s245_s13 = int_to_ptr.hbm [resolvable:$true] %s244_s13 }
  0x15   : > { %3194 = dma.hbm_to_vmem [thread:$0]  (!%p3727_p10), %s245_s13, 2048, %s247_s16, [#allocation5], %s3617_s18, %s3617_s18, %s3618_s19  }
  0x16   : > { %s278_s22 = sand.u32 1, %s3614_s29   ;;  %s6048_s21 = smov (%p30_p13, %s29_s21), 0 }
  0x17   : > { %5845 = sst [smem:[#allocation18_spill]] %s6048_s21  ;;  %s3745_s23 = sand.u32 1, %s3602_s26  }
  0x18   : > { %s3138_s24 = sshll.u32 %s3610_s28, 4  ;;  %s104_s11 = ssub.s32 %s3610_s28, %s6048_s21 }
  0x19   : > { %s3085_s12 = sshll.u32 %s3745_s23, 8  ;;  %p105_p0 = scmp.eq.s32.totalorder %s104_s11, 0 }
  0x1a   : > { %s5846_s3 = sld [smem:[#allocation73_spill]]  ;;  %s282_s16 = scalar_lea.vmem [#allocation9], %s3085_s12 }
  0x1b   : > { %s290_s18 = sshll.u32 %s282_s16, 4  ;;  %s3759_s29 = scalar_lea.sflag [#allocation5], %s278_s22  ;;  %s291_s18 = int_to_ptr.vmem [resolvable:$true] %s290_s18 }
  0x1c   : > { %s3757_s19 = scalar_select %p105_p0, %s3602_s26, %s107_s8  }
  0x1d   : > { %s3619_s21 = smov 512   ;;  %s5811_s7 = smov 256  }
  0x1e   : > { %5847 = sst [smem:[#allocation19_spill]] %s3757_s19  ;;  %s5812_s11 = smov 16  }
  0x1f   : > { %s3089_s8 = sshll.u32 %s3610_s28, 1  ;;  %s5849_s19 = smov 256  }
  0x20   : > { %s287_s15 = scalar_lea.hbm %s5846_s3, %s3138_s24  ;;  %s3088_s24 = sshll.u32 %s3745_s23, 1 }
  0x21   : > { %s288_s0 = sshll.u32 %s287_s15, 4  ;;  %s308_s13 = scalar_lea.hbm %s5805_s4, %s3089_s8  ;;  %s289_s0 = int_to_ptr.hbm [resolvable:$true] %s288_s0 }
  0x22   : > { %3201 = dma.hbm_to_vmem [thread:$0]  (!%p3736_p12), %s289_s0, 4096, %s291_s18, %s3759_s29, %s3619_s21, %s5811_s7, %s5812_s11  }
  0x23   : > { %s310_s22 = sshll.u32 %s308_s13, 4  ;;  %s304_s15 = scalar_lea.vmem [#allocation10], %s3088_s24  ;;  %s311_s22 = int_to_ptr.hbm [resolvable:$true] %s310_s22 }
  0x24   : > { %s312_s16 = sshll.u32 %s304_s15, 4  ;;  %s259_s0 = sshll.u32 %s5802_s1, 4  ;;  %s313_s16 = int_to_ptr.vmem [resolvable:$true] %s312_s16  ;;  %s260_s0 = int_to_ptr.hbm [resolvable:$true] %s259_s0 }
  0x25   : > { %3204 = dma.hbm_to_vmem [thread:$0]  (!%p3736_p12), %s311_s22, 32, %s313_s16, %s3759_s29  }
  0x26   : > { %s3622_s21 = smov [#allocation7]   ;;  %s3090_s7 = sshll.u32 %s3745_s23, 9 }
  0x27   : > { %s261_s18 = sshll.u32 %s3622_s21, 4  ;;  %s3140_s8 = sshll.u32 %s3610_s28, 9  ;;  %s262_s18 = int_to_ptr.vmem [resolvable:$true] %s261_s18 }
  0x28   : > { %3197 = dma.hbm_to_vmem [thread:$0]  (!%p3727_p10), %s260_s0, 16, %s262_s18, [#allocation8]  }
  0x29   : > { %s329_s9 = scalar_lea.hbm %s5806_s5, %s3140_s8  ;;  %s323_s13 = scalar_lea.vmem [#allocation11], %s3090_s7 }
  0x2a   : > { %s332_s15 = sshll.u32 %s323_s13, 4  ;;  %s330_s11 = sshll.u32 %s329_s9, 4  ;;  %s333_s15 = int_to_ptr.vmem [resolvable:$true] %s332_s15  ;;  %s331_s11 = int_to_ptr.hbm [resolvable:$true] %s330_s11 }
  0x2b   : > { %s5848_s3 = smov 16   ;;  %344 = sbr.rel (%p3719_p8) target bundleno = 1101 (0x44d), region = 48 }
  0x2c   : > { %3207 = dma.hbm_to_vmem [thread:$0]  (!%p3736_p12), %s331_s11, 8192, %s333_s15, %s3759_s29, %s5849_s19, %s5849_s19, %s5848_s3  }
  0x30   : > { %3577 = dma.done.wait (%p121_p3), [#allocation5], 2048  }
  0x31   : > { %3579 = vsyncadd (%p121_p3), [#allocation5], 4294965248 }
  0x32   : > { %3581 = dma.done.wait (%p121_p3), [#allocation8], 16  }
  0x33   : > { %3583 = vsyncadd (%p121_p3), [#allocation8], 4294967280  ;;  %s356_s7 = sand.u32 1, %s3696_s30   ;;  %s358_s29 = sand.u32 1, %s3598_s25  }
  0x34   : > { %s3097_s17 = sshll.u32 %s358_s29, 8  ;;  %s357_s14 = scalar_lea.sflag [#allocation5], %s356_s7 }
  0x35   : > { %s3802_s20 = scalar_lea.vmem [#allocation9], %s3097_s17 }
  0x36   : > { %3585 = dma.done.wait (%p3711_p6), %s357_s14, 12320  }
  0x37   : > { %3587 = vsyncadd (%p3711_p6), %s357_s14, 4294954976  ;;  %s3098_s23 = sshll.u32 %s358_s29, 1  ;;  %s3099_s11 = sshll.u32 %s358_s29, 9 }
  0x38   : > { %s3808_s22 = scalar_lea.vmem [#allocation10], %s3098_s23  ;;  %s3810_s16 = scalar_lea.vmem [#allocation11], %s3099_s11 }
  0x39   : > { %p3100_p1 = scmp.ne.s32.totalorder %s3606_s27, 0 }
  0x3b   : > { %425 = sbr.rel (%p3100_p1) target bundleno = 394 (0x18a), region = 72 }
  0x40   : > { %v3813_v0 = vld [vmem:[#allocation4 + $0x20] sm:$0xff]  ;;  %v428_v1 = vld [vmem:[#allocation4 + $0x10] sm:$0xff]  ;;  %v431_v3 = vld [vmem:[#allocation4 + $0x28] sm:$0xff]  ;;  %v3623_v16 = vmov 128.0  }
  0x41   : > { %v426_v2 = vld [vmem:[#allocation4] sm:$0xff]  ;;  %450 = vadd.xlane.f32.xlu2 %v3813_v0  ;;  %446 = vadd.xlane.f32.xlu1 %v428_v1  ;;  %v429_v4 = vld [vmem:[#allocation4 + $0x18] sm:$0xff]  ;;  %v427_v5 = vld [vmem:[#allocation4 + $0x8] sm:$0xff]  ;;  %3276 = vrcp.f32 %v3623_v16 }
  0x42   : > { %442 = vadd.xlane.f32.xlu0 %v426_v2  ;;  %v434_v6 = vld [vmem:[#allocation4 + $0x40] sm:$0xff]  ;;  %v3816_v7 = vld [vmem:[#allocation4 + $0x38] sm:$0xff]  ;;  %v432_v8 = vld [vmem:[#allocation4 + $0x30] sm:$0xff] }
  0x43   : > { %v3819_v9 = vld [vmem:[#allocation4 + $0x58] sm:$0xff]  ;;  %v3821_v10 = vld [vmem:[#allocation4 + $0x50] sm:$0xff]  ;;  %v3823_v11 = vld [vmem:[#allocation4 + $0x48] sm:$0xff] }
  0x44   : > { %v3828_v12 = vld [vmem:[#allocation4 + $0x70] sm:$0xff]  ;;  %v3830_v13 = vld [vmem:[#allocation4 + $0x68] sm:$0xff]  ;;  %v3832_v14 = vld [vmem:[#allocation4 + $0x60] sm:$0xff] }
  0x45   : > { %v3837_v15 = vld [vmem:[#allocation4 + $0x78] sm:$0xff] }
  0x47   : > { %v3277_v17 = vpop.eup %3276 }
  0x48   : > { %v475_v18 = vmul.f32 128.0, %v3277_v17  ;;  %vm479_vm0 = vweird.f32 %v3277_v17 }
  0x49   : > { %452 = vadd.xlane.f32.xlu2 %v431_v3  ;;  %448 = vadd.xlane.f32.xlu1 %v429_v4 }
  0x4a   : > { %444 = vadd.xlane.f32.xlu0 %v427_v5  ;;  %v476_v19 = vsub.f32 1.0, %v475_v18 }
  0x4c   : > { %v477_v20 = vmul.f32 %v3277_v17, %v476_v19 }
  0x4e   : > { %v478_v21 = vadd.f32 %v3277_v17, %v477_v20 }
  0x50   : > { %v3840_v22 = vsel %vm479_vm0, %v3277_v17, %v478_v21 }
  0x51   : > { %458 = vadd.xlane.f32.xlu2 %v434_v6  ;;  %456 = vadd.xlane.f32.xlu1 %v3816_v7 }
  0x52   : > { %454 = vadd.xlane.f32.xlu0 %v432_v8 }
  0x59   : > { %464 = vadd.xlane.f32.xlu2 %v3819_v9  ;;  %462 = vadd.xlane.f32.xlu1 %v3821_v10 }
  0x5a   : > { %460 = vadd.xlane.f32.xlu0 %v3823_v11 }
  0x61   : > { %470 = vadd.xlane.f32.xlu2 %v3828_v12  ;;  %468 = vadd.xlane.f32.xlu1 %v3830_v13 }
  0x62   : > { %466 = vadd.xlane.f32.xlu0 %v3832_v14 }
  0x6a   : > { %472 = vadd.xlane.f32.xlu0 %v3837_v15 }
  0xb4   : > { %v451_v23 = vpop.xlane.xlu2 %450  ;;  %v447_v24 = vpop.xlane.xlu1 %446 }
  0xb5   : > { %v483_v25 = vmul.f32 %v3840_v22, %v447_v24  ;;  %v443_v26 = vpop.xlane.xlu0 %442  ;;  %v485_v43 = vmul.f32 %v3840_v22, %v451_v23 }
  0xb6   : > { %v481_v27 = vmul.f32 %v3840_v22, %v443_v26 }
  0xb7   : > { %v3844_v28 = vsub.f32 %v428_v1, %v483_v25  ;;  %v3870_v49 = vsub.f32 %v3813_v0, %v485_v43 }
  0xb8   : > { %v3846_v29 = vsub.f32 %v426_v2, %v481_v27 }
  0xb9   : > { %v515_v30 = vmul.f32 %v3844_v28, %v3844_v28  ;;  %v517_v55 = vmul.f32 %v3870_v49, %v3870_v49 }
  0xba   : > { %v513_v31 = vmul.f32 %v3846_v29, %v3846_v29 }
  0xbb   : > { %533 = vadd.xlane.f32.xlu0 %v515_v30 }
  0xbc   : > { %529 = vadd.xlane.f32.xlu1 %v513_v31  ;;  %v453_v32 = vpop.xlane.xlu2 %452  ;;  %v449_v33 = vpop.xlane.xlu1 %448 }
  0xbd   : > { %v486_v34 = vmul.f32 %v3840_v22, %v453_v32  ;;  %v484_v35 = vmul.f32 %v3840_v22, %v449_v33  ;;  %v445_v36 = vpop.xlane.xlu0 %444 }
  0xbe   : > { %v482_v37 = vmul.f32 %v3840_v22, %v445_v36 }
  0xbf   : > { %v3855_v38 = vsub.f32 %v431_v3, %v486_v34  ;;  %v3857_v39 = vsub.f32 %v429_v4, %v484_v35 }
  0xc0   : > { %v3859_v40 = vsub.f32 %v427_v5, %v482_v37 }
  0xc1   : > { %v518_v41 = vmul.f32 %v3855_v38, %v3855_v38  ;;  %v516_v42 = vmul.f32 %v3857_v39, %v3857_v39 }
  0xc2   : > { %v514_v44 = vmul.f32 %v3859_v40, %v3859_v40 }
  0xc3   : > { %539 = vadd.xlane.f32.xlu0 %v518_v41 }
  0xc4   : > { %535 = vadd.xlane.f32.xlu1 %v516_v42  ;;  %531 = vadd.xlane.f32.xlu2 %v514_v44  ;;  %v459_v45 = vpop.xlane.xlu2 %458  ;;  %v457_v46 = vpop.xlane.xlu1 %456 }
  0xc5   : > { %v489_v47 = vmul.f32 %v3840_v22, %v459_v45  ;;  %v455_v48 = vpop.xlane.xlu0 %454  ;;  %v488_v53 = vmul.f32 %v3840_v22, %v457_v46 }
  0xc6   : > { %v487_v50 = vmul.f32 %v3840_v22, %v455_v48 }
  0xc7   : > { %v3873_v51 = vsub.f32 %v434_v6, %v489_v47  ;;  %v3885_v58 = vsub.f32 %v3816_v7, %v488_v53 }
  0xc8   : > { %v3875_v52 = vsub.f32 %v432_v8, %v487_v50 }
  0xc9   : > { %v521_v54 = vmul.f32 %v3873_v51, %v3873_v51  ;;  %v520_v1 = vmul.f32 %v3885_v58, %v3885_v58 }
  0xca   : > { %v519_v56 = vmul.f32 %v3875_v52, %v3875_v52 }
  0xcb   : > { %545 = vadd.xlane.f32.xlu0 %v521_v54 }
  0xcc   : > { %537 = vadd.xlane.f32.xlu2 %v517_v55  ;;  %541 = vadd.xlane.f32.xlu1 %v519_v56  ;;  %v465_v57 = vpop.xlane.xlu2 %464  ;;  %v463_v59 = vpop.xlane.xlu1 %462 }
  0xcd   : > { %v492_v60 = vmul.f32 %v3840_v22, %v465_v57  ;;  %v461_v61 = vpop.xlane.xlu0 %460  ;;  %v491_v2 = vmul.f32 %v3840_v22, %v463_v59 }
  0xce   : > { %v490_v62 = vmul.f32 %v3840_v22, %v461_v61 }
  0xcf   : > { %v3890_v63 = vsub.f32 %v3819_v9, %v492_v60  ;;  %v3903_v6 = vsub.f32 %v3821_v10, %v491_v2 }
  0xd0   : > { %v3893_v0 = vsub.f32 %v3823_v11, %v490_v62 }
  0xd1   : > { %v524_v3 = vmul.f32 %v3890_v63, %v3890_v63  ;;  %v523_v18 = vmul.f32 %v3903_v6, %v3903_v6 }
  0xd2   : > { %v522_v4 = vmul.f32 %v3893_v0, %v3893_v0 }
  0xd3   : > { %551 = vadd.xlane.f32.xlu0 %v524_v3 }
  0xd4   : > { %543 = vadd.xlane.f32.xlu2 %v520_v1  ;;  %547 = vadd.xlane.f32.xlu1 %v522_v4  ;;  %v471_v5 = vpop.xlane.xlu2 %470  ;;  %v469_v9 = vpop.xlane.xlu1 %468 }
  0xd5   : > { %v495_v7 = vmul.f32 %v3840_v22, %v471_v5  ;;  %v467_v8 = vpop.xlane.xlu0 %466  ;;  %v494_v19 = vmul.f32 %v3840_v22, %v469_v9  ;;  %v3958_v9 = vld [vmem:[#allocation7] ss:$0 sm:$0xff] }
  0xd6   : > { %v493_v11 = vmul.f32 %v3840_v22, %v467_v8 }
  0xd7   : > { %v3908_v16 = vsub.f32 %v3828_v12, %v495_v7  ;;  %v3921_v12 = vsub.f32 %v3830_v13, %v494_v19 }
  0xd8   : > { %v3911_v17 = vsub.f32 %v3832_v14, %v493_v11 }
  0xd9   : > { %v527_v10 = vmul.f32 %v3908_v16, %v3908_v16  ;;  %v526_v24 = vmul.f32 %v3921_v12, %v3921_v12 }
  0xda   : > { %v525_v20 = vmul.f32 %v3911_v17, %v3911_v17 }
  0xdb   : > { %557 = vadd.xlane.f32.xlu0 %v527_v10 }
  0xdc   : > { %549 = vadd.xlane.f32.xlu2 %v523_v18  ;;  %553 = vadd.xlane.f32.xlu1 %v525_v20 }
  0xdd   : > { %v473_v21 = vpop.xlane.xlu0 %472 }
  0xde   : > { %v496_v14 = vmul.f32 %v3840_v22, %v473_v21 }
  0xe0   : > { %v3925_v23 = vsub.f32 %v3837_v15, %v496_v14 }
  0xe2   : > { %v528_v25 = vmul.f32 %v3925_v23, %v3925_v23 }
  0xe4   : > { %555 = vadd.xlane.f32.xlu2 %v526_v24  ;;  %559 = vadd.xlane.f32.xlu1 %v528_v25  ;;  %v3973_v24 = vld [vmem:[%s5803_s2] ss:$0 sm:$0xff] }
 0x12e   : > { %v534_v26 = vpop.xlane.xlu0 %533 }
 0x12f   : > { %v530_v27 = vpop.xlane.xlu1 %529  ;;  %v563_v30 = vmul.f32 %v534_v26, %v3840_v22 }
 0x130   : > { %v561_v13 = vmul.f32 %v530_v27, %v3840_v22 }
 0x131   : > { %v579_v31 = vadd.f32 1e-05, %v563_v30 }
 0x132   : > { %v577_v32 = vadd.f32 1e-05, %v561_v13 }
 0x133   : > { %3278 = vrsqrt.f32 %v579_v31  ;;  %vm619_vm3 = vweird.f32 %v579_v31 }
 0x134   : > { %3280 = vrsqrt.f32 %v577_v32  ;;  %vm599_vm4 = vweird.f32 %v577_v32 }
 0x136   : > { %v540_v15 = vpop.xlane.xlu0 %539 }
 0x137   : > { %v536_v33 = vpop.xlane.xlu1 %535  ;;  %v532_v34 = vpop.xlane.xlu2 %531  ;;  %v566_v35 = vmul.f32 %v540_v15, %v3840_v22 }
 0x138   : > { %v564_v36 = vmul.f32 %v536_v33, %v3840_v22  ;;  %v562_v37 = vmul.f32 %v532_v34, %v3840_v22 }
 0x139   : > { %v3279_v41 = vpop.eup %3278  ;;  %v3936_v42 = vadd.f32 1e-05, %v566_v35 }
 0x13a   : > { %v3281_v43 = vpop.eup %3280  ;;  %v614_v44 = vmul.f32 %v3279_v41, %v579_v31  ;;  %v3938_v45 = vadd.f32 1e-05, %v564_v36  ;;  %v3940_v46 = vadd.f32 1e-05, %v562_v37  ;;  %vm620_vm1 = vweird.f32 %v3279_v41 }
 0x13b   : > { %v594_v47 = vmul.f32 %v3281_v43, %v577_v32  ;;  %3282 = vrsqrt.f32 %v3936_v42  ;;  %vm600_vm2 = vweird.f32 %v3281_v43  ;;  %vm621_vm5 = vmor %vm619_vm3, %vm620_vm1  ;;  %vm649_vm7 = vweird.f32 %v3936_v42 }
 0x13c   : > { %v615_v48 = vmul.f32 %v3279_v41, %v614_v44  ;;  %3284 = vrsqrt.f32 %v3938_v45  ;;  %vm601_vm6 = vmor %vm599_vm4, %vm600_vm2  ;;  %vm629_vm11 = vweird.f32 %v3938_v45  ;;  %vm609_vm12 = vweird.f32 %v3940_v46 }
 0x13d   : > { %v595_v50 = vmul.f32 %v3281_v43, %v594_v47  ;;  %3286 = vrsqrt.f32 %v3940_v46 }
 0x13e   : > { %v616_v53 = vmul.f32 0.5, %v615_v48  ;;  %v546_v54 = vpop.xlane.xlu0 %545 }
 0x13f   : > { %v596_v55 = vmul.f32 0.5, %v595_v50  ;;  %v538_v56 = vpop.xlane.xlu2 %537  ;;  %v542_v57 = vpop.xlane.xlu1 %541  ;;  %v569_v62 = vmul.f32 %v546_v54, %v3840_v22 }
 0x140   : > { %v617_v59 = vsub.f32 1.5, %v616_v53  ;;  %v565_v60 = vmul.f32 %v538_v56, %v3840_v22  ;;  %v567_v61 = vmul.f32 %v542_v57, %v3840_v22 }
 0x141   : > { %v3948_v1 = vpop.eup %3282  ;;  %v597_v2 = vsub.f32 1.5, %v596_v55  ;;  %v3968_v14 = vadd.f32 1e-05, %v569_v62 }
 0x142   : > { %v3950_v3 = vpop.eup %3284  ;;  %v618_v4 = vmul.f32 %v3279_v41, %v617_v59  ;;  %v644_v5 = vmul.f32 %v3948_v1, %v3936_v42  ;;  %v3954_v7 = vadd.f32 1e-05, %v565_v60  ;;  %v3963_v19 = vadd.f32 1e-05, %v567_v61 }
 0x143   : > { %v3956_v8 = vpop.eup %3286  ;;  %v598_v11 = vmul.f32 %v3281_v43, %v597_v2  ;;  %v624_v18 = vmul.f32 %v3950_v3, %v3938_v45  ;;  %vm650_vm8 = vweird.f32 %v3948_v1  ;;  %vm630_vm9 = vweird.f32 %v3950_v3 }
 0x144   : > { %v622_v10 = vsel %vm621_vm5, %v3279_v41, %v618_v4  ;;  %v604_v20 = vmul.f32 %v3956_v8, %v3940_v46  ;;  %v645_v21 = vmul.f32 %v3948_v1, %v644_v5  ;;  %3288 = vrsqrt.f32 %v3954_v7  ;;  %vm651_vm13 = vmor %vm649_vm7, %vm650_vm8 }
 0x145   : > { %v602_v25 = vsel %vm601_vm6, %v3281_v43, %v598_v11  ;;  %v755_v26 = vmul.f32 %v622_v10, %v3844_v28  ;;  %v625_v27 = vmul.f32 %v3950_v3, %v624_v18  ;;  %3290 = vrsqrt.f32 %v3963_v19  ;;  %vm631_vm14 = vmor %vm629_vm11, %vm630_vm9 }
 0x146   : > { %v753_v30 = vmul.f32 %v602_v25, %v3846_v29  ;;  %v605_v13 = vmul.f32 %v3956_v8, %v604_v20  ;;  %v646_v31 = vmul.f32 0.5, %v645_v21  ;;  %3292 = vrsqrt.f32 %v3968_v14  ;;  %v552_v48 = vpop.xlane.xlu0 %551 }
 0x147   : > { %v775_v32 = vmul.f32 %v3958_v9, %v755_v26  ;;  %v626_v15 = vmul.f32 0.5, %v625_v27  ;;  %v544_v33 = vpop.xlane.xlu2 %543  ;;  %v548_v41 = vpop.xlane.xlu1 %547  ;;  %vm610_vm10 = vweird.f32 %v3956_v8  ;;  %vm639_vm15 = vweird.f32 %v3954_v7 }
 0x148   : > { %v773_v28 = vmul.f32 %v3958_v9, %v753_v30  ;;  %v606_v34 = vmul.f32 0.5, %v605_v13  ;;  %v647_v35 = vsub.f32 1.5, %v646_v31  ;;  %v568_v37 = vmul.f32 %v544_v33, %v3840_v22  ;;  %vm611_vm0 = vmor %vm609_vm12, %vm610_vm10 }
 0x149   : > { %v795_v29 = vadd.f32 %v3973_v24, %v775_v32  ;;  %v627_v36 = vsub.f32 1.5, %v626_v15  ;;  %v570_v46 = vmul.f32 %v548_v41, %v3840_v22  ;;  %v572_v60 = vmul.f32 %v552_v48, %v3840_v22 }
 0x14a   : > { %v793_v43 = vadd.f32 %v3973_v24, %v773_v28  ;;  %v607_v44 = vsub.f32 1.5, %v606_v34  ;;  %v648_v47 = vmul.f32 %v3948_v1, %v647_v35  ;;  %v3992_v50 = vpop.eup %3288  ;;  %v4001_v54 = vadd.f32 1e-05, %v568_v37 }
 0x14b   : > { %811 = vst [vmem:[#allocation2 + $0x58] sm:$0xff] %v795_v29  ;;  %v628_v53 = vmul.f32 %v3950_v3, %v627_v36  ;;  %v634_v45 = vmul.f32 %v3992_v50, %v3954_v7  ;;  %v4011_v57 = vpop.eup %3290  ;;  %vm659_vm1 = vweird.f32 %v3963_v19  ;;  %vm640_vm2 = vweird.f32 %v3992_v50 }
 0x14c   : > { %809 = vst [vmem:[#allocation2 + $0x30] sm:$0xff] %v793_v43  ;;  %v608_v55 = vmul.f32 %v3956_v8, %v607_v44  ;;  %v652_v56 = vsel %vm651_vm13, %v3948_v1, %v648_v47  ;;  %3294 = vrsqrt.f32 %v4001_v54  ;;  %v3293_v61 = vpop.eup %3292  ;;  %v654_v4 = vmul.f32 %v4011_v57, %v3963_v19  ;;  %vm641_vm5 = vmor %vm639_vm15, %vm640_vm2 }
 0x14d   : > { %v632_v42 = vsel %vm631_vm14, %v3950_v3, %v628_v53  ;;  %v758_v59 = vmul.f32 %v652_v56, %v3855_v38  ;;  %v635_v2 = vmul.f32 %v3992_v50, %v634_v45  ;;  %v674_v38 = vmul.f32 %v3293_v61, %v3968_v14 }
 0x14e   : > { %v756_v62 = vmul.f32 %v632_v42, %v3857_v39  ;;  %v612_v1 = vsel %vm611_vm0, %v3956_v8, %v608_v55  ;;  %v655_v39 = vmul.f32 %v4011_v57, %v654_v4  ;;  %v4036_v30 = vadd.f32 1e-05, %v572_v60  ;;  %v558_v36 = vpop.xlane.xlu0 %557 }
 0x14f   : > { %v754_v3 = vmul.f32 %v612_v1, %v3859_v40  ;;  %v778_v5 = vmul.f32 %v3958_v9, %v758_v59  ;;  %v550_v11 = vpop.xlane.xlu2 %549  ;;  %v636_v10 = vmul.f32 0.5, %v635_v2  ;;  %v675_v21 = vmul.f32 %v3293_v61, %v674_v38  ;;  %v554_v15 = vpop.xlane.xlu1 %553 }
 0x150   : > { %v776_v18 = vmul.f32 %v3958_v9, %v756_v62  ;;  %v4033_v40 = vadd.f32 1e-05, %v570_v46  ;;  %v656_v27 = vmul.f32 0.5, %v655_v39  ;;  %vm679_vm3 = vweird.f32 %v3968_v14 }
 0x151   : > { %v774_v8 = vmul.f32 %v3958_v9, %v754_v3  ;;  %v798_v20 = vadd.f32 %v3973_v24, %v778_v5  ;;  %v637_v26 = vsub.f32 1.5, %v636_v10  ;;  %v676_v32 = vmul.f32 0.5, %v675_v21 }
 0x152   : > { %v796_v25 = vadd.f32 %v3973_v24, %v776_v18  ;;  %v4038_v13 = vpop.eup %3294  ;;  %3296 = vrsqrt.f32 %v4033_v40  ;;  %v657_v28 = vsub.f32 1.5, %v656_v27  ;;  %vm660_vm4 = vweird.f32 %v4011_v57  ;;  %v825_v27 = vld [vmem:[%s5807_s6] sm:$0x3] }
 0x153   : > { %v794_v31 = vadd.f32 %v3973_v24, %v774_v8  ;;  %814 = vst [vmem:[#allocation2 + $0x68] sm:$0xff] %v798_v20  ;;  %v638_v33 = vmul.f32 %v3992_v50, %v637_v26  ;;  %v664_v34 = vmul.f32 %v4038_v13, %v4001_v54  ;;  %v677_v35 = vsub.f32 1.5, %v676_v32  ;;  %vm661_vm7 = vmor %vm659_vm1, %vm660_vm4 }
 0x154   : > { %812 = vst [vmem:[#allocation2 + $0x18] sm:$0xff] %v796_v25  ;;  %vm680_vm6 = vweird.f32 %v3293_v61  ;;  %3298 = vrsqrt.f32 %v4036_v30  ;;  %v571_v29 = vmul.f32 %v550_v11, %v3840_v22  ;;  %v658_v41 = vmul.f32 %v4011_v57, %v657_v28 }
 0x155   : > { %810 = vst [vmem:[#allocation2] sm:$0xff] %v794_v31  ;;  %v642_v37 = vsel %vm641_vm5, %v3992_v50, %v638_v33  ;;  %v665_v43 = vmul.f32 %v4038_v13, %v664_v34  ;;  %v573_v44 = vmul.f32 %v554_v15, %v3840_v22  ;;  %v678_v7 = vmul.f32 %v3293_v61, %v677_v35  ;;  %vm681_vm9 = vmor %vm679_vm3, %vm680_vm6 }
 0x156   : > { %v757_v47 = vmul.f32 %v642_v37, %v3870_v49  ;;  %vm669_vm8 = vweird.f32 %v4001_v54  ;;  %v4061_v48 = vadd.f32 1e-05, %v571_v29  ;;  %v662_v53 = vsel %vm661_vm7, %v4011_v57, %v658_v41 }
 0x157   : > { %v666_v50 = vmul.f32 0.5, %v665_v43  ;;  %v4066_v55 = vadd.f32 1e-05, %v573_v44  ;;  %v575_v56 = vmul.f32 %v558_v36, %v3840_v22  ;;  %v556_v45 = vpop.xlane.xlu2 %555  ;;  %v759_v46 = vmul.f32 %v662_v53, %v3875_v52  ;;  %v560_v39 = vpop.xlane.xlu1 %559 }
 0x158   : > { %v3297_v49 = vpop.eup %3296  ;;  %v777_v19 = vmul.f32 %v3958_v9, %v757_v47  ;;  %v682_v42 = vsel %vm681_vm9, %v3293_v61, %v678_v7  ;;  %3300 = vrsqrt.f32 %v4061_v48  ;;  %vm670_vm10 = vweird.f32 %v4038_v13 }
 0x159   : > { %v761_v59 = vmul.f32 %v682_v42, %v3873_v51  ;;  %v667_v57 = vsub.f32 1.5, %v666_v50  ;;  %v684_v14 = vmul.f32 %v3297_v49, %v4033_v40  ;;  %v779_v1 = vmul.f32 %v3958_v9, %v759_v46  ;;  %vm671_vm11 = vmor %vm669_vm8, %vm670_vm10 }
 0x15a   : > { %v4075_v60 = vpop.eup %3298  ;;  %v797_v62 = vadd.f32 %v3973_v24, %v777_v19  ;;  %3302 = vrsqrt.f32 %v4066_v55  ;;  %v574_v52 = vmul.f32 %v556_v45, %v3840_v22  ;;  %vm689_vm12 = vweird.f32 %v4033_v40 }
 0x15b   : > { %v781_v61 = vmul.f32 %v3958_v9, %v761_v59  ;;  %v668_v2 = vmul.f32 %v4038_v13, %v667_v57  ;;  %v685_v51 = vmul.f32 %v3297_v49, %v684_v14  ;;  %v704_v4 = vmul.f32 %v4075_v60, %v4036_v30 }
 0x15c   : > { %813 = vst [vmem:[#allocation2 + $0x50] sm:$0xff] %v797_v62  ;;  %v799_v3 = vadd.f32 %v3973_v24, %v779_v1  ;;  %v4089_v5 = vadd.f32 1e-05, %v575_v56  ;;  %vm709_vm13 = vweird.f32 %v4036_v30  ;;  %v4099_v54 = vadd.f32 1e-05, %v574_v52 }
 0x15d   : > { %v801_v38 = vadd.f32 %v3973_v24, %v781_v61  ;;  %v672_v11 = vsel %vm671_vm11, %v4038_v13, %v668_v2  ;;  %v686_v18 = vmul.f32 0.5, %v685_v51  ;;  %v705_v10 = vmul.f32 %v4075_v60, %v704_v4 }
 0x15e   : > { %v4094_v8 = vpop.eup %3300  ;;  %815 = vst [vmem:[#allocation2 + $0x8] sm:$0xff] %v799_v3  ;;  %v760_v20 = vmul.f32 %v672_v11, %v3885_v58  ;;  %3304 = vrsqrt.f32 %v4089_v5  ;;  %vm690_vm14 = vweird.f32 %v3297_v49  ;;  %vm710_vm15 = vweird.f32 %v4075_v60 }
 0x15f   : > { %817 = vst [vmem:[#allocation2 + $0x40] sm:$0xff] %v801_v38  ;;  %v687_v21 = vsub.f32 1.5, %v686_v18  ;;  %v706_v25 = vmul.f32 0.5, %v705_v10  ;;  %v694_v26 = vmul.f32 %v4094_v8, %v4061_v48  ;;  %3306 = vrsqrt.f32 %v4099_v54  ;;  %vm691_vm0 = vmor %vm689_vm12, %vm690_vm14 }
 0x160   : > { %v4106_v13 = vpop.eup %3302  ;;  %v780_v58 = vmul.f32 %v3958_v9, %v760_v20  ;;  %v576_v31 = vmul.f32 %v560_v39, %v3840_v22  ;;  %v4120_v29 = vperm.slane %v825_v27, 0  ;;  %vm711_vm1 = vmor %vm709_vm13, %vm710_vm15  ;;  %vm700_vm2 = vweird.f32 %v4094_v8 }
 0x161   : > { %v688_v32 = vmul.f32 %v3297_v49, %v687_v21  ;;  %v707_v15 = vsub.f32 1.5, %v706_v25  ;;  %v695_v33 = vmul.f32 %v4094_v8, %v694_v26  ;;  %v714_v28 = vmul.f32 %v4106_v13, %v4066_v55 }
 0x162   : > { %v800_v34 = vadd.f32 %v3973_v24, %v780_v58  ;;  %v4118_v35 = vadd.f32 1e-05, %v576_v31  ;;  %v4133_v40 = vperm.slane %v825_v27, 1  ;;  %831 = vst [vmem:[#allocation3 + $0xa8] sm:$0xff] %v4120_v29  ;;  %vm699_vm3 = vweird.f32 %v4061_v48 }
 0x163   : > { %v692_v36 = vsel %vm691_vm0, %v3297_v49, %v688_v32  ;;  %v708_v37 = vmul.f32 %v4075_v60, %v707_v15  ;;  %v696_v22 = vmul.f32 0.5, %v695_v33  ;;  %v715_v41 = vmul.f32 %v4106_v13, %v714_v28  ;;  %833 = vst [vmem:[#allocation3 + $0x10] sm:$0xff] %v4120_v29  ;;  %vm701_vm5 = vmor %vm699_vm3, %vm700_vm2 }
 0x164   : > { %v4124_v43 = vpop.eup %3304  ;;  %816 = vst [vmem:[#allocation2 + $0x48] sm:$0xff] %v800_v34  ;;  %v762_v44 = vmul.f32 %v692_v36, %v3893_v0  ;;  %3308 = vrsqrt.f32 %v4118_v35  ;;  %vm720_vm4 = vweird.f32 %v4106_v13  ;;  %vm719_vm6 = vweird.f32 %v4066_v55 }
 0x165   : > { %v712_v47 = vsel %vm711_vm1, %v4075_v60, %v708_v37  ;;  %v697_v7 = vsub.f32 1.5, %v696_v22  ;;  %v716_v53 = vmul.f32 0.5, %v715_v41  ;;  %v734_v50 = vmul.f32 %v4124_v43, %v4089_v5  ;;  %v3307_v0 = vpop.eup %3306  ;;  %832 = vst [vmem:[#allocation3 + $0x68] sm:$0xff] %v4133_v40  ;;  %vm721_vm7 = vmor %vm719_vm6, %vm720_vm4 }
 0x166   : > { %v782_v56 = vmul.f32 %v3958_v9, %v762_v44  ;;  %v764_v30 = vmul.f32 %v712_v47, %v3890_v63  ;;  %v724_v46 = vmul.f32 %v3307_v0, %v4099_v54  ;;  %834 = vst [vmem:[#allocation3 + $0xc0] sm:$0xff] %v4133_v40  ;;  %vm739_vm8 = vweird.f32 %v4089_v5 }
 0x167   : > { %v698_v45 = vmul.f32 %v4094_v8, %v697_v7  ;;  %v717_v49 = vsub.f32 1.5, %v716_v53  ;;  %v735_v19 = vmul.f32 %v4124_v43, %v734_v50  ;;  %835 = vst [vmem:[#allocation3 + $0xc8] sm:$0xff] %v4120_v29  ;;  %vm740_vm9 = vweird.f32 %v4124_v43 }
 0x168   : > { %v802_v42 = vadd.f32 %v3973_v24, %v782_v56  ;;  %v784_v59 = vmul.f32 %v3958_v9, %v764_v30  ;;  %v725_v14 = vmul.f32 %v3307_v0, %v724_v46  ;;  %836 = vst [vmem:[#allocation3 + $0xb0] sm:$0xff] %v4133_v40  ;;  %vm730_vm10 = vweird.f32 %v3307_v0  ;;  %vm741_vm11 = vmor %vm739_vm8, %vm740_vm9 }
 0x169   : > { %v702_v63 = vsel %vm701_vm5, %v4094_v8, %v698_v45  ;;  %v718_v48 = vmul.f32 %v4106_v13, %v717_v49  ;;  %v736_v57 = vmul.f32 0.5, %v735_v19  ;;  %837 = vst [vmem:[#allocation3 + $0x70] sm:$0xff] %v4120_v29  ;;  %vm729_vm12 = vweird.f32 %v4099_v54 }
 0x16a   : > { %v3309_v60 = vpop.eup %3308  ;;  %818 = vst [vmem:[#allocation2 + $0x20] sm:$0xff] %v802_v42  ;;  %v804_v62 = vadd.f32 %v3973_v24, %v784_v59  ;;  %v763_v1 = vmul.f32 %v702_v63, %v3903_v6  ;;  %v726_v61 = vmul.f32 0.5, %v725_v14  ;;  %vm731_vm13 = vmor %vm729_vm12, %vm730_vm10  ;;  %vm749_vm15 = vweird.f32 %v4118_v35 }
 0x16b   : > { %v722_v55 = vsel %vm721_vm7, %v4106_v13, %v718_v48  ;;  %v737_v52 = vsub.f32 1.5, %v736_v57  ;;  %v744_v2 = vmul.f32 %v3309_v60, %v4118_v35  ;;  %838 = vst [vmem:[#allocation3 + $0x38] sm:$0xff] %v4133_v40  ;;  %vm750_vm14 = vweird.f32 %v3309_v60 }
 0x16c   : > { %820 = vst [vmem:[#allocation2 + $0x38] sm:$0xff] %v804_v62  ;;  %v783_v51 = vmul.f32 %v3958_v9, %v763_v1  ;;  %v765_v6 = vmul.f32 %v722_v55, %v3911_v17  ;;  %v727_v3 = vsub.f32 1.5, %v726_v61  ;;  %vm751_vm0 = vmor %vm749_vm15, %vm750_vm14 }
 0x16d   : > { %v738_v4 = vmul.f32 %v4124_v43, %v737_v52  ;;  %v745_v38 = vmul.f32 %v3309_v60, %v744_v2  ;;  %839 = vst [vmem:[#allocation3 + $0x48] sm:$0xff] %v4120_v29 }
 0x16e   : > { %v803_v11 = vadd.f32 %v3973_v24, %v783_v51  ;;  %v785_v18 = vmul.f32 %v3958_v9, %v765_v6  ;;  %v728_v10 = vmul.f32 %v3307_v0, %v727_v3  ;;  %840 = vst [vmem:[#allocation3 + $0xf8] sm:$0xff] %v4133_v40 }
 0x16f   : > { %v742_v17 = vsel %vm741_vm11, %v4124_v43, %v738_v4  ;;  %v746_v39 = vmul.f32 0.5, %v745_v38  ;;  %841 = vst [vmem:[#allocation3 + $0x78] sm:$0xff] %v4120_v29 }
 0x170   : > { %819 = vst [vmem:[#allocation2 + $0x10] sm:$0xff] %v803_v11  ;;  %v805_v8 = vadd.f32 %v3973_v24, %v785_v18  ;;  %v767_v20 = vmul.f32 %v742_v17, %v3908_v16  ;;  %v732_v21 = vsel %vm731_vm13, %v3307_v0, %v728_v10 }
 0x171   : > { %v747_v5 = vsub.f32 1.5, %v746_v39  ;;  %v766_v54 = vmul.f32 %v732_v21, %v3921_v12  ;;  %842 = vst [vmem:[#allocation3 + $0x88] sm:$0xff] %v4133_v40 }
 0x172   : > { %821 = vst [vmem:[#allocation2 + $0x60] sm:$0xff] %v805_v8  ;;  %v787_v25 = vmul.f32 %v3958_v9, %v767_v20 }
 0x173   : > { %v748_v26 = vmul.f32 %v3309_v60, %v747_v5  ;;  %v786_v16 = vmul.f32 %v3958_v9, %v766_v54  ;;  %843 = vst [vmem:[#allocation3 + $0xf0] sm:$0xff] %v4120_v29 }
 0x174   : > { %v807_v27 = vadd.f32 %v3973_v24, %v787_v25  ;;  %844 = vst [vmem:[#allocation3 + $0x18] sm:$0xff] %v4133_v40 }
 0x175   : > { %v752_v13 = vsel %vm751_vm0, %v3309_v60, %v748_v26  ;;  %v806_v58 = vadd.f32 %v3973_v24, %v786_v16  ;;  %845 = vst [vmem:[#allocation3 + $0x30] sm:$0xff] %v4120_v29 }
 0x176   : > { %823 = vst [vmem:[#allocation2 + $0x78] sm:$0xff] %v807_v27  ;;  %v768_v12 = vmul.f32 %v752_v13, %v3925_v23 }
 0x177   : > { %822 = vst [vmem:[#allocation2 + $0x70] sm:$0xff] %v806_v58 }
 0x178   : > { %v788_v31 = vmul.f32 %v3958_v9, %v768_v12  ;;  %846 = vst [vmem:[#allocation3 + $0x50] sm:$0xff] %v4133_v40 }
 0x179   : > { %847 = vst [vmem:[#allocation3 + $0xb8] sm:$0xff] %v4120_v29 }
 0x17a   : > { %v808_v32 = vadd.f32 %v3973_v24, %v788_v31  ;;  %848 = vst [vmem:[#allocation3 + $0xd0] sm:$0xff] %v4133_v40 }
 0x17b   : > { %849 = vst [vmem:[#allocation3 + $0xd8] sm:$0xff] %v4120_v29 }
 0x17c   : > { %824 = vst [vmem:[#allocation2 + $0x28] sm:$0xff] %v808_v32 }
 0x17d   : > { %850 = vst [vmem:[#allocation3 + $0x58] sm:$0xff] %v4133_v40 }
 0x17e   : > { %851 = vst [vmem:[#allocation3 + $0x80] sm:$0xff] %v4120_v29 }
 0x17f   : > { %852 = vst [vmem:[#allocation3 + $0x40] sm:$0xff] %v4133_v40 }
 0x180   : > { %853 = vst [vmem:[#allocation3 + $0x28] sm:$0xff] %v4120_v29 }
 0x181   : > { %854 = vst [vmem:[#allocation3] sm:$0xff] %v4133_v40 }
 0x182   : > { %855 = vst [vmem:[#allocation3 + $0x90] sm:$0xff] %v4120_v29 }
 0x183   : > { %856 = vst [vmem:[#allocation3 + $0xe8] sm:$0xff] %v4133_v40 }
 0x184   : > { %857 = vst [vmem:[#allocation3 + $0xa0] sm:$0xff] %v4120_v29 }
 0x185   : > { %858 = vst [vmem:[#allocation3 + $0x20] sm:$0xff] %v4133_v40 }
 0x186   : > { %859 = vst [vmem:[#allocation3 + $0x8] sm:$0xff] %v4120_v29 }
 0x187   : > { %860 = vst [vmem:[#allocation3 + $0xe0] sm:$0xff] %v4133_v40 }
 0x188   : > { %861 = vst [vmem:[#allocation3 + $0x60] sm:$0xff] %v4120_v29 }
 0x189   : > { %862 = vst [vmem:[#allocation3 + $0x98] sm:$0xff] %v4133_v40 }
 0x18a PF: > { %v909_v23 = vld [vmem:[%s3802_s20 + $0xf0] sm:$0xff]  ;;  %v910_v9 = vld [vmem:[%s3802_s20 + $0xf8] sm:$0xff]  ;;  %v907_v24 = vld [vmem:[%s3802_s20 + $0xe0] sm:$0xff]  ;;  %p3133_p2 = scmp.ne.s32.totalorder %s3606_s27, 1 }
 0x18b   : > { %917 = vmatpush.msra.mxu0 %v909_v23  ;;  %982 = vmatpush.msra.mxu1 %v910_v9  ;;  %v908_v15 = vld [vmem:[%s3802_s20 + $0xe8] sm:$0xff]  ;;  %v905_v33 = vld [vmem:[%s3802_s20 + $0xd0] sm:$0xff]  ;;  %v906_v28 = vld [vmem:[%s3802_s20 + $0xd8] sm:$0xff] }
 0x18c   : > { %3141 = vmatpush.msra.mxu2 %v909_v23  ;;  %3157 = vmatpush.msra.mxu3 %v910_v9  ;;  %v903_v34 = vld [vmem:[%s3802_s20 + $0xc0] sm:$0xff]  ;;  %v904_v35 = vld [vmem:[%s3802_s20 + $0xc8] sm:$0xff]  ;;  %v901_v29 = vld [vmem:[%s3802_s20 + $0xb0] sm:$0xff] }
 0x18d   : > { %918 = vmatpush.msra.mxu0 %v907_v24  ;;  %983 = vmatpush.msra.mxu1 %v908_v15  ;;  %v902_v36 = vld [vmem:[%s3802_s20 + $0xb8] sm:$0xff]  ;;  %v899_v37 = vld [vmem:[%s3802_s20 + $0xa0] sm:$0xff]  ;;  %v900_v22 = vld [vmem:[%s3802_s20 + $0xa8] sm:$0xff] }
 0x18e   : > { %3142 = vmatpush.msra.mxu2 %v907_v24  ;;  %3158 = vmatpush.msra.mxu3 %v908_v15  ;;  %v897_v41 = vld [vmem:[%s3802_s20 + $0x90] sm:$0xff]  ;;  %v898_v43 = vld [vmem:[%s3802_s20 + $0x98] sm:$0xff]  ;;  %v895_v44 = vld [vmem:[%s3802_s20 + $0x80] sm:$0xff] }
 0x18f   : > { %919 = vmatpush.msra.mxu0 %v905_v33  ;;  %984 = vmatpush.msra.mxu1 %v906_v28  ;;  %v896_v40 = vld [vmem:[%s3802_s20 + $0x88] sm:$0xff]  ;;  %v893_v47 = vld [vmem:[%s3802_s20 + $0x70] sm:$0xff]  ;;  %v894_v7 = vld [vmem:[%s3802_s20 + $0x78] sm:$0xff] }
 0x190   : > { %3143 = vmatpush.msra.mxu2 %v905_v33  ;;  %3159 = vmatpush.msra.mxu3 %v906_v28  ;;  %v891_v53 = vld [vmem:[%s3802_s20 + $0x60] sm:$0xff]  ;;  %v892_v50 = vld [vmem:[%s3802_s20 + $0x68] sm:$0xff]  ;;  %v889_v0 = vld [vmem:[%s3802_s20 + $0x50] sm:$0xff] }
 0x191   : > { %920 = vmatpush.msra.mxu0 %v903_v34  ;;  %985 = vmatpush.msra.mxu1 %v904_v35  ;;  %v890_v56 = vld [vmem:[%s3802_s20 + $0x58] sm:$0xff]  ;;  %v887_v30 = vld [vmem:[%s3802_s20 + $0x40] sm:$0xff]  ;;  %v888_v45 = vld [vmem:[%s3802_s20 + $0x48] sm:$0xff] }
 0x192   : > { %3144 = vmatpush.msra.mxu2 %v903_v34  ;;  %3160 = vmatpush.msra.mxu3 %v904_v35  ;;  %v885_v49 = vld [vmem:[%s3802_s20 + $0x30] sm:$0xff]  ;;  %v886_v19 = vld [vmem:[%s3802_s20 + $0x38] sm:$0xff]  ;;  %v883_v46 = vld [vmem:[%s3802_s20 + $0x20] sm:$0xff] }
 0x193   : > { %921 = vmatpush.msra.mxu0 %v901_v29  ;;  %986 = vmatpush.msra.mxu1 %v902_v36  ;;  %v884_v42 = vld [vmem:[%s3802_s20 + $0x28] sm:$0xff]  ;;  %v881_v59 = vld [vmem:[%s3802_s20 + $0x10] sm:$0xff]  ;;  %v882_v63 = vld [vmem:[%s3802_s20 + $0x18] sm:$0xff] }
 0x194   : > { %3145 = vmatpush.msra.mxu2 %v901_v29  ;;  %3161 = vmatpush.msra.mxu3 %v902_v36  ;;  %v879_v48 = vld [vmem:[%s3802_s20] sm:$0xff]  ;;  %v880_v57 = vld [vmem:[%s3802_s20 + $0x8] sm:$0xff]  ;;  %v865_v55 = vld [vmem:[#allocation2 + $0x58] sm:$0xff] }
 0x195   : > { %922 = vmatpush.msra.mxu0 %v899_v37  ;;  %987 = vmatpush.msra.mxu1 %v900_v22  ;;  %v863_v14 = vld [vmem:[#allocation2 + $0x30] sm:$0xff]  ;;  %v871_v60 = vld [vmem:[#allocation2 + $0x40] sm:$0xff]  ;;  %v866_v61 = vld [vmem:[#allocation2 + $0x18] sm:$0xff] }
 0x196   : > { %3146 = vmatpush.msra.mxu2 %v899_v37  ;;  %3162 = vmatpush.msra.mxu3 %v900_v22  ;;  %v864_v62 = vld [vmem:[#allocation2] sm:$0xff]  ;;  %v873_v52 = vld [vmem:[#allocation2 + $0x10] sm:$0xff]  ;;  %v874_v2 = vld [vmem:[#allocation2 + $0x38] sm:$0xff] }
 0x197   : > { %923 = vmatpush.msra.mxu0 %v897_v41  ;;  %988 = vmatpush.msra.mxu1 %v898_v43  ;;  %v872_v1 = vld [vmem:[#allocation2 + $0x20] sm:$0xff]  ;;  %v2517_v51 = vld [vmem:[%s3810_s16 + $0xf0] sm:$0xff]  ;;  %v868_v8 = vld [vmem:[#allocation2 + $0x68] sm:$0xff] }
 0x198   : > { %3147 = vmatpush.msra.mxu2 %v897_v41  ;;  %3163 = vmatpush.msra.mxu3 %v898_v43  ;;  %v2549_v6 = vld [vmem:[%s3810_s16 + $0x1f0] sm:$0xff]  ;;  %v2515_v4 = vld [vmem:[%s3810_s16 + $0xe0] sm:$0xff]  ;;  %v2518_v38 = vld [vmem:[%s3810_s16 + $0xf8] sm:$0xff] }
 0x199   : > { %924 = vmatpush.msra.mxu0 %v895_v44  ;;  %989 = vmatpush.msra.mxu1 %v896_v40  ;;  %v2547_v3 = vld [vmem:[%s3810_s16 + $0x1e0] sm:$0xff]  ;;  %v2550_v11 = vld [vmem:[%s3810_s16 + $0x1f8] sm:$0xff]  ;;  %v2513_v18 = vld [vmem:[%s3810_s16 + $0xd0] sm:$0xff] }
 0x19a   : > { %3148 = vmatpush.msra.mxu2 %v895_v44  ;;  %3164 = vmatpush.msra.mxu3 %v896_v40  ;;  %v2545_v17 = vld [vmem:[%s3810_s16 + $0x1d0] sm:$0xff]  ;;  %v875_v39 = vld [vmem:[#allocation2 + $0x60] sm:$0xff]  ;;  %v869_v21 = vld [vmem:[#allocation2 + $0x8] sm:$0xff] }
 0x19b   : > { %925 = vmatpush.msra.mxu0 %v893_v47  ;;  %990 = vmatpush.msra.mxu1 %v894_v7  ;;  %v867_v10 = vld [vmem:[#allocation2 + $0x50] sm:$0xff]  ;;  %v877_v5 = vld [vmem:[#allocation2 + $0x78] sm:$0xff]  ;;  %v870_v25 = vld [vmem:[#allocation2 + $0x48] sm:$0xff] }
 0x19c   : > { %3149 = vmatpush.msra.mxu2 %v893_v47  ;;  %3165 = vmatpush.msra.mxu3 %v894_v7  ;;  %v876_v20 = vld [vmem:[#allocation2 + $0x70] sm:$0xff]  ;;  %v878_v54 = vld [vmem:[#allocation2 + $0x28] sm:$0xff]  ;;  %v911_v26 = vld [vmem:[%s3808_s22] sm:$0x3] }
 0x19d   : > { %926 = vmatpush.msra.mxu0 %v891_v53  ;;  %991 = vmatpush.msra.mxu1 %v892_v50  ;;  %v2516_v27 = vld [vmem:[%s3810_s16 + $0xe8] sm:$0xff]  ;;  %v2514_v13 = vld [vmem:[%s3810_s16 + $0xd8] sm:$0xff]  ;;  %v4260_v12 = vperm.slane %v911_v26, 0  ;;  %v4262_v31 = vperm.slane %v911_v26, 1  ;;  %v2511_v32 = vld [vmem:[%s3810_s16 + $0xc0] sm:$0xff] }
 0x19e   : > { %3150 = vmatpush.msra.mxu2 %v891_v53  ;;  %3166 = vmatpush.msra.mxu3 %v892_v50  ;;  %v2548_v16 = vld [vmem:[%s3810_s16 + $0x1e8] sm:$0xff]  ;;  %v2546_v58 = vld [vmem:[%s3810_s16 + $0x1d8] sm:$0xff]  ;;  %v2543_v23 = vld [vmem:[%s3810_s16 + $0x1c0] sm:$0xff] }
 0x19f   : > { %927 = vmatpush.msra.mxu0 %v889_v0  ;;  %992 = vmatpush.msra.mxu1 %v890_v56  ;;  %v2509_v15 = vld [vmem:[%s3810_s16 + $0xb0] sm:$0xff]  ;;  %v2512_v35 = vld [vmem:[%s3810_s16 + $0xc8] sm:$0xff]  ;;  %v2510_v22 = vld [vmem:[%s3810_s16 + $0xb8] sm:$0xff] }
 0x1a0   : > { %3151 = vmatpush.msra.mxu2 %v889_v0  ;;  %3167 = vmatpush.msra.mxu3 %v890_v56  ;;  %v2541_v33 = vld [vmem:[%s3810_s16 + $0x1b0] sm:$0xff]  ;;  %v2544_v29 = vld [vmem:[%s3810_s16 + $0x1c8] sm:$0xff]  ;;  %v2542_v41 = vld [vmem:[%s3810_s16 + $0x1b8] sm:$0xff] }
 0x1a1   : > { %928 = vmatpush.msra.mxu0 %v887_v30  ;;  %993 = vmatpush.msra.mxu1 %v888_v45  ;;  %v2507_v40 = vld [vmem:[%s3810_s16 + $0xa0] sm:$0xff]  ;;  %v2505_v50 = vld [vmem:[%s3810_s16 + $0x90] sm:$0xff] }
 0x1a2   : > { %3152 = vmatpush.msra.mxu2 %v887_v30  ;;  %3168 = vmatpush.msra.mxu3 %v888_v45  ;;  %v2539_v47 = vld [vmem:[%s3810_s16 + $0x1a0] sm:$0xff]  ;;  %v2537_v0 = vld [vmem:[%s3810_s16 + $0x190] sm:$0xff] }
 0x1a3   : > { %929 = vmatpush.msra.mxu0 %v885_v49  ;;  %994 = vmatpush.msra.mxu1 %v886_v19  ;;  %v2503_v26 = vld [vmem:[%s3810_s16 + $0x80] sm:$0xff] }
 0x1a4   : > { %3153 = vmatpush.msra.mxu2 %v885_v49  ;;  %3169 = vmatpush.msra.mxu3 %v886_v19 }
 0x1a5   : > { %930 = vmatpush.msra.mxu0 %v883_v46  ;;  %995 = vmatpush.msra.mxu1 %v884_v42 }
 0x1a6   : > { %3154 = vmatpush.msra.mxu2 %v883_v46  ;;  %3170 = vmatpush.msra.mxu3 %v884_v42 }
 0x1a7   : > { %931 = vmatpush.msra.mxu0 %v881_v59  ;;  %996 = vmatpush.msra.mxu1 %v882_v63 }
 0x1a8   : > { %3155 = vmatpush.msra.mxu2 %v881_v59  ;;  %3171 = vmatpush.msra.mxu3 %v882_v63 }
 0x1a9   : > { %932 = vmatpush.msra.mxu0 %v879_v48  ;;  %997 = vmatpush.msra.mxu1 %v880_v57 }
 0x1aa   : > { %933 = vmatmul.f32.vlgmr.msra.gmra.mxu0 %v863_v14  ;;  %998 = vmatmul.f32.vlgmr.msra.gmra.mxu1 %v863_v14 }
 0x1ab   : > { %3156 = vmatpush.msra.mxu2 %v879_v48  ;;  %3172 = vmatpush.msra.mxu3 %v880_v57 }
 0x1ac   : > { %957 = vmatmul.f32.vlgmr.msra.gmra.mxu2 %v871_v60  ;;  %1022 = vmatmul.f32.vlgmr.msra.gmra.mxu3 %v871_v60 }
 0x1ad   : > { %2551 = vmatpush.msrb.mxu2 %v2517_v51  ;;  %2616 = vmatpush.msrb.mxu3 %v2549_v6  ;;  %v2508_v51 = vld [vmem:[%s3810_s16 + $0xa8] sm:$0xff] }
 0x1ae   : > { %2681 = vmatpush.msrb.mxu0 %v2518_v38  ;;  %2746 = vmatpush.msrb.mxu1 %v2550_v11  ;;  %v2540_v6 = vld [vmem:[%s3810_s16 + $0x1a8] sm:$0xff] }
 0x1af   : > { %2552 = vmatpush.msrb.mxu2 %v2515_v4  ;;  %2617 = vmatpush.msrb.mxu3 %v2547_v3 }
 0x1b0   : > { %2682 = vmatpush.msrb.mxu0 %v2516_v27  ;;  %2747 = vmatpush.msrb.mxu1 %v2548_v16  ;;  %v2535_v27 = vld [vmem:[%s3810_s16 + $0x180] sm:$0xff] }
 0x1b1   : > { %2553 = vmatpush.msrb.mxu2 %v2513_v18  ;;  %2618 = vmatpush.msrb.mxu3 %v2545_v17 }
 0x1b2   : > { %936 = vmatmul.f32.gmra.mxu0 %v864_v62  ;;  %1001 = vmatmul.f32.gmra.mxu1 %v864_v62 }
 0x1b3   : > { %2683 = vmatpush.msrb.mxu0 %v2514_v13  ;;  %2748 = vmatpush.msrb.mxu1 %v2546_v58 }
 0x1b4   : > { %960 = vmatmul.f32.gmra.mxu2 %v872_v1  ;;  %1025 = vmatmul.f32.gmra.mxu3 %v872_v1 }
 0x1b5   : > { %2554 = vmatpush.msrb.mxu2 %v2511_v32  ;;  %2619 = vmatpush.msrb.mxu3 %v2543_v23 }
 0x1b6   : > { %2684 = vmatpush.msrb.mxu0 %v2512_v35  ;;  %2749 = vmatpush.msrb.mxu1 %v2544_v29  ;;  %v2533_v35 = vld [vmem:[%s3810_s16 + $0x170] sm:$0xff] }
 0x1b7   : > { %2555 = vmatpush.msrb.mxu2 %v2509_v15  ;;  %2620 = vmatpush.msrb.mxu3 %v2541_v33  ;;  %v2501_v33 = vld [vmem:[%s3810_s16 + $0x70] sm:$0xff] }
 0x1b8   : > { %2685 = vmatpush.msrb.mxu0 %v2510_v22  ;;  %2750 = vmatpush.msrb.mxu1 %v2542_v41 }
 0x1b9   : > { %2556 = vmatpush.msrb.mxu2 %v2507_v40  ;;  %2621 = vmatpush.msrb.mxu3 %v2539_v47 }
 0x1ba   : > { %939 = vmatmul.f32.gmra.mxu0 %v865_v55  ;;  %1004 = vmatmul.f32.gmra.mxu1 %v865_v55 }
 0x1bb   : > { %2557 = vmatpush.msrb.mxu2 %v2505_v50  ;;  %2622 = vmatpush.msrb.mxu3 %v2537_v0 }
 0x1bc   : > { %963 = vmatmul.f32.gmra.mxu2 %v873_v52  ;;  %1028 = vmatmul.f32.gmra.mxu3 %v873_v52 }
 0x1bd   : > { %2686 = vmatpush.msrb.mxu0 %v2508_v51  ;;  %2751 = vmatpush.msrb.mxu1 %v2540_v6 }
 0x1be   : > { %2558 = vmatpush.msrb.mxu2 %v2503_v26  ;;  %2623 = vmatpush.msrb.mxu3 %v2535_v27 }
 0x1c0   : > { %2559 = vmatpush.msrb.mxu2 %v2501_v33  ;;  %2624 = vmatpush.msrb.mxu3 %v2533_v35 }
 0x1c2   : > { %942 = vmatmul.f32.gmra.mxu0 %v866_v61  ;;  %1007 = vmatmul.f32.gmra.mxu1 %v866_v61 }
 0x1c4   : > { %966 = vmatmul.f32.gmra.mxu2 %v874_v2  ;;  %1031 = vmatmul.f32.gmra.mxu3 %v874_v2 }
 0x1ca   : > { %945 = vmatmul.f32.gmra.mxu0 %v867_v10  ;;  %1010 = vmatmul.f32.gmra.mxu1 %v867_v10  ;;  %v2506_v10 = vld [vmem:[%s3810_s16 + $0x98] sm:$0xff] }
 0x1cb   : > { %2687 = vmatpush.msrb.mxu0 %v2506_v10 }
 0x1cc   : > { %969 = vmatmul.f32.gmra.mxu2 %v875_v39  ;;  %1034 = vmatmul.f32.gmra.mxu3 %v875_v39  ;;  %v2538_v39 = vld [vmem:[%s3810_s16 + $0x198] sm:$0xff] }
 0x1cd   : > { %2752 = vmatpush.msrb.mxu1 %v2538_v39 }
 0x1d2   : > { %948 = vmatmul.f32.gmra.mxu0 %v868_v8  ;;  %1013 = vmatmul.f32.gmra.mxu1 %v868_v8 }
 0x1d4   : > { %972 = vmatmul.f32.gmra.mxu2 %v876_v20  ;;  %1037 = vmatmul.f32.gmra.mxu3 %v876_v20 }
 0x1da   : > { %951 = vmatmul.f32.gmra.mxu0 %v869_v21  ;;  %1016 = vmatmul.f32.gmra.mxu1 %v869_v21 }
 0x1dc   : > { %975 = vmatmul.f32.gmra.mxu2 %v877_v5  ;;  %1040 = vmatmul.f32.gmra.mxu3 %v877_v5 }
 0x1e2   : > { %954 = vmatmul.f32.gmra.mxu0 %v870_v25  ;;  %1019 = vmatmul.f32.gmra.mxu1 %v870_v25 }
 0x1e4   : > { %978 = vmatmul.f32.gmra.mxu2 %v878_v54  ;;  %1043 = vmatmul.f32.gmra.mxu3 %v878_v54 }
 0x227   : > { %v934_v9 = vpop.f32.mrf.mxu0  ;;  %v999_v24 = vpop.f32.mrf.mxu1 }
 0x228   : > { %v4269_v28 = vadd.f32 %v934_v9, %v4260_v12  ;;  %v4272_v34 = vadd.f32 %v999_v24, %v4262_v31 }
 0x22a   : > { %v4277_v36 = vmul.f32 0.70710677, %v4269_v28  ;;  %v4280_v37 = vmul.f32 0.70710677, %v4272_v34 }
 0x22c   : > { %v1111_v43 = vmul.f32 %v4277_v36, %v4277_v36  ;;  %v1151_v44 = vmul.f32 %v4280_v37, %v4280_v37 }
 0x22e   : > { %v4290_v7 = vmin.f32 %v1111_v43, 16.0  ;;  %v4292_v53 = vmin.f32 %v1151_v44, 16.0 }
 0x22f   : > { %v937_v56 = vpop.f32.mrf.mxu0  ;;  %v1002_v30 = vpop.f32.mrf.mxu1 }
 0x230   : > { %v1113_v45 = vmul.f32 2.1237322e-06, %v4290_v7  ;;  %v1124_v49 = vmul.f32 3.8918573e-05, %v4290_v7  ;;  %v1153_v19 = vmul.f32 2.1237322e-06, %v4292_v53  ;;  %v4300_v46 = vadd.f32 %v937_v56, %v4260_v12  ;;  %v958_v13 = vpop.f32.mrf.mxu2  ;;  %v1023_v0 = vpop.f32.mrf.mxu3 }
 0x231   : > { %v1164_v42 = vmul.f32 3.8918573e-05, %v4292_v53  ;;  %v4304_v59 = vadd.f32 %v1002_v30, %v4262_v31  ;;  %v4347_v43 = vadd.f32 %v958_v13, %v4260_v12  ;;  %v2531_v13 = vld [vmem:[%s3810_s16 + $0x160] sm:$0xff] }
 0x232   : > { %v1114_v63 = vadd.f32 0.00028619796, %v1113_v45  ;;  %v1125_v48 = vadd.f32 0.001143296, %v1124_v49  ;;  %v1154_v57 = vadd.f32 0.00028619796, %v1153_v19  ;;  %2625 = vmatpush.msrb.mxu3 %v2531_v13 }
 0x233   : > { %v1165_v14 = vadd.f32 0.001143296, %v1164_v42  ;;  %v4307_v60 = vmul.f32 0.70710677, %v4300_v46  ;;  %v4313_v52 = vmul.f32 0.70710677, %v4304_v59 }
 0x234   : > { %v1115_v62 = vmul.f32 %v1114_v63, %v4290_v7  ;;  %v1126_v1 = vmul.f32 %v1125_v48, %v4290_v7  ;;  %v1155_v55 = vmul.f32 %v1154_v57, %v4292_v53  ;;  %v2504_v49 = vld [vmem:[%s3810_s16 + $0x88] sm:$0xff] }
 0x235   : > { %v1166_v61 = vmul.f32 %v1165_v14, %v4292_v53  ;;  %v1191_v2 = vmul.f32 %v4307_v60, %v4307_v60  ;;  %v1231_v38 = vmul.f32 %v4313_v52, %v4313_v52  ;;  %v2536_v19 = vld [vmem:[%s3810_s16 + $0x188] sm:$0xff]  ;;  %v4360_v14 = vmul.f32 0.70710677, %v4347_v43  ;;  %2688 = vmatpush.msrb.mxu0 %v2504_v49 }
 0x236   : > { %v1116_v4 = vadd.f32 0.0036580483, %v1115_v62  ;;  %v1127_v3 = vadd.f32 0.014752088, %v1126_v1  ;;  %v1156_v20 = vadd.f32 0.0036580483, %v1155_v55  ;;  %2753 = vmatpush.msrb.mxu1 %v2536_v19  ;;  %v4365_v1 = vadd.f32 %v1023_v0, %v4262_v31 }
 0x237   : > { %v1167_v11 = vadd.f32 0.014752088, %v1166_v61  ;;  %v4322_v18 = vmin.f32 %v1191_v2, 16.0  ;;  %v940_v17 = vpop.f32.mrf.mxu0  ;;  %v4327_v21 = vmin.f32 %v1231_v38, 16.0  ;;  %v1005_v57 = vpop.f32.mrf.mxu1  ;;  %v1751_v38 = vmul.f32 %v4360_v14, %v4360_v14 }
 0x238   : > { %v1128_v8 = vmul.f32 %v1127_v3, %v4290_v7  ;;  %v4332_v54 = vadd.f32 %v940_v17, %v4260_v12  ;;  %v1117_v58 = vmul.f32 %v1116_v4, %v4290_v7  ;;  %v1157_v24 = vmul.f32 %v1156_v20, %v4292_v53  ;;  %v2534_v17 = vld [vmem:[%s3810_s16 + $0x178] sm:$0xff] }
 0x239   : > { %v1168_v5 = vmul.f32 %v1167_v11, %v4292_v53  ;;  %v1193_v25 = vmul.f32 2.1237322e-06, %v4322_v18  ;;  %v1233_v23 = vmul.f32 2.1237322e-06, %v4327_v21  ;;  %v4371_v6 = vadd.f32 %v1005_v57, %v4262_v31  ;;  %v2502_v11 = vld [vmem:[%s3810_s16 + $0x78] sm:$0xff]  ;;  %2754 = vmatpush.msrb.mxu1 %v2534_v17 }
 0x23a   : > { %v1129_v16 = vadd.f32 0.112945676, %v1128_v8  ;;  %v4344_v41 = vmul.f32 0.70710677, %v4332_v54  ;;  %v1118_v40 = vadd.f32 0.05243302, %v1117_v58  ;;  %2689 = vmatpush.msrb.mxu0 %v2502_v11 }
 0x23b   : > { %v1169_v32 = vadd.f32 0.112945676, %v1168_v5  ;;  %v1194_v15 = vadd.f32 0.00028619796, %v1193_v25  ;;  %v1234_v22 = vadd.f32 0.00028619796, %v1233_v23 }
 0x23c   : > { %v1130_v9 = vmul.f32 %v1129_v16, %v4290_v7  ;;  %v1271_v50 = vmul.f32 %v4344_v41, %v4344_v41  ;;  %v1158_v30 = vadd.f32 0.05243302, %v1157_v24  ;;  %v1119_v55 = vmul.f32 %v1118_v40, %v4290_v7  ;;  %v2499_v16 = vld [vmem:[%s3810_s16 + $0x60] sm:$0xff]  ;;  %v2497_v58 = vld [vmem:[%s3810_s16 + $0x50] sm:$0xff]  ;;  %v2500_v24 = vld [vmem:[%s3810_s16 + $0x68] sm:$0xff] }
 0x23d   : > { %v1170_v29 = vmul.f32 %v1169_v32, %v4292_v53  ;;  %v1195_v45 = vmul.f32 %v1194_v15, %v4322_v18  ;;  %v1235_v63 = vmul.f32 %v1234_v22, %v4327_v21  ;;  %v4381_v10 = vmul.f32 0.70710677, %v4365_v1  ;;  %2560 = vmatpush.msrb.mxu2 %v2499_v16  ;;  %v2532_v15 = vld [vmem:[%s3810_s16 + $0x168] sm:$0xff]  ;;  %2690 = vmatpush.msrb.mxu0 %v2500_v24  ;;  %v2498_v11 = vld [vmem:[%s3810_s16 + $0x58] sm:$0xff] }
 0x23e   : > { %v1131_v44 = vadd.f32 0.4994258, %v1130_v9  ;;  %v4357_v48 = vmin.f32 %v1271_v50, 16.0  ;;  %v1159_v2 = vmul.f32 %v1158_v30, %v4292_v53  ;;  %v1120_v39 = vadd.f32 0.18741608, %v1119_v55  ;;  %v2529_v9 = vld [vmem:[%s3810_s16 + $0x150] sm:$0xff]  ;;  %2755 = vmatpush.msrb.mxu1 %v2532_v15 }
 0x23f   : > { %v1171_v47 = vadd.f32 0.4994258, %v1170_v29  ;;  %v1196_v51 = vadd.f32 0.0036580483, %v1195_v45  ;;  %v1236_v3 = vadd.f32 0.0036580483, %v1235_v63  ;;  %v1791_v23 = vmul.f32 %v4381_v10, %v4381_v10  ;;  %2561 = vmatpush.msrb.mxu2 %v2497_v58  ;;  %2626 = vmatpush.msrb.mxu3 %v2529_v9 }
 0x240   : > { %v1132_v56 = vmul.f32 %v1131_v44, %v4290_v7  ;;  %v1273_v61 = vmul.f32 2.1237322e-06, %v4357_v48  ;;  %v1160_v20 = vadd.f32 0.18741608, %v1159_v2  ;;  %v4384_v5 = vmul.f32 0.70710677, %v4371_v6  ;;  %v943_v44 = vpop.f32.mrf.mxu0  ;;  %2691 = vmatpush.msrb.mxu0 %v2498_v11 }
 0x241   : > { %v1172_v42 = vmul.f32 %v1171_v47, %v4292_v53  ;;  %v1197_v25 = vmul.f32 %v1196_v51, %v4322_v18  ;;  %v1237_v26 = vmul.f32 %v1236_v3, %v4327_v21  ;;  %v4389_v27 = vmin.f32 %v1751_v38, 16.0  ;;  %v1008_v3 = vpop.f32.mrf.mxu1  ;;  %v2495_v58 = vld [vmem:[%s3810_s16 + $0x40] sm:$0xff] }
 0x242   : > { %v4362_v62 = vadd.f32 1.0, %v1132_v56  ;;  %v1274_v8 = vadd.f32 0.00028619796, %v1273_v61  ;;  %v1311_v32 = vmul.f32 %v4384_v5, %v4384_v5  ;;  %v1121_v35 = vmul.f32 %v1120_v39, %v4290_v7  ;;  %v961_v56 = vpop.f32.mrf.mxu2  ;;  %2562 = vmatpush.msrb.mxu2 %v2495_v58 }
 0x243   : > { %v4374_v4 = vadd.f32 1.0, %v1172_v42  ;;  %5850 = vst [vmem:[#allocation20_spill] sm:$0xff] %v4389_v27  ;;  %v1753_v22 = vmul.f32 2.1237322e-06, %v4389_v27  ;;  %v4407_v40 = vmul.f32 0.5, %v4269_v28  ;;  %v4410_v47 = vmul.f32 0.5, %v4272_v34  ;;  %v1026_v28 = vpop.f32.mrf.mxu3 }
 0x244   : > { %3310 = vrcp.f32 %v4362_v62  ;;  %v1275_v29 = vmul.f32 %v1274_v8, %v4357_v48  ;;  %v4413_v50 = vmul.f32 0.5, %v4300_v46  ;;  %v4415_v0 = vmin.f32 %v1311_v32, 16.0  ;;  %v2527_v32 = vld [vmem:[%s3810_s16 + $0x140] sm:$0xff] }
 0x245   : > { %3312 = vrcp.f32 %v4374_v4  ;;  %v1161_v7 = vmul.f32 %v1160_v20, %v4292_v53  ;;  %v1198_v30 = vadd.f32 0.05243302, %v1197_v25  ;;  %v4419_v45 = vmul.f32 0.5, %v4304_v59  ;;  %2627 = vmatpush.msrb.mxu3 %v2527_v32 }
 0x246   : > { %5851 = vst [vmem:[#allocation21_spill] sm:$0xff] %v4413_v50  ;;  %v1238_v49 = vadd.f32 0.05243302, %v1237_v26  ;;  %v1313_v46 = vmul.f32 2.1237322e-06, %v4415_v0  ;;  %v4424_v19 = vmin.f32 %v1791_v23, 16.0  ;;  %v4427_v42 = vadd.f32 %v943_v44, %v4260_v12 }
 0x247   : > { %5852 = vst [vmem:[#allocation22_spill] sm:$0xff] %v4419_v45  ;;  %v1122_v53 = vadd.f32 1.1283791, %v1121_v35  ;;  %v1276_v57 = vadd.f32 0.0036580483, %v1275_v29  ;;  %v4432_v55 = vadd.f32 %v961_v56, %v4260_v12  ;;  %v4435_v61 = vmul.f32 0.5, %v4332_v54 }
 0x248   : > { %5853 = vst [vmem:[#allocation23_spill] sm:$0xff] %v4424_v19  ;;  %v1754_v59 = vadd.f32 0.00028619796, %v1753_v22  ;;  %v1314_v2 = vadd.f32 0.00028619796, %v1313_v46  ;;  %v4439_v38 = vadd.f32 %v1026_v28, %v4262_v31  ;;  %v1199_v39 = vmul.f32 %v1198_v30, %v4322_v18  ;;  %v2530_v54 = vld [vmem:[%s3810_s16 + $0x158] sm:$0xff] }
 0x249   : > { %5854 = vst [vmem:[#allocation24_spill] sm:$0xff] %v4435_v61  ;;  %v1793_v51 = vmul.f32 2.1237322e-06, %v4424_v19  ;;  %v1162_v17 = vadd.f32 1.1283791, %v1161_v7  ;;  %v4444_v8 = vmul.f32 0.5, %v4371_v6  ;;  %v1239_v16 = vmul.f32 %v1238_v49, %v4327_v21  ;;  %2756 = vmatpush.msrb.mxu1 %v2530_v54 }
 0x24a   : > { %v4401_v33 = vpop.eup %3310  ;;  %v4447_v20 = vmul.f32 0.5, %v4347_v43  ;;  %v4454_v13 = vmul.f32 0.70710677, %v4427_v42  ;;  %v1143_v6 = vand.u32 2147483647, %v4362_v62  ;;  %v1277_v43 = vmul.f32 %v1276_v57, %v4357_v48  ;;  %v2493_v22 = vld [vmem:[%s3810_s16 + $0x30] sm:$0xff] }
 0x24b   : > { %v1135_v34 = vmul.f32 %v4401_v33, %v4362_v62  ;;  %v4429_v63 = vpop.eup %3312  ;;  %5855 = vst [vmem:[#allocation25_spill] sm:$0xff] %v4444_v8  ;;  %v1755_v23 = vmul.f32 %v1754_v59, %v4389_v27  ;;  %v4462_v9 = vadd.f32 %v1008_v3, %v4262_v31  ;;  %v4465_v24 = vmul.f32 %v1122_v53, %v4277_v36  ;;  %v2525_v44 = vld [vmem:[%s3810_s16 + $0x130] sm:$0xff]  ;;  %v2524_v8 = vld [vmem:[%s3810_s16 + $0x128] sm:$0xff] }
 0x24c   : > { %5856 = vst [vmem:[#allocation26_spill] sm:$0xff] %v4447_v20  ;;  %v1175_v26 = vmul.f32 %v4429_v63, %v4374_v4  ;;  %v1145_v15 = vand.u32 2147483648, %v4362_v62  ;;  %v1315_v35 = vmul.f32 %v1314_v2, %v4415_v0  ;;  %v1794_v29 = vadd.f32 0.00028619796, %v1793_v51  ;;  %2563 = vmatpush.msrb.mxu2 %v2493_v22  ;;  %2628 = vmatpush.msrb.mxu3 %v2525_v44 }
 0x24d   : > { %v1136_v25 = vsub.f32 1.0, %v1135_v34  ;;  %vm1139_vm1 = vweird.f32 %v4362_v62  ;;  %v1183_v56 = vand.u32 2147483647, %v4374_v4  ;;  %v1185_v7 = vand.u32 2147483648, %v4374_v4 }
 0x24e   : > { %v1200_v30 = vadd.f32 0.18741608, %v1199_v39  ;;  %v1176_v36 = vsub.f32 1.0, %v1175_v26  ;;  %v1240_v28 = vadd.f32 0.18741608, %v1239_v16  ;;  %v1351_v34 = vmul.f32 %v4454_v13, %v4454_v13  ;;  %v2489_v16 = vld [vmem:[%s3810_s16 + $0x10] sm:$0xff] }
 0x24f   : > { %v1137_v49 = vmul.f32 %v4401_v33, %v1136_v25  ;;  %v4478_v46 = vmul.f32 %v1162_v17, %v4280_v37  ;;  %v1278_v53 = vadd.f32 0.05243302, %v1277_v43  ;;  %v1756_v57 = vadd.f32 0.0036580483, %v1755_v23  ;;  %v2496_v17 = vld [vmem:[%s3810_s16 + $0x48] sm:$0xff]  ;;  %v946_v23 = vpop.f32.mrf.mxu0 }
 0x250   : > { %v4481_v59 = vmul.f32 0.70710677, %v4462_v9  ;;  %v1146_v2 = vor.u32 1.1754944e-38, %v1145_v15  ;;  %v1316_v51 = vadd.f32 0.0036580483, %v1315_v35  ;;  %v1795_v3 = vmul.f32 %v1794_v29, %v4424_v19  ;;  %v2528_v25 = vld [vmem:[%s3810_s16 + $0x148] sm:$0xff]  ;;  %2692 = vmatpush.msrb.mxu0 %v2496_v17 }
 0x251   : > { %v4484_v11 = vmin.f32 %v1351_v34, 16.0  ;;  %vm1140_vm2 = vweird.f32 %v4401_v33  ;;  %v1201_v39 = vmul.f32 %v1200_v30, %v4322_v18  ;;  %v4491_v37 = vmul.f32 0.70710677, %v4432_v55  ;;  %2757 = vmatpush.msrb.mxu1 %v2528_v25 }
 0x252   : > { %v1391_v54 = vmul.f32 %v4481_v59, %v4481_v59  ;;  %v1138_v26 = vadd.f32 %v4401_v33, %v1137_v49  ;;  %vm4496_vm3 = vcmp.eq.f32.partialorder %v1143_v6, 8.507059e+37  ;;  %v1177_v58 = vmul.f32 %v4429_v63, %v1176_v36  ;;  %vm4525_vm4 = vmor %vm1139_vm1, %vm1140_vm2 }
 0x253   : > { %5857 = vst [vmem:[#allocation27_spill] sm:$0xff] %v4484_v11  ;;  %v1241_v32 = vmul.f32 %v1240_v28, %v4327_v21  ;;  %v1353_v43 = vmul.f32 2.1237322e-06, %v4484_v11  ;;  %v1279_v15 = vmul.f32 %v1278_v53, %v4357_v48  ;;  %v1757_v35 = vmul.f32 %v1756_v57, %v4389_v27  ;;  %v1011_v57 = vpop.f32.mrf.mxu1 }
 0x254   : > { %v4505_v29 = vmin.f32 %v1391_v54, 16.0  ;;  %v4508_v6 = vmul.f32 0.70710677, %v4439_v38  ;;  %v4510_v22 = vor.u32 1.1754944e-38, %v1185_v7  ;;  %v1317_v44 = vmul.f32 %v1316_v51, %v4415_v0 }
 0x255   : > { %v1796_v30 = vadd.f32 0.0036580483, %v1795_v3  ;;  %v1831_v49 = vmul.f32 %v4491_v37, %v4491_v37  ;;  %v1354_v36 = vadd.f32 0.00028619796, %v1353_v43  ;;  %v4519_v53 = vadd.f32 %v946_v23, %v4260_v12  ;;  %v2494_v23 = vld [vmem:[%s3810_s16 + $0x38] sm:$0xff] }
 0x256   : > { %5860 = vst [vmem:[#allocation28_spill] sm:$0xff] %v4505_v29  ;;  %v1393_v28 = vmul.f32 2.1237322e-06, %v4505_v29  ;;  %v1871_v34 = vmul.f32 %v4508_v6, %v4508_v6  ;;  %vm1180_vm5 = vweird.f32 %v4429_v63  ;;  %v1202_v51 = vadd.f32 1.1283791, %v1201_v39  ;;  %2693 = vmatpush.msrb.mxu0 %v2494_v23  ;;  %v2521_v23 = vld [vmem:[%s3810_s16 + $0x110] sm:$0xff] }
 0x257   : > { %v1242_v3 = vadd.f32 1.1283791, %v1241_v32  ;;  %v4531_v54 = vmul.f32 0.5, %v4365_v1  ;;  %v1142_v17 = vsel %vm4525_vm4, %v4401_v33, %v1138_v26  ;;  %v4537_v25 = vadd.f32 %v4429_v63, %v1177_v58 }
 0x258   : > { %v1280_v43 = vadd.f32 0.18741608, %v1279_v15  ;;  %v1758_v62 = vadd.f32 0.05243302, %v1757_v35  ;;  %vm4540_vm6 = vcmp.eq.f32.partialorder %v1183_v56, 8.507059e+37  ;;  %v1797_v1 = vmul.f32 %v1796_v30, %v4424_v19  ;;  %v964_v35 = vpop.f32.mrf.mxu2 }
 0x259   : > { %5863 = vst [vmem:[#allocation29_spill] sm:$0xff] %v4531_v54  ;;  %v1318_v39 = vadd.f32 0.05243302, %v1317_v44  ;;  %v4545_v32 = vmin.f32 %v1831_v49, 16.0  ;;  %v4548_v33 = vadd.f32 %v1011_v57, %v4262_v31  ;;  %v1355_v26 = vmul.f32 %v1354_v36, %v4484_v11  ;;  %v2491_v36 = vld [vmem:[%s3810_s16 + $0x20] sm:$0xff] }
 0x25a   : > { %v1394_v58 = vadd.f32 0.00028619796, %v1393_v28  ;;  %v4551_v15 = vmin.f32 %v1871_v34, 16.0  ;;  %v4554_v56 = vmul.f32 0.70710677, %v4519_v53  ;;  %vm1179_vm7 = vweird.f32 %v4374_v4  ;;  %v2523_v28 = vld [vmem:[%s3810_s16 + $0x120] sm:$0xff]  ;;  %2564 = vmatpush.msrb.mxu2 %v2491_v36 }
 0x25b   : > { %5866 = vst [vmem:[#allocation30_spill] sm:$0xff] %v4545_v32  ;;  %v4558_v44 = vmul.f32 %v1202_v51, %v4307_v60  ;;  %v4561_v30 = vmul.f32 0.5, %v4427_v42  ;;  %v1833_v49 = vmul.f32 2.1237322e-06, %v4545_v32  ;;  %v2526_v34 = vld [vmem:[%s3810_s16 + $0x138] sm:$0xff]  ;;  %v1147_v57 = vsel %vm4496_vm3, %v1146_v2, %v1142_v17  ;;  %vm4571_vm8 = vmor %vm1179_vm7, %vm1180_vm5  ;;  %v1029_v51 = vpop.f32.mrf.mxu3  ;;  %2629 = vmatpush.msrb.mxu3 %v2523_v28 }
 0x25c   : > { %5867 = vst [vmem:[#allocation31_spill] sm:$0xff] %v4551_v15  ;;  %v1759_v60 = vmul.f32 %v1758_v62, %v4389_v27  ;;  %v1873_v42 = vmul.f32 2.1237322e-06, %v4551_v15  ;;  %v1431_v7 = vmul.f32 %v4554_v56, %v4554_v56  ;;  %v1182_v2 = vsel %vm4571_vm8, %v4429_v63, %v4537_v25  ;;  %2758 = vmatpush.msrb.mxu1 %v2526_v34 }
 0x25d   : > { %5868 = vst [vmem:[#allocation32_spill] sm:$0xff] %v4558_v44  ;;  %v1798_v17 = vadd.f32 0.05243302, %v1797_v1  ;;  %v4586_v54 = vmul.f32 0.70710677, %v4548_v33  ;;  %v4589_v62 = vadd.f32 %v964_v35, %v4260_v12  ;;  %v1319_v36 = vmul.f32 %v1318_v39, %v4415_v0  ;;  %2565 = vmatpush.msrb.mxu2 %v2489_v16  ;;  %2630 = vmatpush.msrb.mxu3 %v2521_v23 }
 0x25e   : > { %5869 = vst [vmem:[#allocation33_spill] sm:$0xff] %v4561_v30  ;;  %v2492_v30 = vld [vmem:[%s3810_s16 + $0x28] sm:$0xff]  ;;  %v1356_v28 = vadd.f32 0.0036580483, %v1355_v26  ;;  %v1395_v61 = vmul.f32 %v1394_v58, %v4505_v29  ;;  %v4595_v45 = vmin.f32 %v1431_v7, 16.0  ;;  %v4603_v35 = vadd.f32 %v1029_v51, %v4262_v31  ;;  %2759 = vmatpush.msrb.mxu1 %v2524_v8  ;;  %v2522_v8 = vld [vmem:[%s3810_s16 + $0x118] sm:$0xff] }
 0x25f   : > { %v1834_v63 = vadd.f32 0.00028619796, %v1833_v49  ;;  %v1471_v25 = vmul.f32 %v4586_v54, %v4586_v54  ;;  %v4600_v1 = vmul.f32 0.70710677, %v4589_v62  ;;  %2694 = vmatpush.msrb.mxu0 %v2492_v30  ;;  %v4606_v39 = vmul.f32 %v1242_v3, %v4313_v52  ;;  %v2490_v30 = vld [vmem:[%s3810_s16 + $0x18] sm:$0xff] }
 0x260   : > { %v1760_v26 = vadd.f32 0.18741608, %v1759_v60  ;;  %v1874_v58 = vadd.f32 0.00028619796, %v1873_v42  ;;  %v1433_v34 = vmul.f32 2.1237322e-06, %v4595_v45  ;;  %v4610_v49 = vmul.f32 %v1147_v57, %v4465_v24  ;;  %2760 = vmatpush.msrb.mxu1 %v2522_v8  ;;  %v949_v8 = vpop.f32.mrf.mxu0 }
 0x261   : > { %5872 = vst [vmem:[#allocation34_spill] sm:$0xff] %v4606_v39  ;;  %v1799_v4 = vmul.f32 %v1798_v17, %v4424_v19  ;;  %v4613_v7 = vmin.f32 %v1471_v25, 16.0  ;;  %v1911_v51 = vmul.f32 %v4600_v1, %v4600_v1  ;;  %v1187_v52 = vsel %vm4540_vm6, %v4510_v22, %v1182_v2  ;;  %2695 = vmatpush.msrb.mxu0 %v2490_v30  ;;  %v2487_v17 = vld [vmem:[%s3810_s16] sm:$0xff] }
 0x262   : > { %v1281_v3 = vmul.f32 %v1280_v43, %v4357_v48  ;;  %v1320_v24 = vadd.f32 0.18741608, %v1319_v36  ;;  %v1396_v57 = vadd.f32 0.0036580483, %v1395_v61  ;;  %v1357_v60 = vmul.f32 %v1356_v28, %v4484_v11  ;;  %2566 = vmatpush.msrb.mxu2 %v2487_v17  ;;  %v2519_v61 = vld [vmem:[%s3810_s16 + $0x100] sm:$0xff]  ;;  %v2488_v36 = vld [vmem:[%s3810_s16 + $0x8] sm:$0xff] }
 0x263   : > { %v1835_v42 = vmul.f32 %v1834_v63, %v4545_v32  ;;  %v1473_v16 = vmul.f32 2.1237322e-06, %v4613_v7  ;;  %v4627_v23 = vmul.f32 0.70710677, %v4603_v35  ;;  %v1761_v20 = vmul.f32 %v1760_v26, %v4389_v27  ;;  %2631 = vmatpush.msrb.mxu3 %v2519_v61  ;;  %2696 = vmatpush.msrb.mxu0 %v2488_v36  ;;  %v2520_v17 = vld [vmem:[%s3810_s16 + $0x108] sm:$0xff] }
 0x264   : > { %v1875_v22 = vmul.f32 %v1874_v58, %v4551_v15  ;;  %v1434_v43 = vadd.f32 0.00028619796, %v1433_v34  ;;  %v4632_v2 = vmin.f32 %v1911_v51, 16.0  ;;  %v4637_v28 = vmul.f32 %v1187_v52, %v4478_v46  ;;  %2761 = vmatpush.msrb.mxu1 %v2520_v17  ;;  %v967_v17 = vpop.f32.mrf.mxu2 }
 0x265   : > { %v1800_v63 = vadd.f32 0.18741608, %v1799_v4  ;;  %v1474_v25 = vadd.f32 0.00028619796, %v1473_v16  ;;  %v1951_v30 = vmul.f32 %v4627_v23, %v4627_v23  ;;  %v1282_v26 = vadd.f32 1.1283791, %v1281_v3 }
 0x266   : > { %5873 = vst [vmem:[#allocation35_spill] sm:$0xff] %v4632_v2  ;;  %v1321_v58 = vmul.f32 %v1320_v24, %v4415_v0  ;;  %v4643_v34 = vmul.f32 0.5, %v4462_v9  ;;  %v1913_v51 = vmul.f32 2.1237322e-06, %v4632_v2  ;;  %v1358_v27 = vadd.f32 0.05243302, %v1357_v60 }
 0x267   : > { %v1397_v46 = vmul.f32 %v1396_v57, %v4505_v29  ;;  %v1836_v4 = vadd.f32 0.0036580483, %v1835_v42  ;;  %v4648_v52 = vmin.f32 %v1951_v30, 16.0  ;;  %v1762_v16 = vadd.f32 1.1283791, %v1761_v20 }
 0x268   : > { %5874 = vst [vmem:[#allocation36_spill] sm:$0xff] %v4643_v34  ;;  %v4651_v61 = vmul.f32 0.5, %v4432_v55  ;;  %v1876_v3 = vadd.f32 0.0036580483, %v1875_v22  ;;  %v1435_v24 = vmul.f32 %v1434_v43, %v4595_v45  ;;  %v1801_v9 = vmul.f32 %v1800_v63, %v4424_v19  ;;  %v1014_v22 = vpop.f32.mrf.mxu1 }
 0x269   : > { %5875 = vst [vmem:[#allocation37_spill] sm:$0xff] %v4648_v52  ;;  %v1475_v36 = vmul.f32 %v1474_v25, %v4613_v7  ;;  %v1953_v34 = vmul.f32 2.1237322e-06, %v4648_v52  ;;  %v4658_v60 = vadd.f32 %v949_v8, %v4260_v12  ;;  %v4661_v57 = vmul.f32 %v1282_v26, %v4344_v41 }
 0x26a   : > { %5876 = vst [vmem:[#allocation38_spill] sm:$0xff] %v4651_v61  ;;  %v1322_v42 = vadd.f32 1.1283791, %v1321_v58  ;;  %v4664_v20 = vmul.f32 0.5, %v4439_v38  ;;  %v1914_v55 = vadd.f32 0.00028619796, %v1913_v51  ;;  %v1359_v43 = vmul.f32 %v1358_v27, %v4484_v11 }
 0x26b   : > { %5877 = vst [vmem:[#allocation39_spill] sm:$0xff] %v4661_v57  ;;  %v1398_v30 = vadd.f32 0.05243302, %v1397_v46  ;;  %v1837_v63 = vmul.f32 %v1836_v4, %v4545_v32  ;;  %v1954_v25 = vadd.f32 0.00028619796, %v1953_v34  ;;  %v1877_v61 = vmul.f32 %v1876_v3, %v4551_v15 }
 0x26c   : > { %5878 = vst [vmem:[#allocation40_spill] sm:$0xff] %v4664_v20  ;;  %v4670_v8 = vmul.f32 0.5, %v4519_v53  ;;  %v1436_v41 = vadd.f32 0.0036580483, %v1435_v24  ;;  %v4673_v26 = vmul.f32 0.70710677, %v4658_v60  ;;  %v4676_v38 = vmul.f32 %v1762_v16, %v4360_v14 }
 0x26d   : > { %v1802_v58 = vadd.f32 1.1283791, %v1801_v9  ;;  %v1476_v51 = vadd.f32 0.0036580483, %v1475_v36  ;;  %v4679_v27 = vadd.f32 %v1014_v22, %v4262_v31  ;;  %v4682_v34 = vmul.f32 %v1322_v42, %v4384_v5  ;;  %v1032_v9 = vpop.f32.mrf.mxu3 }
 0x26e   : > { %5879 = vst [vmem:[#allocation41_spill] sm:$0xff] %v4670_v8  ;;  %v1915_v46 = vmul.f32 %v1914_v55, %v4632_v2  ;;  %v1511_v53 = vmul.f32 %v4673_v26, %v4673_v26  ;;  %v4688_v4 = vadd.f32 %v967_v17, %v4260_v12  ;;  %v1360_v3 = vadd.f32 0.18741608, %v1359_v43 }
 0x26f   : > { %5880 = vst [vmem:[#allocation42_spill] sm:$0xff] %v4676_v38  ;;  %v1399_v14 = vmul.f32 %v1398_v30, %v4505_v29  ;;  %v1838_v16 = vadd.f32 0.05243302, %v1837_v63  ;;  %v1955_v24 = vmul.f32 %v1954_v25, %v4648_v52  ;;  %v1878_v36 = vadd.f32 0.05243302, %v1877_v61 }
 0x270   : > { %5881 = vst [vmem:[#allocation43_spill] sm:$0xff] %v4682_v34  ;;  %v1437_v22 = vmul.f32 %v1436_v41, %v4595_v45  ;;  %v4693_v5 = vmin.f32 %v1511_v53, 16.0  ;;  %v4696_v42 = vmul.f32 0.70710677, %v4679_v27  ;;  %v4699_v55 = vmul.f32 %v1802_v58, %v4381_v10  ;;  %v970_v34 = vpop.f32.mrf.mxu2 }
 0x271   : > { %v4702_v17 = vmul.f32 0.5, %v4548_v33  ;;  %v1477_v43 = vmul.f32 %v1476_v51, %v4613_v7  ;;  %v4706_v30 = vmul.f32 0.70710677, %v4688_v4  ;;  %v1916_v63 = vadd.f32 0.0036580483, %v1915_v46  ;;  %v952_v51 = vpop.f32.mrf.mxu0 }
 0x272   : > { %5882 = vst [vmem:[#allocation44_spill] sm:$0xff] %v4699_v55  ;;  %v1513_v61 = vmul.f32 2.1237322e-06, %v4693_v5  ;;  %v1551_v25 = vmul.f32 %v4696_v42, %v4696_v42  ;;  %v4712_v41 = vadd.f32 %v1032_v9, %v4262_v31  ;;  %v1361_v10 = vmul.f32 %v1360_v3, %v4484_v11 }
 0x273   : > { %5883 = vst [vmem:[#allocation45_spill] sm:$0xff] %v4702_v17  ;;  %v1400_v58 = vadd.f32 0.18741608, %v1399_v14  ;;  %v1956_v53 = vadd.f32 0.0036580483, %v1955_v24  ;;  %v1991_v33 = vmul.f32 %v4706_v30, %v4706_v30  ;;  %v1839_v20 = vmul.f32 %v1838_v16, %v4545_v32 }
 0x274   : > { %v1879_v46 = vmul.f32 %v1878_v36, %v4551_v15  ;;  %v1438_v55 = vadd.f32 0.05243302, %v1437_v22  ;;  %v4719_v38 = vmin.f32 %v1551_v25, 16.0  ;;  %v1478_v19 = vadd.f32 0.05243302, %v1477_v43 }
 0x275   : > { %v4722_v17 = vmul.f32 0.5, %v4589_v62  ;;  %v1514_v9 = vadd.f32 0.00028619796, %v1513_v61  ;;  %v4724_v8 = vmin.f32 %v1991_v33, 16.0  ;;  %v1917_v3 = vmul.f32 %v1916_v63, %v4632_v2  ;;  %v1017_v61 = vpop.f32.mrf.mxu1 }
 0x276   : > { %v1553_v14 = vmul.f32 2.1237322e-06, %v4719_v38  ;;  %v4729_v24 = vmul.f32 0.70710677, %v4712_v41  ;;  %v4732_v16 = vadd.f32 %v952_v51, %v4260_v12  ;;  %v1362_v36 = vadd.f32 1.1283791, %v1361_v10 }
 0x277   : > { %5884 = vst [vmem:[#allocation46_spill] sm:$0xff] %v4722_v17  ;;  %v1401_v22 = vmul.f32 %v1400_v58, %v4505_v29  ;;  %v1957_v43 = vmul.f32 %v1956_v53, %v4648_v52  ;;  %v1993_v62 = vmul.f32 2.1237322e-06, %v4724_v8  ;;  %v1840_v25 = vadd.f32 0.18741608, %v1839_v20 }
 0x278   : > { %5885 = vst [vmem:[#allocation47_spill] sm:$0xff] %v4724_v8  ;;  %v1880_v33 = vadd.f32 0.18741608, %v1879_v46  ;;  %v1439_v63 = vmul.f32 %v1438_v55, %v4595_v45  ;;  %v1554_v17 = vadd.f32 0.00028619796, %v1553_v14  ;;  %v1515_v57 = vmul.f32 %v1514_v9, %v4693_v5 }
 0x279   : > { %v1994_v50 = vadd.f32 0.00028619796, %v1993_v62  ;;  %v2031_v51 = vmul.f32 %v4729_v24, %v4729_v24  ;;  %v4742_v10 = vmul.f32 0.70710677, %v4732_v16  ;;  %v1479_v58 = vmul.f32 %v1478_v19, %v4613_v7 }
 0x27a   : > { %v1918_v53 = vadd.f32 0.05243302, %v1917_v3  ;;  %v1555_v29 = vmul.f32 %v1554_v17, %v4719_v38  ;;  %v4747_v20 = vadd.f32 %v1017_v61, %v4262_v31  ;;  %v4750_v55 = vmul.f32 0.5, %v4603_v35 }
 0x27b   : > { %v1958_v46 = vadd.f32 0.05243302, %v1957_v43  ;;  %v1995_v9 = vmul.f32 %v1994_v50, %v4724_v8  ;;  %v4754_v14 = vadd.f32 %v970_v34, %v4260_v12  ;;  %v1402_v62 = vadd.f32 1.1283791, %v1401_v22 }
 0x27c   : > { %5886 = vst [vmem:[#allocation48_spill] sm:$0xff] %v4750_v55  ;;  %v1841_v39 = vmul.f32 %v1840_v25, %v4545_v32  ;;  %v1881_v19 = vmul.f32 %v1880_v33, %v4551_v15  ;;  %v1440_v3 = vadd.f32 0.18741608, %v1439_v63  ;;  %v1516_v44 = vadd.f32 0.0036580483, %v1515_v57 }
 0x27d   : > { %v1556_v17 = vadd.f32 0.0036580483, %v1555_v29  ;;  %v4758_v11 = vmin.f32 %v2031_v51, 16.0  ;;  %v1591_v35 = vmul.f32 %v4742_v10, %v4742_v10  ;;  %v4763_v43 = vmul.f32 %v1362_v36, %v4454_v13  ;;  %v1035_v51 = vpop.f32.mrf.mxu3 }
 0x27e   : > { %v1480_v50 = vadd.f32 0.18741608, %v1479_v58  ;;  %v1919_v34 = vmul.f32 %v1918_v53, %v4632_v2  ;;  %v4767_v22 = vmul.f32 0.70710677, %v4747_v20  ;;  %v1959_v61 = vmul.f32 %v1958_v46, %v4648_v52 }
 0x27f   : > { %v1996_v25 = vadd.f32 0.0036580483, %v1995_v9  ;;  %v2033_v57 = vmul.f32 2.1237322e-06, %v4758_v11  ;;  %v4772_v29 = vmul.f32 0.70710677, %v4754_v14  ;;  %v4775_v33 = vmul.f32 %v1402_v62, %v4481_v59 }
 0x280   : > { %v1842_v63 = vadd.f32 1.1283791, %v1841_v39  ;;  %v1441_v13 = vmul.f32 %v1440_v3, %v4595_v45  ;;  %v1631_v36 = vmul.f32 %v4767_v22, %v4767_v22  ;;  %v1882_v58 = vadd.f32 1.1283791, %v1881_v19 }
 0x281   : > { %v1517_v53 = vmul.f32 %v1516_v44, %v4693_v5  ;;  %v1557_v46 = vmul.f32 %v1556_v17, %v4719_v38  ;;  %v4782_v9 = vmin.f32 %v1591_v35, 16.0  ;;  %v1481_v55 = vmul.f32 %v1480_v50, %v4613_v7 }
 0x282   : > { %v1920_v15 = vadd.f32 0.18741608, %v1919_v34  ;;  %v4785_v32 = vmin.f32 %v1631_v36, 16.0  ;;  %v2071_v59 = vmul.f32 %v4772_v29, %v4772_v29  ;;  %v1960_v39 = vadd.f32 0.18741608, %v1959_v61 }
 0x283   : > { %v1997_v62 = vmul.f32 %v1996_v25, %v4724_v8  ;;  %v2034_v3 = vadd.f32 0.00028619796, %v2033_v57  ;;  %v4791_v19 = vadd.f32 %v1035_v51, %v4262_v31  ;;  %v4794_v44 = vmul.f32 %v1842_v63, %v4491_v37 }
 0x284   : > { %v1442_v17 = vadd.f32 1.1283791, %v1441_v13  ;;  %v4797_v35 = vmul.f32 0.5, %v4658_v60  ;;  %v4800_v50 = vmul.f32 0.5, %v4679_v27  ;;  %v4803_v34 = vmul.f32 %v1882_v58, %v4508_v6 }
 0x285   : > { %5887 = vst [vmem:[#allocation49_spill] sm:$0xff] %v4794_v44  ;;  %v1518_v61 = vadd.f32 0.05243302, %v1517_v53  ;;  %v1558_v36 = vadd.f32 0.05243302, %v1557_v46  ;;  %v1921_v51 = vmul.f32 %v1920_v15, %v4632_v2  ;;  %v4808_v63 = vmin.f32 %v2071_v59, 16.0 }
 0x286   : > { %5888 = vst [vmem:[#allocation50_spill] sm:$0xff] %v4797_v35  ;;  %v1593_v25 = vmul.f32 2.1237322e-06, %v4782_v9  ;;  %v1482_v57 = vadd.f32 1.1283791, %v1481_v55  ;;  %v1961_v60 = vmul.f32 %v1960_v39, %v4648_v52  ;;  %v2035_v27 = vmul.f32 %v2034_v3, %v4758_v11 }
 0x287   : > { %5889 = vst [vmem:[#allocation51_spill] sm:$0xff] %v4800_v50  ;;  %v1633_v37 = vmul.f32 2.1237322e-06, %v4785_v32  ;;  %v1998_v13 = vadd.f32 0.05243302, %v1997_v62  ;;  %v4816_v6 = vmul.f32 %v1442_v17, %v4554_v56  ;;  %v4819_v58 = vmul.f32 0.5, %v4688_v4  ;;  %v955_v4 = vpop.f32.mrf.mxu0 }
 0x288   : > { %5890 = vst [vmem:[#allocation52_spill] sm:$0xff] %v4803_v34  ;;  %v4813_v44 = vmul.f32 0.70710677, %v4791_v19  ;;  %v2073_v15 = vmul.f32 2.1237322e-06, %v4808_v63  ;;  %v3101_v55 = vclamps-f32 %v4610_v49, 1.0  ;;  %v1519_v53 = vmul.f32 %v1518_v61, %v4693_v5  ;;  %v1020_v61 = vpop.f32.mrf.mxu1 }
 0x289   : > { %5891 = vst [vmem:[#allocation53_spill] sm:$0xff] %v4816_v6  ;;  %v1559_v46 = vmul.f32 %v1558_v36, %v4719_v38  ;;  %v4826_v59 = vmul.f32 0.5, %v4712_v41  ;;  %v1594_v39 = vadd.f32 0.00028619796, %v1593_v25  ;;  %v4829_v62 = vmul.f32 %v1482_v57, %v4586_v54 }
 0x28a   : > { %5892 = vst [vmem:[#allocation54_spill] sm:$0xff] %v4819_v58  ;;  %v1922_v56 = vadd.f32 1.1283791, %v1921_v51  ;;  %v1634_v3 = vadd.f32 0.00028619796, %v1633_v37  ;;  %v2391_v17 = vadd.f32 1.0, %v3101_v55  ;;  %v1999_v34 = vmul.f32 %v1998_v13, %v4724_v8 }
 0x28b   : > { %5893 = vst [vmem:[#allocation55_spill] sm:$0xff] %v4826_v59  ;;  %v1962_v58 = vadd.f32 1.1283791, %v1961_v60  ;;  %v2036_v52 = vadd.f32 0.0036580483, %v2035_v27  ;;  %v2111_v49 = vmul.f32 %v4813_v44, %v4813_v44  ;;  %v4835_v36 = vmul.f32 0.5, %v4732_v16 }
 0x28c   : > { %5894 = vst [vmem:[#allocation56_spill] sm:$0xff] %v4829_v62  ;;  %v2074_v41 = vadd.f32 0.00028619796, %v2073_v15  ;;  %v2423_v25 = vmul.f32 %v2391_v17, %v4407_v40  ;;  %v3102_v54 = vclamps-f32 %v4637_v28, 1.0  ;;  %v1520_v57 = vadd.f32 0.18741608, %v1519_v53  ;;  %v1038_v17 = vpop.f32.mrf.mxu3 }
 0x28d   : > { %5895 = vst [vmem:[#allocation57_spill] sm:$0xff] %v4835_v36  ;;  %v1560_v51 = vadd.f32 0.18741608, %v1559_v46  ;;  %v1595_v37 = vmul.f32 %v1594_v39, %v4782_v9  ;;  %v4841_v60 = vadd.f32 %v955_v4, %v4260_v12  ;;  %v4844_v13 = vmul.f32 %v1922_v56, %v4600_v1  ;;  %v973_v46 = vpop.f32.mrf.mxu2 }
 0x28e   : > { %v1635_v27 = vmul.f32 %v1634_v3, %v4785_v32  ;;  %2567 = vmatmul.f32.vlgmr.msrb.gmra.mxu2 %v2423_v25  ;;  %v2392_v16 = vadd.f32 1.0, %v3102_v54  ;;  %2697 = vmatmul.f32.vlgmr.msrb.gmra.mxu0 %v2423_v25  ;;  %v4848_v15 = vadd.f32 %v1020_v61, %v4262_v31  ;;  %v4851_v40 = vmul.f32 %v1962_v58, %v4627_v23 }
 0x28f   : > { %5896 = vst [vmem:[#allocation58_spill] sm:$0xff] %v4844_v13  ;;  %v2000_v28 = vadd.f32 0.18741608, %v1999_v34  ;;  %v2037_v55 = vmul.f32 %v2036_v52, %v4758_v11  ;;  %v4854_v53 = vmin.f32 %v2111_v49, 16.0  ;;  %v4857_v1 = vmul.f32 0.5, %v4747_v20 }
 0x290   : > { %5897 = vst [vmem:[#allocation59_spill] sm:$0xff] %v4851_v40  ;;  %v2075_v39 = vmul.f32 %v2074_v41, %v4808_v63  ;;  %v2424_v56 = vmul.f32 %v2392_v16, %v4410_v47  ;;  %v4862_v3 = vmul.f32 0.70710677, %v4841_v60  ;;  %v1521_v23 = vmul.f32 %v1520_v57, %v4693_v5 }
 0x291   : > { %5898 = vst [vmem:[#allocation60_spill] sm:$0xff] %v4857_v1  ;;  %v1561_v34 = vmul.f32 %v1560_v51, %v4719_v38  ;;  %v1596_v58 = vadd.f32 0.0036580483, %v1595_v37  ;;  %v2113_v52 = vmul.f32 2.1237322e-06, %v4854_v53  ;;  %v4873_v47 = vadd.f32 %v973_v46, %v4260_v12 }
 0x292   : > { %v1636_v4 = vadd.f32 0.0036580483, %v1635_v27  ;;  %2632 = vmatmul.f32.vlgmr.msrb.gmra.mxu3 %v2424_v56  ;;  %2762 = vmatmul.f32.vlgmr.msrb.gmra.mxu1 %v2424_v56  ;;  %v1671_v20 = vmul.f32 %v4862_v3, %v4862_v3  ;;  %v4870_v49 = vmul.f32 0.70710677, %v4848_v15  ;;  %v2001_v61 = vmul.f32 %v2000_v28, %v4724_v8 }
 0x293   : > { %v2038_v41 = vadd.f32 0.05243302, %v2037_v55  ;;  %v4877_v25 = vmul.f32 0.5, %v4754_v14  ;;  %v4880_v54 = vadd.f32 %v1038_v17, %v4262_v31  ;;  %v2076_v57 = vadd.f32 0.0036580483, %v2075_v39 }
 0x294   : > { %v4883_v51 = vmul.f32 0.5, %v4791_v19  ;;  %v4885_v37 = vmin.f32 %v1671_v20, 16.0  ;;  %v1711_v27 = vmul.f32 %v4870_v49, %v4870_v49  ;;  %v1522_v16 = vadd.f32 1.1283791, %v1521_v23 }
 0x295   : > { %5899 = vst [vmem:[#allocation61_spill] sm:$0xff] %v4877_v25  ;;  %v1597_v46 = vmul.f32 %v1596_v58, %v4782_v9  ;;  %v2114_v28 = vadd.f32 0.00028619796, %v2113_v52  ;;  %v4891_v55 = vmul.f32 0.70710677, %v4873_v47  ;;  %v1637_v56 = vmul.f32 %v1636_v4, %v4785_v32 }
 0x296   : > { %5900 = vst [vmem:[#allocation62_spill] sm:$0xff] %v4883_v51  ;;  %v1562_v14 = vadd.f32 1.1283791, %v1561_v34  ;;  %v1673_v39 = vmul.f32 2.1237322e-06, %v4885_v37  ;;  %v4895_v17 = vmin.f32 %v1711_v27, 16.0  ;;  %v2039_v20 = vmul.f32 %v2038_v41, %v4758_v11 }
 0x297   : > { %v2002_v19 = vadd.f32 1.1283791, %v2001_v61  ;;  %v2151_v51 = vmul.f32 %v4891_v55, %v4891_v55  ;;  %v4901_v23 = vmul.f32 0.70710677, %v4880_v54  ;;  %v2077_v58 = vmul.f32 %v2076_v57, %v4808_v63 }
 0x298   : > { %v1674_v52 = vadd.f32 0.00028619796, %v1673_v39  ;;  %v1713_v34 = vmul.f32 2.1237322e-06, %v4895_v17  ;;  %v1204_v4 = vmul.f32 3.8918573e-05, %v4322_v18  ;;  %v2115_v27 = vmul.f32 %v2114_v28, %v4854_v53 }
 0x299   : > { %v1598_v25 = vadd.f32 0.05243302, %v1597_v46  ;;  %v4907_v59 = vmin.f32 %v2151_v51, 16.0  ;;  %v2191_v61 = vmul.f32 %v4901_v23, %v4901_v23  ;;  %v1638_v41 = vadd.f32 0.05243302, %v1637_v56 }
 0x29a   : > { %v1675_v40 = vmul.f32 %v1674_v52, %v4885_v37  ;;  %v1205_v13 = vadd.f32 0.001143296, %v1204_v4  ;;  %v1244_v8 = vmul.f32 3.8918573e-05, %v4327_v21  ;;  %v4914_v57 = vmul.f32 %v1522_v16, %v4673_v26 }
 0x29b   : > { %v1714_v39 = vadd.f32 0.00028619796, %v1713_v34  ;;  %v2153_v1 = vmul.f32 2.1237322e-06, %v4907_v59  ;;  %v4917_v46 = vmin.f32 %v2191_v61, 16.0  ;;  %v1599_v56 = vmul.f32 %v1598_v25, %v4782_v9 }
 0x29c   : > { %5901 = vst [vmem:[#allocation63_spill] sm:$0xff] %v4914_v57  ;;  %v2040_v28 = vadd.f32 0.18741608, %v2039_v20  ;;  %v2078_v51 = vadd.f32 0.05243302, %v2077_v58  ;;  %v1206_v2 = vmul.f32 %v1205_v13, %v4322_v18  ;;  %v1639_v61 = vmul.f32 %v1638_v41, %v4785_v32 }
 0x29d   : > { %v1245_v36 = vadd.f32 0.001143296, %v1244_v8  ;;  %v2154_v50 = vadd.f32 0.00028619796, %v2153_v1  ;;  %v2193_v52 = vmul.f32 2.1237322e-06, %v4917_v46  ;;  %v1715_v20 = vmul.f32 %v1714_v39, %v4895_v17 }
 0x29e   : > { %v1284_v4 = vmul.f32 3.8918573e-05, %v4357_v48  ;;  %v2116_v35 = vadd.f32 0.0036580483, %v2115_v27  ;;  %v1676_v26 = vadd.f32 0.0036580483, %v1675_v40  ;;  %v4930_v62 = vmul.f32 %v1562_v14, %v4696_v42 }
 0x29f   : > { %v1207_v16 = vadd.f32 0.014752088, %v1206_v2  ;;  %v1246_v34 = vmul.f32 %v1245_v36, %v4327_v21  ;;  %v1324_v13 = vmul.f32 3.8918573e-05, %v4415_v0  ;;  %v2155_v8 = vmul.f32 %v2154_v50, %v4907_v59 }
 0x2a0   : > { %v1285_v58 = vadd.f32 0.001143296, %v1284_v4  ;;  %v2194_v25 = vadd.f32 0.00028619796, %v2193_v52  ;;  %5902 = vst [vmem:[#allocation64_spill] sm:$0xff] %v4930_v62  ;;  %v2079_v2 = vmul.f32 %v2078_v51, %v4808_v63  ;;  %v2117_v27 = vmul.f32 %v2116_v35, %v4854_v53 }
 0x2a1   : > { %v1208_v1 = vmul.f32 %v1207_v16, %v4322_v18  ;;  %v1247_v57 = vadd.f32 0.014752088, %v1246_v34  ;;  %v1325_v40 = vadd.f32 0.001143296, %v1324_v13  ;;  %v1677_v41 = vmul.f32 %v1676_v26, %v4885_v37 }
 0x2a2   : > { %v1286_v36 = vmul.f32 %v1285_v58, %v4357_v48  ;;  %v2041_v50 = vmul.f32 %v2040_v28, %v4758_v11  ;;  %v1600_v52 = vadd.f32 0.18741608, %v1599_v56  ;;  %v1640_v16 = vadd.f32 0.18741608, %v1639_v61 }
 0x2a3   : > { %v1209_v39 = vadd.f32 0.112945676, %v1208_v1  ;;  %v1248_v4 = vmul.f32 %v1247_v57, %v4327_v21  ;;  %v1716_v34 = vadd.f32 0.0036580483, %v1715_v20  ;;  %v2156_v6 = vadd.f32 0.0036580483, %v2155_v8 }
 0x2a4   : > { %v2195_v42 = vmul.f32 %v2194_v25, %v4917_v46  ;;  %v4941_v58 = vmul.f32 %v2002_v19, %v4706_v30  ;;  %v2080_v35 = vadd.f32 0.18741608, %v2079_v2  ;;  %v1287_v13 = vadd.f32 0.014752088, %v1286_v36  ;;  %v976_v36 = vpop.f32.mrf.mxu2 }
 0x2a5   : > { %v1210_v14 = vmul.f32 %v1209_v39, %v4322_v18  ;;  %v1249_v51 = vadd.f32 0.112945676, %v1248_v4  ;;  %v1326_v26 = vmul.f32 %v1325_v40, %v4415_v0  ;;  %v2118_v1 = vadd.f32 0.05243302, %v2117_v27  ;;  %v1041_v40 = vpop.f32.mrf.mxu3 }
 0x2a6   : > { %v1678_v57 = vadd.f32 0.05243302, %v1677_v41  ;;  %v2042_v56 = vadd.f32 1.1283791, %v2041_v50  ;;  %v1601_v61 = vmul.f32 %v1600_v52, %v4782_v9  ;;  %v1641_v20 = vmul.f32 %v1640_v16, %v4785_v32 }
 0x2a7   : > { %v1211_v62 = vadd.f32 0.4994258, %v1210_v14  ;;  %v1250_v28 = vmul.f32 %v1249_v51, %v4327_v21  ;;  %v1717_v8 = vmul.f32 %v1716_v34, %v4895_v17  ;;  %v2157_v25 = vmul.f32 %v2156_v6, %v4907_v59 }
 0x2a8   : > { %v2196_v30 = vadd.f32 0.0036580483, %v2195_v42  ;;  %v2081_v27 = vmul.f32 %v2080_v35, %v4808_v63  ;;  %v4952_v41 = vadd.f32 %v976_v36, %v4260_v12  ;;  %v1288_v39 = vmul.f32 %v1287_v13, %v4357_v48 }
 0x2a9   : > { %v1212_v19 = vmul.f32 %v1211_v62, %v4322_v18  ;;  %v1251_v2 = vadd.f32 0.4994258, %v1250_v28  ;;  %v1327_v4 = vadd.f32 0.014752088, %v1326_v26  ;;  %v2119_v50 = vmul.f32 %v2118_v1, %v4854_v53 }
 0x2aa   : > { %5903 = vst [vmem:[#allocation65_spill] sm:$0xff] %v4952_v41  ;;  %v1679_v52 = vmul.f32 %v1678_v57, %v4885_v37  ;;  %v1602_v18 = vadd.f32 1.1283791, %v1601_v61  ;;  %v4961_v62 = vmul.f32 0.5, %v4841_v60  ;;  %v4964_v34 = vmul.f32 0.70710677, %v4952_v41 }
 0x2ab   : > { %v4957_v16 = vadd.f32 1.0, %v1212_v19  ;;  %v1252_v6 = vmul.f32 %v1251_v2, %v4327_v21  ;;  %v4967_v42 = vadd.f32 %v1041_v40, %v4262_v31  ;;  %v1718_v14 = vadd.f32 0.05243302, %v1717_v8 }
 0x2ac   : > { %5904 = vst [vmem:[#allocation66_spill] sm:$0xff] %v4964_v34  ;;  %v2158_v51 = vadd.f32 0.05243302, %v2157_v25  ;;  %v2197_v35 = vmul.f32 %v2196_v30, %v4917_v46  ;;  %v1642_v13 = vadd.f32 1.1283791, %v1641_v20  ;;  %v1328_v1 = vmul.f32 %v1327_v4, %v4415_v0 }
 0x2ad   : > { %5905 = vst [vmem:[#allocation67_spill] sm:$0xff] %v4967_v42  ;;  %3314 = vrcp.f32 %v4957_v16  ;;  %v4971_v26 = vadd.f32 1.0, %v1252_v6  ;;  %v1289_v21 = vadd.f32 0.112945676, %v1288_v39  ;;  %v4975_v60 = vmul.f32 %v2042_v56, %v4729_v24 }
 0x2ae   : > { %v2082_v57 = vadd.f32 1.1283791, %v2081_v27  ;;  %v2120_v28 = vadd.f32 0.18741608, %v2119_v50  ;;  %v1680_v61 = vadd.f32 0.18741608, %v1679_v52  ;;  %v2231_v8 = vmul.f32 %v4964_v34, %v4964_v34 }
 0x2af   : > { %v4978_v19 = vmul.f32 0.5, %v4848_v15  ;;  %3316 = vrcp.f32 %v4971_v26  ;;  %v4984_v20 = vmul.f32 0.70710677, %v4967_v42  ;;  %v4987_v25 = vmul.f32 %v1602_v18, %v4742_v10 }
 0x2b0   : > { %v1719_v24 = vmul.f32 %v1718_v14, %v4895_v17  ;;  %v2159_v56 = vmul.f32 %v2158_v51, %v4907_v59  ;;  %v2198_v30 = vadd.f32 0.05243302, %v2197_v35  ;;  %v4992_v2 = vmul.f32 0.5, %v4873_v47 }
 0x2b1   : > { %5906 = vst [vmem:[#allocation68_spill] sm:$0xff] %v4984_v20  ;;  %v4995_v15 = vmul.f32 0.5, %v4880_v54  ;;  %v1290_v36 = vmul.f32 %v1289_v21, %v4357_v48  ;;  %v1329_v40 = vadd.f32 0.112945676, %v1328_v1  ;;  %v4999_v39 = vmul.f32 %v1642_v13, %v4767_v22 }
 0x2b2   : > { %5907 = vst [vmem:[#allocation69_spill] sm:$0xff] %v4992_v2  ;;  %v5002_v10 = vmul.f32 %v2082_v57, %v4772_v29  ;;  %v2121_v4 = vmul.f32 %v2120_v28, %v4854_v53  ;;  %v1681_v50 = vmul.f32 %v1680_v61, %v4885_v37  ;;  %v5007_v52 = vmin.f32 %v2231_v8, 16.0  ;;  %v5910_v8 = vld [vmem:[#allocation27_spill] sm:$0xff] }
 0x2b3   : > { %5908 = vst [vmem:[#allocation70_spill] sm:$0xff] %v4995_v15  ;;  %v3315_v27 = vpop.eup %3314  ;;  %v2271_v54 = vmul.f32 %v4984_v20, %v4984_v20  ;;  %v1291_v6 = vadd.f32 0.4994258, %v1290_v36  ;;  %v1720_v18 = vadd.f32 0.18741608, %v1719_v24  ;;  %v2199_v22 = vmul.f32 %v2198_v30, %v4917_v46 }
 0x2b4   : > { %5909 = vst [vmem:[#allocation71_spill] sm:$0xff] %v5002_v10  ;;  %v1215_v47 = vmul.f32 %v3315_v27, %v4957_v16  ;;  %v2160_v14 = vadd.f32 0.18741608, %v2159_v56  ;;  %v1330_v51 = vmul.f32 %v1329_v40, %v4415_v0  ;;  %v1223_v13 = vand.u32 2147483647, %v4957_v16 }
 0x2b5   : > { %v3317_v29 = vpop.eup %3316  ;;  %v2233_v21 = vmul.f32 2.1237322e-06, %v5007_v52  ;;  %v1292_v1 = vmul.f32 %v1291_v6, %v4357_v48  ;;  %v1225_v57 = vand.u32 2147483648, %v4957_v16  ;;  %v1364_v24 = vmul.f32 3.8918573e-05, %v5910_v8 }
 0x2b6   : > { %v1216_v35 = vsub.f32 1.0, %v1215_v47  ;;  %v1255_v28 = vmul.f32 %v3317_v29, %v4971_v26  ;;  %v1331_v61 = vadd.f32 0.4994258, %v1330_v51  ;;  %vm1220_vm9 = vweird.f32 %v3315_v27 }
 0x2b7   : > { %v5019_v30 = vmin.f32 %v2271_v54, 16.0  ;;  %v5021_v36 = vadd.f32 1.0, %v1292_v1  ;;  %vm1219_vm10 = vweird.f32 %v4957_v16  ;;  %v1265_v47 = vand.u32 2147483648, %v4971_v26 }
 0x2b8   : > { %v1217_v56 = vmul.f32 %v3315_v27, %v1216_v35  ;;  %v1256_v40 = vsub.f32 1.0, %v1255_v28  ;;  %v1332_v48 = vmul.f32 %v1331_v61, %v4415_v0  ;;  %v2234_v42 = vadd.f32 0.00028619796, %v2233_v21  ;;  %vm1221_vm11 = vmor %vm1219_vm10, %vm1220_vm9  ;;  %v5911_v21 = vld [vmem:[#allocation32_spill] sm:$0xff] }
 0x2b9   : > { %v2273_v41 = vmul.f32 2.1237322e-06, %v5019_v30  ;;  %3318 = vrcp.f32 %v5021_v36  ;;  %v1226_v51 = vor.u32 1.1754944e-38, %v1225_v57  ;;  %vm1260_vm12 = vweird.f32 %v3317_v29 }
 0x2ba   : > { %v1218_v6 = vadd.f32 %v3315_v27, %v1217_v56  ;;  %v1257_v35 = vmul.f32 %v3317_v29, %v1256_v40  ;;  %v1263_v54 = vand.u32 2147483647, %v4971_v26  ;;  %vm1224_vm13 = vcmp.eq.f32.partialorder %v1223_v13, 8.507059e+37 }
 0x2bb   : > { %v5029_v16 = vadd.f32 1.0, %v1332_v48  ;;  %v1365_v28 = vadd.f32 0.001143296, %v1364_v24  ;;  %vm1259_vm14 = vweird.f32 %v4971_v26  ;;  %v1266_v0 = vor.u32 1.1754944e-38, %v1265_v47 }
 0x2bc   : > { %v1222_v1 = vsel %vm1221_vm11, %v3315_v27, %v1218_v6  ;;  %v1258_v20 = vadd.f32 %v3317_v29, %v1257_v35  ;;  %vm1261_vm15 = vmor %vm1259_vm14, %vm1260_vm12  ;;  %v2235_v56 = vmul.f32 %v2234_v42, %v5007_v52  ;;  %v2274_v57 = vadd.f32 0.00028619796, %v2273_v41  ;;  %v5912_v42 = vld [vmem:[#allocation34_spill] sm:$0xff] }
 0x2bd   : > { %v1227_v15 = vsel %vm1224_vm13, %v1226_v51, %v1222_v1  ;;  %3320 = vrcp.f32 %v5029_v16  ;;  %v5035_v40 = vadd.f32 1.1283791, %v2121_v4  ;;  %v5037_v27 = vadd.f32 1.1283791, %v1681_v50  ;;  %v979_v50 = vpop.f32.mrf.mxu2 }
 0x2be   : > { %v1228_v61 = vmul.f32 %v1227_v15, %v5911_v21  ;;  %v1262_v13 = vsel %vm1261_vm15, %v3317_v29, %v1258_v20  ;;  %vm1264_vm0 = vcmp.eq.f32.partialorder %v1263_v54, 8.507059e+37  ;;  %v5040_v48 = vmul.f32 %v1720_v18, %v4895_v17  ;;  %v5913_v54 = vld [vmem:[#allocation28_spill] sm:$0xff] }
 0x2bf   : > { %v3319_v24 = vpop.eup %3318  ;;  %v1267_v47 = vsel %vm1264_vm0, %v1266_v0, %v1262_v13  ;;  %v1366_v15 = vmul.f32 %v1365_v28, %v5910_v8  ;;  %v5044_v6 = vmul.f32 %v2160_v14, %v4907_v59  ;;  %v2200_v41 = vadd.f32 0.18741608, %v2199_v22 }
 0x2c0   : > { %v3103_v26 = vclamps-f32 %v1228_v61, 1.0  ;;  %v1268_v51 = vmul.f32 %v1267_v47, %v5912_v42  ;;  %v1295_v4 = vmul.f32 %v3319_v24, %v5021_v36  ;;  %v2236_v20 = vadd.f32 0.0036580483, %v2235_v56  ;;  %v5914_v61 = vld [vmem:[#allocation21_spill] sm:$0xff] }
 0x2c1   : > { %v2275_v29 = vmul.f32 %v2274_v57, %v5019_v30  ;;  %v1404_v18 = vmul.f32 3.8918573e-05, %v5913_v54  ;;  %v1303_v0 = vand.u32 2147483647, %v5021_v36  ;;  %v1444_v28 = vmul.f32 3.8918573e-05, %v4595_v45 }
 0x2c2   : > { %v2393_v35 = vadd.f32 1.0, %v3103_v26  ;;  %v3104_v1 = vclamps-f32 %v1268_v51, 1.0  ;;  %v1296_v21 = vsub.f32 1.0, %v1295_v4  ;;  %v1305_v13 = vand.u32 2147483648, %v5021_v36 }
 0x2c3   : > { %v3321_v14 = vpop.eup %3320  ;;  %v5055_v47 = vadd.f32 %v979_v50, %v4260_v12  ;;  %v1367_v26 = vadd.f32 0.014752088, %v1366_v15  ;;  %vm1300_vm1 = vweird.f32 %v3319_v24  ;;  %v2237_v51 = vmul.f32 %v2236_v20, %v5007_v52 }
 0x2c4   : > { %v2425_v22 = vmul.f32 %v2393_v35, %v5914_v61  ;;  %v2394_v56 = vadd.f32 1.0, %v3104_v1  ;;  %v1297_v42 = vmul.f32 %v3319_v24, %v1296_v21  ;;  %v1335_v57 = vmul.f32 %v3321_v14, %v5029_v16  ;;  %v5915_v61 = vld [vmem:[#allocation22_spill] sm:$0xff] }
 0x2c5   : > { %v2276_v4 = vadd.f32 0.0036580483, %v2275_v29  ;;  %vm1299_vm2 = vweird.f32 %v5021_v36  ;;  %v1343_v35 = vand.u32 2147483647, %v5029_v16  ;;  %vm1304_vm3 = vcmp.eq.f32.partialorder %v1303_v0, 8.507059e+37 }
 0x2c6   : > { %2570 = vmatmul.f32.gmra.mxu2 %v2425_v22  ;;  %2700 = vmatmul.f32.gmra.mxu0 %v2425_v22  ;;  %v2426_v2 = vmul.f32 %v2394_v56, %v5915_v61  ;;  %v1298_v10 = vadd.f32 %v3319_v24, %v1297_v42  ;;  %v1336_v12 = vsub.f32 1.0, %v1335_v57  ;;  %vm1301_vm4 = vmor %vm1299_vm2, %vm1300_vm1  ;;  %v1306_v15 = vor.u32 1.1754944e-38, %v1305_v13  ;;  %v5918_v13 = vld [vmem:[#allocation39_spill] sm:$0xff] }
 0x2c7   : > { %vm1340_vm5 = vweird.f32 %v3321_v14  ;;  %v1345_v50 = vand.u32 2147483648, %v5029_v16  ;;  %v1368_v1 = vmul.f32 %v1367_v26, %v5910_v8  ;;  %v1405_v21 = vadd.f32 0.001143296, %v1404_v18 }
 0x2c8   : > { %2635 = vmatmul.f32.gmra.mxu3 %v2426_v2  ;;  %2765 = vmatmul.f32.gmra.mxu1 %v2426_v2  ;;  %v1302_v20 = vsel %vm1301_vm4, %v3319_v24, %v1298_v10  ;;  %v1337_v29 = vmul.f32 %v3321_v14, %v1336_v12  ;;  %v1445_v36 = vadd.f32 0.001143296, %v1444_v28  ;;  %v2238_v22 = vadd.f32 0.05243302, %v2237_v51 }
 0x2c9   : > { %v1307_v34 = vsel %vm1304_vm3, %v1306_v15, %v1302_v20  ;;  %vm1339_vm6 = vweird.f32 %v5029_v16  ;;  %vm5065_vm7 = vcmp.eq.f32.partialorder %v1343_v35, 8.507059e+37  ;;  %v1369_v57 = vadd.f32 0.112945676, %v1368_v1  ;;  %v5919_v1 = vld [vmem:[#allocation43_spill] sm:$0xff] }
 0x2ca   : > { %v1308_v56 = vmul.f32 %v1307_v34, %v5918_v13  ;;  %v1338_v42 = vadd.f32 %v3321_v14, %v1337_v29  ;;  %v1406_v26 = vmul.f32 %v1405_v21, %v5913_v54  ;;  %vm1341_vm8 = vmor %vm1339_vm6, %vm1340_vm5  ;;  %v1346_v2 = vor.u32 1.1754944e-38, %v1345_v50  ;;  %v1044_v29 = vpop.f32.mrf.mxu3 }
 0x2cb   : > { %v5073_v10 = vmul.f32 0.70710677, %v5055_v47  ;;  %v1446_v24 = vmul.f32 %v1445_v36, %v4595_v45  ;;  %v1484_v16 = vmul.f32 3.8918573e-05, %v4613_v7  ;;  %v1370_v51 = vmul.f32 %v1369_v57, %v5910_v8 }
 0x2cc   : > { %v3105_v18 = vclamps-f32 %v1308_v56, 1.0  ;;  %v1342_v28 = vsel %vm1341_vm8, %v3321_v14, %v1338_v42  ;;  %v1407_v35 = vadd.f32 0.014752088, %v1406_v26  ;;  %v2201_v34 = vmul.f32 %v2200_v41, %v4917_v46 }
 0x2cd   : > { %v2277_v61 = vmul.f32 %v2276_v4, %v5019_v30  ;;  %v1347_v12 = vsel %vm5065_vm7, %v1346_v2, %v1342_v28  ;;  %v1447_v15 = vadd.f32 0.014752088, %v1446_v24  ;;  %v1371_v21 = vadd.f32 0.4994258, %v1370_v51  ;;  %v5920_v4 = vld [vmem:[#allocation24_spill] sm:$0xff] }
 0x2ce   : > { %v2395_v50 = vadd.f32 1.0, %v3105_v18  ;;  %v1348_v20 = vmul.f32 %v1347_v12, %v5919_v1  ;;  %v1408_v36 = vmul.f32 %v1407_v35, %v5913_v54  ;;  %v2239_v14 = vmul.f32 %v2238_v22, %v5007_v52 }
 0x2cf   : > { %v2311_v13 = vmul.f32 %v5073_v10, %v5073_v10  ;;  %v1448_v41 = vmul.f32 %v1447_v15, %v4595_v45  ;;  %v1485_v56 = vadd.f32 0.001143296, %v1484_v16  ;;  %v1372_v57 = vmul.f32 %v1371_v21, %v5910_v8 }
 0x2d0   : > { %v2427_v42 = vmul.f32 %v2395_v50, %v5920_v4  ;;  %v3106_v0 = vclamps-f32 %v1348_v20, 1.0  ;;  %v1409_v26 = vadd.f32 0.112945676, %v1408_v36  ;;  %v2278_v2 = vadd.f32 0.05243302, %v2277_v61  ;;  %v5921_v50 = vld [vmem:[#allocation25_spill] sm:$0xff] }
 0x2d1   : > { %v5091_v24 = vadd.f32 %v1044_v29, %v4262_v31  ;;  %v1449_v18 = vadd.f32 0.112945676, %v1448_v41  ;;  %v1486_v28 = vmul.f32 %v1485_v56, %v4613_v7  ;;  %v5094_v51 = vadd.f32 1.0, %v1372_v57 }
 0x2d2   : > { %2573 = vmatmul.f32.gmra.mxu2 %v2427_v42  ;;  %v2396_v22 = vadd.f32 1.0, %v3106_v0  ;;  %2703 = vmatmul.f32.gmra.mxu0 %v2427_v42  ;;  %v1410_v16 = vmul.f32 %v1409_v26, %v5913_v54  ;;  %v1524_v35 = vmul.f32 3.8918573e-05, %v4693_v5  ;;  %v1722_v12 = vadd.f32 1.1283791, %v5040_v48 }
 0x2d3   : > { %v2240_v8 = vadd.f32 0.18741608, %v2239_v14  ;;  %v1450_v61 = vmul.f32 %v1449_v18, %v4595_v45  ;;  %v1487_v15 = vadd.f32 0.014752088, %v1486_v28  ;;  %v2162_v31 = vadd.f32 1.1283791, %v5044_v6 }
 0x2d4   : > { %v2428_v1 = vmul.f32 %v2396_v22, %v5921_v50  ;;  %v5102_v20 = vmin.f32 %v2311_v13, 16.0  ;;  %3322 = vrcp.f32 %v5094_v51  ;;  %v2202_v29 = vadd.f32 1.1283791, %v2201_v34 }
 0x2d5   : > { %v2279_v21 = vmul.f32 %v2278_v2, %v5019_v30  ;;  %v5107_v36 = vmul.f32 0.70710677, %v5091_v24  ;;  %v1411_v41 = vadd.f32 0.4994258, %v1410_v16  ;;  %v1451_v14 = vadd.f32 0.4994258, %v1450_v61 }
 0x2d6   : > { %2638 = vmatmul.f32.gmra.mxu3 %v2428_v1  ;;  %2768 = vmatmul.f32.gmra.mxu1 %v2428_v1  ;;  %v2313_v48 = vmul.f32 2.1237322e-06, %v5102_v20  ;;  %v1488_v6 = vmul.f32 %v1487_v15, %v4613_v7  ;;  %v1525_v56 = vadd.f32 0.001143296, %v1524_v35  ;;  %v5113_v13 = vmul.f32 %v5035_v40, %v4813_v44 }
 0x2d7   : > { %v5117_v34 = vmul.f32 %v5037_v27, %v4862_v3  ;;  %v2241_v4 = vmul.f32 %v2240_v8, %v5007_v52  ;;  %v1412_v42 = vmul.f32 %v1411_v41, %v5913_v54  ;;  %v1452_v0 = vmul.f32 %v1451_v14, %v4595_v45 }
 0x2d8   : > { %v1489_v57 = vadd.f32 0.112945676, %v1488_v6  ;;  %v1526_v26 = vmul.f32 %v1525_v56, %v4693_v5  ;;  %v1564_v2 = vmul.f32 3.8918573e-05, %v4719_v38  ;;  %v5125_v18 = vmul.f32 %v1722_v12, %v4870_v49 }
 0x2d9   : > { %v5128_v44 = vmul.f32 %v2162_v31, %v4891_v55  ;;  %v2280_v40 = vadd.f32 0.18741608, %v2279_v21  ;;  %v5130_v3 = vadd.f32 1.0, %v1412_v42  ;;  %v5133_v28 = vmul.f32 %v2202_v29, %v4901_v23 }
 0x2da   : > { %v3323_v27 = vpop.eup %3322  ;;  %v2314_v54 = vadd.f32 0.00028619796, %v2313_v48  ;;  %v2351_v45 = vmul.f32 %v5107_v36, %v5107_v36  ;;  %v5137_v22 = vadd.f32 1.0, %v1452_v0  ;;  %v5139_v16 = vadd.f32 1.1283791, %v2241_v4 }
 0x2db   : > { %v1375_v49 = vmul.f32 %v3323_v27, %v5094_v51  ;;  %v1383_v55 = vand.u32 2147483647, %v5094_v51  ;;  %v1490_v35 = vmul.f32 %v1489_v57, %v4613_v7  ;;  %3324 = vrcp.f32 %v5130_v3 }
 0x2dc   : > { %v1527_v12 = vadd.f32 0.014752088, %v1526_v26  ;;  %v1565_v8 = vadd.f32 0.001143296, %v1564_v2  ;;  %v1604_v23 = vmul.f32 3.8918573e-05, %v4782_v9  ;;  %v5147_v61 = vmul.f32 %v2280_v40, %v5019_v30 }
 0x2dd   : > { %v1376_v15 = vsub.f32 1.0, %v1375_v49  ;;  %v1385_v31 = vand.u32 2147483648, %v5094_v51  ;;  %3326 = vrcp.f32 %v5137_v22  ;;  %v5152_v50 = vmul.f32 %v2314_v54, %v5102_v20 }
 0x2de   : > { %v5154_v1 = vmin.f32 %v2351_v45, 16.0  ;;  %vm1379_vm9 = vweird.f32 %v5094_v51  ;;  %v1425_v29 = vand.u32 2147483648, %v5130_v3  ;;  %vm1380_vm10 = vweird.f32 %v3323_v27 }
 0x2df   : > { %v1377_v21 = vmul.f32 %v3323_v27, %v1376_v15  ;;  %v1423_v41 = vand.u32 2147483647, %v5130_v3  ;;  %v1491_v48 = vadd.f32 0.4994258, %v1490_v35  ;;  %vm5159_vm11 = vcmp.eq.f32.partialorder %v1383_v55, 8.507059e+37  ;;  %vm1381_vm13 = vmor %vm1379_vm9, %vm1380_vm10 }
 0x2e0   : > { %v1528_v6 = vmul.f32 %v1527_v12, %v4693_v5  ;;  %v1566_v56 = vmul.f32 %v1565_v8, %v4719_v38  ;;  %v1605_v4 = vadd.f32 0.001143296, %v1604_v23  ;;  %v1386_v0 = vor.u32 1.1754944e-38, %v1385_v31 }
 0x2e1   : > { %v1378_v42 = vadd.f32 %v3323_v27, %v1377_v21  ;;  %vm1419_vm12 = vweird.f32 %v5130_v3  ;;  %v1492_v57 = vmul.f32 %v1491_v48, %v4613_v7  ;;  %v3325_v26 = vpop.eup %3324  ;;  %v1426_v2 = vor.u32 1.1754944e-38, %v1425_v29 }
 0x2e2   : > { %vm1459_vm14 = vweird.f32 %v5137_v22  ;;  %v1529_v40 = vadd.f32 0.112945676, %v1528_v6  ;;  %v1567_v54 = vadd.f32 0.014752088, %v1566_v56  ;;  %v1415_v55 = vmul.f32 %v3325_v26, %v5130_v3 }
 0x2e3   : > { %v3327_v45 = vpop.eup %3326  ;;  %v1382_v49 = vsel %vm1381_vm13, %v3323_v27, %v1378_v42  ;;  %vm5171_vm15 = vcmp.eq.f32.partialorder %v1423_v41, 8.507059e+37  ;;  %v5175_v12 = vadd.f32 1.0, %v1492_v57  ;;  %v1606_v7 = vmul.f32 %v1605_v4, %v4782_v9 }
 0x2e4   : > { %v1387_v51 = vsel %vm5159_vm11, %v1386_v0, %v1382_v49  ;;  %v1455_v8 = vmul.f32 %v3327_v45, %v5137_v22  ;;  %v1463_v23 = vand.u32 2147483647, %v5137_v22  ;;  %v1530_v15 = vmul.f32 %v1529_v40, %v4693_v5 }
 0x2e5   : > { %v1388_v27 = vmul.f32 %v1387_v51, %v4763_v43  ;;  %v1416_v31 = vsub.f32 1.0, %v1415_v55  ;;  %v1465_v29 = vand.u32 2147483648, %v5137_v22  ;;  %3328 = vrcp.f32 %v5175_v12  ;;  %v5929_v22 = vld [vmem:[#allocation53_spill] sm:$0xff] }
 0x2e6   : > { %vm1420_vm0 = vweird.f32 %v3325_v26  ;;  %v1456_v21 = vsub.f32 1.0, %v1455_v8  ;;  %v1531_v41 = vadd.f32 0.4994258, %v1530_v15  ;;  %v1644_v48 = vmul.f32 3.8918573e-05, %v4785_v32  ;;  %v5928_v15 = vld [vmem:[#allocation33_spill] sm:$0xff] }
 0x2e7   : > { %v3107_v14 = vclamps-f32 %v1388_v27, 1.0  ;;  %v1417_v6 = vmul.f32 %v3325_v26, %v1416_v31  ;;  %v1568_v56 = vmul.f32 %v1567_v54, %v4719_v38  ;;  %v1607_v4 = vadd.f32 0.014752088, %v1606_v7  ;;  %vm1421_vm3 = vmor %vm1419_vm12, %vm1420_vm0 }
 0x2e8   : > { %v1457_v42 = vmul.f32 %v3327_v45, %v1456_v21  ;;  %vm1460_vm1 = vweird.f32 %v3327_v45  ;;  %vm5188_vm2 = vcmp.eq.f32.partialorder %v1463_v23, 8.507059e+37  ;;  %v1532_v43 = vmul.f32 %v1531_v41, %v4693_v5 }
 0x2e9   : > { %v2397_v57 = vadd.f32 1.0, %v3107_v14  ;;  %v1418_v40 = vadd.f32 %v3325_v26, %v1417_v6  ;;  %v1569_v49 = vadd.f32 0.112945676, %v1568_v56  ;;  %v1608_v55 = vmul.f32 %v1607_v4, %v4782_v9  ;;  %vm1461_vm4 = vmor %vm1459_vm14, %vm1460_vm1 }
 0x2ea   : > { %v1458_v51 = vadd.f32 %v3327_v45, %v1457_v42  ;;  %v1466_v54 = vor.u32 1.1754944e-38, %v1465_v29  ;;  %v5197_v7 = vadd.f32 1.0, %v1532_v43  ;;  %v1645_v8 = vadd.f32 0.001143296, %v1644_v48 }
 0x2eb   : > { %v3329_v23 = vpop.eup %3328  ;;  %v2429_v27 = vmul.f32 %v2397_v57, %v5928_v15  ;;  %v1422_v31 = vsel %vm1421_vm3, %v3325_v26, %v1418_v40  ;;  %v1570_v5 = vmul.f32 %v1569_v49, %v4719_v38  ;;  %v1609_v21 = vadd.f32 0.112945676, %v1608_v55 }
 0x2ec   : > { %v1427_v3 = vsel %vm5171_vm15, %v1426_v2, %v1422_v31  ;;  %v1462_v41 = vsel %vm1461_vm4, %v3327_v45, %v1458_v51  ;;  %v1495_v29 = vmul.f32 %v3329_v23, %v5175_v12  ;;  %v1505_v14 = vand.u32 2147483648, %v5175_v12 }
 0x2ed   : > { %2576 = vmatmul.f32.gmra.mxu2 %v2429_v27  ;;  %v1428_v48 = vmul.f32 %v1427_v3, %v4775_v33  ;;  %2706 = vmatmul.f32.gmra.mxu0 %v2429_v27  ;;  %v1467_v26 = vsel %vm5188_vm2, %v1466_v54, %v1462_v41  ;;  %vm1499_vm5 = vweird.f32 %v5175_v12  ;;  %3330 = vrcp.f32 %v5197_v7 }
 0x2ee   : > { %v1468_v6 = vmul.f32 %v1467_v26, %v5929_v22  ;;  %v1496_v35 = vsub.f32 1.0, %v1495_v29  ;;  %v1503_v2 = vand.u32 2147483647, %v5175_v12  ;;  %v1684_v45 = vmul.f32 3.8918573e-05, %v4885_v37 }
 0x2ef   : > { %v3108_v56 = vclamps-f32 %v1428_v48, 1.0  ;;  %v1571_v4 = vadd.f32 0.4994258, %v1570_v5  ;;  %v1610_v42 = vmul.f32 %v1609_v21, %v4782_v9  ;;  %v1646_v33 = vmul.f32 %v1645_v8, %v4785_v32  ;;  %v5930_v5 = vld [vmem:[#allocation36_spill] sm:$0xff] }
 0x2f0   : > { %v3109_v43 = vclamps-f32 %v1468_v6, 1.0  ;;  %v1497_v0 = vmul.f32 %v3329_v23, %v1496_v35  ;;  %vm1500_vm6 = vweird.f32 %v3329_v23  ;;  %v1506_v57 = vor.u32 1.1754944e-38, %v1505_v14  ;;  %v5932_v35 = vld [vmem:[#allocation56_spill] sm:$0xff] }
 0x2f1   : > { %v2398_v40 = vadd.f32 1.0, %v3108_v56  ;;  %v1572_v49 = vmul.f32 %v1571_v4, %v4719_v38  ;;  %v1611_v55 = vadd.f32 0.4994258, %v1610_v42  ;;  %v1647_v51 = vadd.f32 0.014752088, %v1646_v33  ;;  %vm1501_vm7 = vmor %vm1499_vm5, %vm1500_vm6  ;;  %v5931_v38 = vld [vmem:[#allocation41_spill] sm:$0xff] }
 0x2f2   : > { %v2399_v54 = vadd.f32 1.0, %v3109_v43  ;;  %v1498_v15 = vadd.f32 %v3329_v23, %v1497_v0  ;;  %v1685_v27 = vadd.f32 0.001143296, %v1684_v45  ;;  %v1724_v31 = vmul.f32 3.8918573e-05, %v4895_v17 }
 0x2f3   : > { %v3331_v3 = vpop.eup %3330  ;;  %v2430_v41 = vmul.f32 %v2398_v40, %v5930_v5  ;;  %v5223_v8 = vadd.f32 1.0, %v1572_v49  ;;  %v1612_v21 = vmul.f32 %v1611_v55, %v4782_v9  ;;  %v1648_v29 = vmul.f32 %v1647_v51, %v4785_v32 }
 0x2f4   : > { %v2431_v14 = vmul.f32 %v2399_v54, %v5931_v38  ;;  %v1502_v48 = vsel %vm1501_vm7, %v3329_v23, %v1498_v15  ;;  %vm1504_vm8 = vcmp.eq.f32.partialorder %v1503_v2, 8.507059e+37  ;;  %v1535_v26 = vmul.f32 %v3331_v3, %v5197_v7 }
 0x2f5   : > { %2641 = vmatmul.f32.gmra.mxu3 %v2430_v41  ;;  %2771 = vmatmul.f32.gmra.mxu1 %v2430_v41  ;;  %v1507_v22 = vsel %vm1504_vm8, %v1506_v57, %v1502_v48  ;;  %v1543_v6 = vand.u32 2147483647, %v5197_v7  ;;  %v1545_v12 = vand.u32 2147483648, %v5197_v7  ;;  %3332 = vrcp.f32 %v5223_v8  ;;  %v5935_v41 = vld [vmem:[#allocation20_spill] sm:$0xff] }
 0x2f6   : > { %2579 = vmatmul.f32.gmra.mxu2 %v2431_v14  ;;  %v1508_v9 = vmul.f32 %v1507_v22, %v5932_v35  ;;  %2709 = vmatmul.f32.gmra.mxu0 %v2431_v14  ;;  %v1536_v45 = vsub.f32 1.0, %v1535_v26  ;;  %vm1540_vm9 = vweird.f32 %v3331_v3  ;;  %v5233_v56 = vadd.f32 1.0, %v1612_v21  ;;  %v5936_v21 = vld [vmem:[#allocation45_spill] sm:$0xff] }
 0x2f7   : > { %v1583_v23 = vand.u32 2147483647, %v5223_v8  ;;  %v1649_v2 = vadd.f32 0.112945676, %v1648_v29  ;;  %v1686_v4 = vmul.f32 %v1685_v27, %v4885_v37  ;;  %v1725_v42 = vadd.f32 0.001143296, %v1724_v31 }
 0x2f8   : > { %v3110_v33 = vclamps-f32 %v1508_v9, 1.0  ;;  %v1537_v43 = vmul.f32 %v3331_v3, %v1536_v45  ;;  %v1585_v0 = vand.u32 2147483648, %v5223_v8  ;;  %3334 = vrcp.f32 %v5233_v56  ;;  %v5939_v45 = vld [vmem:[#allocation63_spill] sm:$0xff] }
 0x2f9   : > { %v5240_v57 = vmul.f32 2.1237322e-06, %v5154_v1  ;;  %vm1539_vm10 = vweird.f32 %v5197_v7  ;;  %vm5243_vm11 = vcmp.eq.f32.partialorder %v1543_v6, 8.507059e+37  ;;  %v1650_v49 = vmul.f32 %v1649_v2, %v4785_v32 }
 0x2fa   : > { %v2400_v55 = vadd.f32 1.0, %v3110_v33  ;;  %v1538_v51 = vadd.f32 %v3331_v3, %v1537_v43  ;;  %v1687_v54 = vadd.f32 0.014752088, %v1686_v4  ;;  %v1726_v15 = vmul.f32 %v1725_v42, %v4895_v17  ;;  %vm1541_vm12 = vmor %vm1539_vm10, %vm1540_vm9 }
 0x2fb   : > { %v3333_v27 = vpop.eup %3332  ;;  %v1546_v31 = vor.u32 1.1754944e-38, %v1545_v12  ;;  %vm1579_vm13 = vweird.f32 %v5223_v8  ;;  %v1651_v5 = vadd.f32 0.4994258, %v1650_v49  ;;  %v1764_v7 = vmul.f32 3.8918573e-05, %v5935_v41 }
 0x2fc   : > { %v2432_v29 = vmul.f32 %v2400_v55, %v5936_v21  ;;  %v1542_v38 = vsel %vm1541_vm12, %v3331_v3, %v1538_v51  ;;  %v1575_v14 = vmul.f32 %v3333_v27, %v5223_v8  ;;  %vm5254_vm14 = vcmp.eq.f32.partialorder %v1583_v23, 8.507059e+37 }
 0x2fd   : > { %v1586_v26 = vor.u32 1.1754944e-38, %v1585_v0  ;;  %v1547_v22 = vsel %vm5243_vm11, %v1546_v31, %v1542_v38  ;;  %v1652_v6 = vmul.f32 %v1651_v5, %v4785_v32  ;;  %v1688_v12 = vmul.f32 %v1687_v54, %v4885_v37  ;;  %v5940_v5 = vld [vmem:[#allocation23_spill] sm:$0xff] }
 0x2fe   : > { %v1727_v35 = vadd.f32 0.014752088, %v1726_v15  ;;  %v3335_v9 = vpop.eup %3334  ;;  %2644 = vmatmul.f32.gmra.mxu3 %v2432_v29  ;;  %2774 = vmatmul.f32.gmra.mxu1 %v2432_v29  ;;  %v1548_v3 = vmul.f32 %v1547_v22, %v5939_v45  ;;  %v1576_v2 = vsub.f32 1.0, %v1575_v14  ;;  %v1623_v23 = vand.u32 2147483647, %v5233_v56  ;;  %v5941_v14 = vld [vmem:[#allocation50_spill] sm:$0xff] }
 0x2ff   : > { %v1765_v4 = vadd.f32 0.001143296, %v1764_v7  ;;  %vm1580_vm15 = vweird.f32 %v3333_v27  ;;  %v1615_v42 = vmul.f32 %v3335_v9, %v5233_v56  ;;  %v5265_v33 = vadd.f32 1.0, %v1652_v6 }
 0x300   : > { %v1689_v43 = vadd.f32 0.112945676, %v1688_v12  ;;  %v3111_v0 = vclamps-f32 %v1548_v3, 1.0  ;;  %v1577_v32 = vmul.f32 %v3333_v27, %v1576_v2  ;;  %v1728_v40 = vmul.f32 %v1727_v35, %v4895_v17  ;;  %vm1581_vm1 = vmor %vm1579_vm13, %vm1580_vm15 }
 0x301   : > { %v1766_v49 = vmul.f32 %v1765_v4, %v5935_v41  ;;  %v1616_v55 = vsub.f32 1.0, %v1615_v42  ;;  %vm1619_vm0 = vweird.f32 %v5233_v56  ;;  %v1625_v51 = vand.u32 2147483648, %v5233_v56  ;;  %v5944_v4 = vld [vmem:[#allocation64_spill] sm:$0xff] }
 0x302   : > { %3336 = vrcp.f32 %v5265_v33  ;;  %v2401_v54 = vadd.f32 1.0, %v3111_v0  ;;  %v1578_v15 = vadd.f32 %v3333_v27, %v1577_v32  ;;  %v1690_v31 = vmul.f32 %v1689_v43, %v4885_v37 }
 0x303   : > { %v1804_v7 = vmul.f32 3.8918573e-05, %v5940_v5  ;;  %v1617_v21 = vmul.f32 %v3335_v9, %v1616_v55  ;;  %vm1620_vm2 = vweird.f32 %v3335_v9  ;;  %v1729_v29 = vadd.f32 0.112945676, %v1728_v40 }
 0x304   : > { %v1767_v38 = vadd.f32 0.014752088, %v1766_v49  ;;  %v2433_v22 = vmul.f32 %v2401_v54, %v5941_v14  ;;  %v1582_v6 = vsel %vm1581_vm1, %v3333_v27, %v1578_v15  ;;  %vm5278_vm3 = vcmp.eq.f32.partialorder %v1623_v23, 8.507059e+37  ;;  %vm1621_vm4 = vmor %vm1619_vm0, %vm1620_vm2  ;;  %v5945_v15 = vld [vmem:[#allocation30_spill] sm:$0xff] }
 0x305   : > { %v1691_v35 = vadd.f32 0.4994258, %v1690_v31  ;;  %v1587_v45 = vsel %vm5254_vm14, %v1586_v26, %v1582_v6  ;;  %v1618_v3 = vadd.f32 %v3335_v9, %v1617_v21  ;;  %v1730_v2 = vmul.f32 %v1729_v29, %v4895_v17 }
 0x306   : > { %v1768_v8 = vmul.f32 %v1767_v38, %v5935_v41  ;;  %2582 = vmatmul.f32.gmra.mxu2 %v2433_v22  ;;  %v1588_v42 = vmul.f32 %v1587_v45, %v5944_v4  ;;  %2712 = vmatmul.f32.gmra.mxu0 %v2433_v22  ;;  %v1626_v27 = vor.u32 1.1754944e-38, %v1625_v51  ;;  %v1805_v43 = vadd.f32 0.001143296, %v1804_v7  ;;  %v5946_v22 = vld [vmem:[#allocation51_spill] sm:$0xff] }
 0x307   : > { %v1692_v23 = vmul.f32 %v1691_v35, %v4885_v37  ;;  %v1622_v32 = vsel %vm1621_vm4, %v3335_v9, %v1618_v3  ;;  %v1665_v48 = vand.u32 2147483648, %v5265_v33  ;;  %v1731_v26 = vadd.f32 0.4994258, %v1730_v2 }
 0x308   : > { %v3337_v0 = vpop.eup %3336  ;;  %v1769_v40 = vadd.f32 0.112945676, %v1768_v8  ;;  %v3112_v49 = vclamps-f32 %v1588_v42, 1.0  ;;  %v1627_v55 = vsel %vm5278_vm3, %v1626_v27, %v1622_v32  ;;  %v1844_v31 = vmul.f32 3.8918573e-05, %v5945_v15  ;;  %v5947_v27 = vld [vmem:[#allocation57_spill] sm:$0xff] }
 0x309   : > { %v1655_v54 = vmul.f32 %v3337_v0, %v5265_v33  ;;  %v1628_v56 = vmul.f32 %v1627_v55, %v4987_v25  ;;  %v5296_v51 = vadd.f32 1.0, %v1692_v23  ;;  %v1732_v37 = vmul.f32 %v1731_v26, %v4895_v17 }
 0x30a   : > { %v1770_v9 = vmul.f32 %v1769_v40, %v5935_v41  ;;  %v2402_v7 = vadd.f32 1.0, %v3112_v49  ;;  %vm1659_vm5 = vweird.f32 %v5265_v33  ;;  %v1806_v29 = vmul.f32 %v1805_v43, %v5940_v5 }
 0x30b   : > { %v1656_v21 = vsub.f32 1.0, %v1655_v54  ;;  %v3113_v38 = vclamps-f32 %v1628_v56, 1.0  ;;  %vm1660_vm6 = vweird.f32 %v3337_v0  ;;  %v1663_v14 = vand.u32 2147483647, %v5265_v33 }
 0x30c   : > { %3338 = vrcp.f32 %v5296_v51  ;;  %v2434_v25 = vmul.f32 %v2402_v7, %v5946_v22  ;;  %v5305_v12 = vadd.f32 1.0, %v1732_v37  ;;  %v1845_v17 = vadd.f32 0.001143296, %v1844_v31  ;;  %vm1661_vm7 = vmor %vm1659_vm5, %vm1660_vm6 }
 0x30d   : > { %v1657_v6 = vmul.f32 %v3337_v0, %v1656_v21  ;;  %v2403_v35 = vadd.f32 1.0, %v3113_v38  ;;  %v1666_v45 = vor.u32 1.1754944e-38, %v1665_v48  ;;  %v1771_v3 = vadd.f32 0.4994258, %v1770_v9  ;;  %v5948_v48 = vld [vmem:[#allocation31_spill] sm:$0xff] }
 0x30e   : > { %v1807_v2 = vadd.f32 0.014752088, %v1806_v29  ;;  %2647 = vmatmul.f32.gmra.mxu3 %v2434_v25  ;;  %2777 = vmatmul.f32.gmra.mxu1 %v2434_v25  ;;  %v1703_v4 = vand.u32 2147483647, %v5296_v51  ;;  %v1705_v42 = vand.u32 2147483648, %v5296_v51  ;;  %3340 = vrcp.f32 %v5305_v12 }
 0x30f   : > { %v1658_v8 = vadd.f32 %v3337_v0, %v1657_v6  ;;  %v2435_v23 = vmul.f32 %v2403_v35, %v5947_v27  ;;  %v1745_v43 = vand.u32 2147483648, %v5305_v12  ;;  %v1772_v32 = vmul.f32 %v1771_v3, %v5935_v41 }
 0x310   : > { %v1884_v26 = vmul.f32 3.8918573e-05, %v5948_v48  ;;  %vm1664_vm8 = vcmp.eq.f32.partialorder %v1663_v14, 8.507059e+37  ;;  %v1808_v49 = vmul.f32 %v1807_v2, %v5940_v5  ;;  %v1846_v55 = vmul.f32 %v1845_v17, %v5945_v15 }
 0x311   : > { %v1662_v40 = vsel %vm1661_vm7, %v3337_v0, %v1658_v8  ;;  %2585 = vmatmul.f32.gmra.mxu2 %v2435_v23  ;;  %2715 = vmatmul.f32.gmra.mxu0 %v2435_v23  ;;  %vm1699_vm9 = vweird.f32 %v5296_v51  ;;  %v1743_v33 = vand.u32 2147483647, %v5305_v12  ;;  %v5321_v56 = vadd.f32 1.0, %v1772_v32  ;;  %v5953_v23 = vld [vmem:[#allocation35_spill] sm:$0xff]  ;;  %v5954_v32 = vld [vmem:[#allocation60_spill] sm:$0xff] }
 0x312   : > { %v3339_v54 = vpop.eup %3338  ;;  %v1667_v31 = vsel %vm1664_vm8, %v1666_v45, %v1662_v40  ;;  %vm5325_vm10 = vcmp.eq.f32.partialorder %v1703_v4, 8.507059e+37  ;;  %v1706_v9 = vor.u32 1.1754944e-38, %v1705_v42  ;;  %v1809_v7 = vadd.f32 0.112945676, %v1808_v49 }
 0x313   : > { %v1668_v41 = vmul.f32 %v1667_v31, %v4999_v39  ;;  %v1695_v37 = vmul.f32 %v3339_v54, %v5296_v51  ;;  %vm1739_vm11 = vweird.f32 %v5305_v12  ;;  %v1746_v21 = vor.u32 1.1754944e-38, %v1745_v43 }
 0x314   : > { %3342 = vrcp.f32 %v5321_v56  ;;  %v1885_v29 = vadd.f32 0.001143296, %v1884_v26  ;;  %v3341_v38 = vpop.eup %3340  ;;  %v1810_v25 = vmul.f32 %v1809_v7, %v5940_v5  ;;  %v1847_v39 = vadd.f32 0.014752088, %v1846_v55 }
 0x315   : > { %v3114_v14 = vclamps-f32 %v1668_v41, 1.0  ;;  %v1696_v22 = vsub.f32 1.0, %v1695_v37  ;;  %vm1700_vm12 = vweird.f32 %v3339_v54  ;;  %v1735_v6 = vmul.f32 %v3341_v38, %v5305_v12  ;;  %v5955_v37 = vld [vmem:[#allocation37_spill] sm:$0xff] }
 0x316   : > { %vm5333_vm13 = vcmp.eq.f32.partialorder %v1743_v33, 8.507059e+37  ;;  %vm1779_vm14 = vweird.f32 %v5321_v56  ;;  %v1783_v35 = vand.u32 2147483647, %v5321_v56  ;;  %v1811_v2 = vadd.f32 0.4994258, %v1810_v25  ;;  %vm1701_vm15 = vmor %vm1699_vm9, %vm1700_vm12 }
 0x317   : > { %v2404_v45 = vadd.f32 1.0, %v3114_v14  ;;  %v1697_v3 = vmul.f32 %v3339_v54, %v1696_v22  ;;  %v1848_v8 = vmul.f32 %v1847_v39, %v5945_v15  ;;  %v1736_v4 = vsub.f32 1.0, %v1735_v6 }
 0x318   : > { %v1785_v42 = vand.u32 2147483648, %v5321_v56  ;;  %v1886_v27 = vmul.f32 %v1885_v29, %v5948_v48  ;;  %v1924_v43 = vmul.f32 3.8918573e-05, %v5953_v23  ;;  %v1812_v49 = vmul.f32 %v1811_v2, %v5940_v5 }
 0x319   : > { %v2436_v26 = vmul.f32 %v2404_v45, %v5954_v32  ;;  %v1698_v40 = vadd.f32 %v3339_v54, %v1697_v3  ;;  %v1849_v55 = vadd.f32 0.112945676, %v1848_v8  ;;  %v1737_v33 = vmul.f32 %v3341_v38, %v1736_v4 }
 0x31a   : > { %v3343_v31 = vpop.eup %3342  ;;  %vm1740_vm0 = vweird.f32 %v3341_v38  ;;  %v1887_v41 = vadd.f32 0.014752088, %v1886_v27  ;;  %v1964_v7 = vmul.f32 3.8918573e-05, %v5955_v37  ;;  %v1813_v22 = vadd.f32 1.0, %v1812_v49 }
 0x31b   : > { %2650 = vmatmul.f32.gmra.mxu3 %v2436_v26  ;;  %2780 = vmatmul.f32.gmra.mxu1 %v2436_v26  ;;  %v1702_v29 = vsel %vm1701_vm15, %v3339_v54, %v1698_v40  ;;  %v1775_v14 = vmul.f32 %v3343_v31, %v5321_v56  ;;  %v1925_v25 = vadd.f32 0.001143296, %v1924_v43  ;;  %v1738_v39 = vadd.f32 %v3341_v38, %v1737_v33  ;;  %vm1741_vm1 = vmor %vm1739_vm11, %vm1740_vm0 }
 0x31c   : > { %v1707_v5 = vsel %vm5325_vm10, %v1706_v9, %v1702_v29  ;;  %v1850_v6 = vmul.f32 %v1849_v55, %v5945_v15  ;;  %v1888_v51 = vmul.f32 %v1887_v41, %v5948_v48  ;;  %vm1780_vm2 = vweird.f32 %v3343_v31 }
 0x31d   : > { %v1708_v45 = vmul.f32 %v1707_v5, %v5117_v34  ;;  %v1776_v3 = vsub.f32 1.0, %v1775_v14  ;;  %3344 = vrcp.f32 %v1813_v22  ;;  %v1742_v54 = vsel %vm1741_vm1, %v3341_v38, %v1738_v39  ;;  %vm5366_vm4 = vmor %vm1779_vm14, %vm1780_vm2  ;;  %v5960_v5 = vld [vmem:[#allocation42_spill] sm:$0xff] }
 0x31e   : > { %vm5357_vm3 = vcmp.eq.f32.partialorder %v1783_v35, 8.507059e+37  ;;  %v1851_v0 = vadd.f32 0.4994258, %v1850_v6  ;;  %v1965_v9 = vadd.f32 0.001143296, %v1964_v7  ;;  %v1747_v4 = vsel %vm5333_vm13, %v1746_v21, %v1742_v54  ;;  %v5961_v6 = vld [vmem:[#allocation47_spill] sm:$0xff] }
 0x31f   : > { %v3115_v8 = vclamps-f32 %v1708_v45, 1.0  ;;  %v1777_v27 = vmul.f32 %v3343_v31, %v1776_v3  ;;  %v1889_v43 = vadd.f32 0.112945676, %v1888_v51  ;;  %v1748_v34 = vmul.f32 %v1747_v4, %v5125_v18 }
 0x320   : > { %v1786_v38 = vor.u32 1.1754944e-38, %v1785_v42  ;;  %vm1819_vm5 = vweird.f32 %v1813_v22  ;;  %v1852_v35 = vmul.f32 %v1851_v0, %v5945_v15  ;;  %v1926_v21 = vmul.f32 %v1925_v25, %v5953_v23 }
 0x321   : > { %v2405_v32 = vadd.f32 1.0, %v3115_v8  ;;  %v1778_v26 = vadd.f32 %v3343_v31, %v1777_v27  ;;  %v1890_v40 = vmul.f32 %v1889_v43, %v5948_v48  ;;  %v3116_v17 = vclamps-f32 %v1748_v34, 1.0 }
 0x322   : > { %v1823_v49 = vand.u32 2147483647, %v1813_v22  ;;  %v5373_v55 = vadd.f32 1.0, %v1852_v35  ;;  %v1966_v18 = vmul.f32 %v1965_v9, %v5955_v37  ;;  %v1927_v15 = vadd.f32 0.014752088, %v1926_v21 }
 0x323   : > { %v3345_v56 = vpop.eup %3344  ;;  %v2437_v33 = vmul.f32 %v2405_v32, %v4961_v62  ;;  %v1782_v42 = vsel %vm5366_vm4, %v3343_v31, %v1778_v26  ;;  %v1891_v41 = vadd.f32 0.4994258, %v1890_v40  ;;  %v2406_v7 = vadd.f32 1.0, %v3116_v17  ;;  %v5968_v40 = vld [vmem:[#allocation26_spill] sm:$0xff] }
 0x324   : > { %v1787_v29 = vsel %vm5357_vm3, %v1786_v38, %v1782_v42  ;;  %v1815_v14 = vmul.f32 %v3345_v56, %v1813_v22  ;;  %v1825_v25 = vand.u32 2147483648, %v1813_v22  ;;  %vm1820_vm6 = vweird.f32 %v3345_v56 }
 0x325   : > { %2588 = vmatmul.f32.gmra.mxu2 %v2437_v33  ;;  %2718 = vmatmul.f32.gmra.mxu0 %v2437_v33  ;;  %v1788_v39 = vmul.f32 %v1787_v29, %v5960_v5  ;;  %3346 = vrcp.f32 %v5373_v55  ;;  %v2004_v62 = vmul.f32 3.8918573e-05, %v5961_v6  ;;  %v2438_v51 = vmul.f32 %v2406_v7, %v4978_v19  ;;  %vm5397_vm8 = vmor %vm1819_vm5, %vm1820_vm6 }
 0x326   : > { %v1816_v31 = vsub.f32 1.0, %v1815_v14  ;;  %v1863_v45 = vand.u32 2147483647, %v5373_v55  ;;  %v1892_v3 = vmul.f32 %v1891_v41, %v5948_v48  ;;  %v1865_v2 = vand.u32 2147483648, %v5373_v55  ;;  %v5969_v14 = vld [vmem:[#allocation44_spill] sm:$0xff] }
 0x327   : > { %v3117_v54 = vclamps-f32 %v1788_v39, 1.0  ;;  %v1928_v0 = vmul.f32 %v1927_v15, %v5953_v23  ;;  %v1967_v9 = vadd.f32 0.014752088, %v1966_v18  ;;  %2653 = vmatmul.f32.gmra.mxu3 %v2438_v51  ;;  %2783 = vmatmul.f32.gmra.mxu1 %v2438_v51  ;;  %vm5389_vm7 = vcmp.eq.f32.partialorder %v1823_v49, 8.507059e+37 }
 0x328   : > { %v1817_v8 = vmul.f32 %v3345_v56, %v1816_v31  ;;  %v1826_v27 = vor.u32 1.1754944e-38, %v1825_v25  ;;  %v5393_v19 = vadd.f32 1.0, %v1892_v3  ;;  %vm1859_vm9 = vweird.f32 %v5373_v55 }
 0x329   : > { %v2407_v43 = vadd.f32 1.0, %v3117_v54  ;;  %v1929_v34 = vadd.f32 0.112945676, %v1928_v0  ;;  %v1968_v12 = vmul.f32 %v1967_v9, %v5955_v37  ;;  %vm5403_vm10 = vcmp.eq.f32.partialorder %v1863_v45, 8.507059e+37 }
 0x32a   : > { %v1818_v38 = vadd.f32 %v3345_v56, %v1817_v8  ;;  %3348 = vrcp.f32 %v5393_v19  ;;  %v2005_v32 = vadd.f32 0.001143296, %v2004_v62  ;;  %v2044_v26 = vmul.f32 3.8918573e-05, %v4758_v11 }
 0x32b   : > { %v3347_v22 = vpop.eup %3346  ;;  %v2439_v21 = vmul.f32 %v2407_v43, %v5968_v40  ;;  %v1866_v17 = vor.u32 1.1754944e-38, %v1865_v2  ;;  %v1930_v49 = vmul.f32 %v1929_v34, %v5953_v23  ;;  %v1969_v18 = vadd.f32 0.112945676, %v1968_v12 }
 0x32c   : > { %v1822_v33 = vsel %vm5397_vm8, %v3345_v56, %v1818_v38  ;;  %v1855_v42 = vmul.f32 %v3347_v22, %v5373_v55  ;;  %vm1899_vm11 = vweird.f32 %v5393_v19  ;;  %v1903_v41 = vand.u32 2147483647, %v5393_v19 }
 0x32d   : > { %2591 = vmatmul.f32.gmra.mxu2 %v2439_v21  ;;  %v1827_v15 = vsel %vm5389_vm7, %v1826_v27, %v1822_v33  ;;  %2721 = vmatmul.f32.gmra.mxu0 %v2439_v21  ;;  %vm1860_vm12 = vweird.f32 %v3347_v22  ;;  %v1931_v7 = vadd.f32 0.4994258, %v1930_v49  ;;  %v1970_v29 = vmul.f32 %v1969_v18, %v5955_v37 }
 0x32e   : > { %v1828_v25 = vmul.f32 %v1827_v15, %v5969_v14  ;;  %v1856_v5 = vsub.f32 1.0, %v1855_v42  ;;  %v2006_v56 = vmul.f32 %v2005_v32, %v5961_v6  ;;  %v2045_v39 = vadd.f32 0.001143296, %v2044_v26  ;;  %vm5428_vm13 = vmor %vm1859_vm9, %vm1860_vm12  ;;  %v5972_v26 = vld [vmem:[#allocation29_spill] sm:$0xff] }
 0x32f   : > { %v1905_v62 = vand.u32 2147483648, %v5393_v19  ;;  %v1932_v51 = vmul.f32 %v1931_v7, %v5953_v23  ;;  %v1971_v31 = vadd.f32 0.4994258, %v1970_v29  ;;  %v2084_v45 = vmul.f32 3.8918573e-05, %v4808_v63  ;;  %v5973_v7 = vld [vmem:[#allocation49_spill] sm:$0xff] }
 0x330   : > { %v3349_v3 = vpop.eup %3348  ;;  %v3118_v54 = vclamps-f32 %v1828_v25, 1.0  ;;  %v1857_v2 = vmul.f32 %v3347_v22, %v1856_v5  ;;  %v2007_v0 = vadd.f32 0.014752088, %v2006_v56  ;;  %v2046_v9 = vmul.f32 %v2045_v39, %v4758_v11 }
 0x331   : > { %v1895_v4 = vmul.f32 %v3349_v3, %v5393_v19  ;;  %v5433_v27 = vadd.f32 1.0, %v1932_v51  ;;  %v1972_v23 = vmul.f32 %v1971_v31, %v5955_v37  ;;  %v2124_v43 = vmul.f32 3.8918573e-05, %v4854_v53 }
 0x332   : > { %v2408_v48 = vadd.f32 1.0, %v3118_v54  ;;  %v1858_v34 = vadd.f32 %v3347_v22, %v1857_v2  ;;  %vm1900_vm14 = vweird.f32 %v3349_v3  ;;  %v2008_v12 = vmul.f32 %v2007_v0, %v5961_v6 }
 0x333   : > { %v1896_v38 = vsub.f32 1.0, %v1895_v4  ;;  %3350 = vrcp.f32 %v5433_v27  ;;  %v1943_v55 = vand.u32 2147483647, %v5433_v27  ;;  %v2047_v32 = vadd.f32 0.014752088, %v2046_v9  ;;  %vm5455_vm15 = vmor %vm1899_vm11, %vm1900_vm14  ;;  %v5980_v4 = vld [vmem:[#allocation52_spill] sm:$0xff] }
 0x334   : > { %v2440_v40 = vmul.f32 %v2408_v48, %v5972_v26  ;;  %v1862_v21 = vsel %vm5428_vm13, %v3347_v22, %v1858_v34  ;;  %v1945_v37 = vand.u32 2147483648, %v5433_v27  ;;  %v5444_v49 = vadd.f32 1.0, %v1972_v23  ;;  %v5981_v34 = vld [vmem:[#allocation38_spill] sm:$0xff] }
 0x335   : > { %v5447_v18 = vadd.f32 0.0036580483, %v5152_v50  ;;  %v1867_v33 = vsel %vm5403_vm10, %v1866_v17, %v1862_v21  ;;  %v1897_v42 = vmul.f32 %v3349_v3, %v1896_v38  ;;  %v2009_v15 = vadd.f32 0.112945676, %v2008_v12 }
 0x336   : > { %2656 = vmatmul.f32.gmra.mxu3 %v2440_v40  ;;  %2786 = vmatmul.f32.gmra.mxu1 %v2440_v40  ;;  %v1868_v29 = vmul.f32 %v1867_v33, %v5973_v7  ;;  %vm5459_vm0 = vcmp.eq.f32.partialorder %v1903_v41, 8.507059e+37  ;;  %v1906_v50 = vor.u32 1.1754944e-38, %v1905_v62  ;;  %3352 = vrcp.f32 %v5444_v49 }
 0x337   : > { %v1898_v35 = vadd.f32 %v3349_v3, %v1897_v42  ;;  %vm1939_vm1 = vweird.f32 %v5433_v27  ;;  %v1946_v17 = vor.u32 1.1754944e-38, %v1945_v37  ;;  %v2010_v25 = vmul.f32 %v2009_v15, %v5961_v6 }
 0x338   : > { %v3119_v5 = vclamps-f32 %v1868_v29, 1.0  ;;  %vm5466_vm2 = vcmp.eq.f32.partialorder %v1943_v55, 8.507059e+37  ;;  %v2048_v56 = vmul.f32 %v2047_v32, %v4758_v11  ;;  %v2085_v41 = vadd.f32 0.001143296, %v2084_v45 }
 0x339   : > { %v2125_v39 = vadd.f32 0.001143296, %v2124_v43  ;;  %v3351_v51 = vpop.eup %3350  ;;  %v1902_v62 = vsel %vm5455_vm15, %v3349_v3, %v1898_v35  ;;  %vm1979_vm3 = vweird.f32 %v5444_v49  ;;  %v1983_v31 = vand.u32 2147483647, %v5444_v49 }
 0x33a   : > { %v2011_v54 = vadd.f32 0.4994258, %v2010_v25  ;;  %v2409_v2 = vadd.f32 1.0, %v3119_v5  ;;  %v1907_v0 = vsel %vm5459_vm0, %v1906_v50, %v1902_v62  ;;  %v1935_v9 = vmul.f32 %v3351_v51, %v5433_v27  ;;  %v5986_v25 = vld [vmem:[#allocation40_spill] sm:$0xff] }
 0x33b   : > { %v1985_v8 = vand.u32 2147483648, %v5444_v49  ;;  %v1908_v45 = vmul.f32 %v1907_v0, %v5980_v4  ;;  %v2049_v43 = vadd.f32 0.112945676, %v2048_v56  ;;  %v2086_v3 = vmul.f32 %v2085_v41, %v4808_v63 }
 0x33c   : > { %v2012_v23 = vmul.f32 %v2011_v54, %v5961_v6  ;;  %v3353_v48 = vpop.eup %3352  ;;  %v2441_v12 = vmul.f32 %v2409_v2, %v5981_v34  ;;  %v1936_v38 = vsub.f32 1.0, %v1935_v9  ;;  %vm1940_vm4 = vweird.f32 %v3351_v51 }
 0x33d   : > { %v2126_v55 = vmul.f32 %v2125_v39, %v4854_v53  ;;  %v3120_v32 = vclamps-f32 %v1908_v45, 1.0  ;;  %v1975_v26 = vmul.f32 %v3353_v48, %v5444_v49  ;;  %vm5485_vm5 = vcmp.eq.f32.partialorder %v1983_v31, 8.507059e+37  ;;  %vm5492_vm6 = vmor %vm1939_vm1, %vm1940_vm4  ;;  %v5989_v49 = vld [vmem:[#allocation58_spill] sm:$0xff] }
 0x33e   : > { %v2013_v21 = vadd.f32 1.0, %v2012_v23  ;;  %2594 = vmatmul.f32.gmra.mxu2 %v2441_v12  ;;  %2724 = vmatmul.f32.gmra.mxu0 %v2441_v12  ;;  %v1937_v6 = vmul.f32 %v3351_v51, %v1936_v38  ;;  %v2050_v37 = vmul.f32 %v2049_v43, %v4758_v11  ;;  %v2087_v33 = vadd.f32 0.014752088, %v2086_v3 }
 0x33f   : > { %v2127_v42 = vadd.f32 0.014752088, %v2126_v55  ;;  %v2410_v15 = vadd.f32 1.0, %v3120_v32  ;;  %v1976_v29 = vsub.f32 1.0, %v1975_v26  ;;  %vm1980_vm7 = vweird.f32 %v3353_v48  ;;  %v5992_v55 = vld [vmem:[#allocation59_spill] sm:$0xff] }
 0x340   : > { %3354 = vrcp.f32 %v2013_v21  ;;  %v1938_v22 = vadd.f32 %v3351_v51, %v1937_v6  ;;  %v1986_v14 = vor.u32 1.1754944e-38, %v1985_v8  ;;  %v2051_v50 = vadd.f32 0.4994258, %v2050_v37  ;;  %vm5504_vm8 = vmor %vm1979_vm3, %vm1980_vm7 }
 0x341   : > { %v2164_v35 = vmul.f32 3.8918573e-05, %v4907_v59  ;;  %v2442_v5 = vmul.f32 %v2410_v15, %v5986_v25  ;;  %v1977_v56 = vmul.f32 %v3353_v48, %v1976_v29  ;;  %v2088_v41 = vmul.f32 %v2087_v33, %v4808_v63  ;;  %v5993_v29 = vld [vmem:[#allocation46_spill] sm:$0xff] }
 0x342   : > { %v2128_v39 = vmul.f32 %v2127_v42, %v4854_v53  ;;  %v1942_v27 = vsel %vm5492_vm6, %v3351_v51, %v1938_v22  ;;  %v2023_v31 = vand.u32 2147483647, %v2013_v21  ;;  %v2025_v54 = vand.u32 2147483648, %v2013_v21 }
 0x343   : > { %v2052_v2 = vmul.f32 %v2051_v50, %v4758_v11  ;;  %2659 = vmatmul.f32.gmra.mxu3 %v2442_v5  ;;  %2789 = vmatmul.f32.gmra.mxu1 %v2442_v5  ;;  %v1947_v0 = vsel %vm5466_vm2, %v1946_v17, %v1942_v27  ;;  %v1978_v9 = vadd.f32 %v3353_v48, %v1977_v56  ;;  %v2089_v8 = vadd.f32 0.112945676, %v2088_v41 }
 0x344   : > { %v2129_v4 = vadd.f32 0.112945676, %v2128_v39  ;;  %v5512_v51 = vadd.f32 0.00028619796, %v5240_v57  ;;  %v1948_v45 = vmul.f32 %v1947_v0, %v5989_v49  ;;  %vm2019_vm9 = vweird.f32 %v2013_v21 }
 0x345   : > { %v5515_v23 = vadd.f32 1.0, %v2052_v2  ;;  %v1982_v11 = vsel %vm5504_vm8, %v3353_v48, %v1978_v9  ;;  %v2090_v3 = vmul.f32 %v2089_v8, %v4808_v63  ;;  %v2165_v17 = vadd.f32 0.001143296, %v2164_v35 }
 0x346   : > { %v3355_v43 = vpop.eup %3354  ;;  %v2130_v19 = vmul.f32 %v2129_v4, %v4854_v53  ;;  %v3121_v34 = vclamps-f32 %v1948_v45, 1.0  ;;  %v1987_v12 = vsel %vm5485_vm5, %v1986_v14, %v1982_v11  ;;  %vm5523_vm10 = vcmp.eq.f32.partialorder %v2023_v31, 8.507059e+37 }
 0x347   : > { %v2015_v57 = vmul.f32 %v3355_v43, %v2013_v21  ;;  %v1988_v32 = vmul.f32 %v1987_v12, %v5992_v55  ;;  %v2026_v26 = vor.u32 1.1754944e-38, %v2025_v54  ;;  %3356 = vrcp.f32 %v5515_v23  ;;  %v5996_v54 = vld [vmem:[#allocation48_spill] sm:$0xff] }
 0x348   : > { %v2204_v48 = vmul.f32 3.8918573e-05, %v4917_v46  ;;  %v2411_v6 = vadd.f32 1.0, %v3121_v34  ;;  %vm2020_vm11 = vweird.f32 %v3355_v43  ;;  %v2091_v33 = vadd.f32 0.4994258, %v2090_v3 }
 0x349   : > { %v2016_v37 = vsub.f32 1.0, %v2015_v57  ;;  %v3122_v42 = vclamps-f32 %v1988_v32, 1.0  ;;  %v2063_v40 = vand.u32 2147483647, %v5515_v23  ;;  %v2131_v15 = vadd.f32 0.4994258, %v2130_v19  ;;  %vm5536_vm12 = vmor %vm2019_vm9, %vm2020_vm11 }
 0x34a   : > { %v2166_v7 = vmul.f32 %v2165_v17, %v4907_v59  ;;  %v2443_v22 = vmul.f32 %v2411_v6, %v5993_v29  ;;  %v2092_v50 = vmul.f32 %v2091_v33, %v4808_v63  ;;  %v2244_v35 = vmul.f32 3.8918573e-05, %v5007_v52 }
 0x34b   : > { %v2017_v14 = vmul.f32 %v3355_v43, %v2016_v37  ;;  %v2412_v25 = vadd.f32 1.0, %v3122_v42  ;;  %v2132_v56 = vmul.f32 %v2131_v15, %v4854_v53  ;;  %v2205_v39 = vadd.f32 0.001143296, %v2204_v48 }
 0x34c   : > { %v2167_v41 = vadd.f32 0.014752088, %v2166_v7  ;;  %2597 = vmatmul.f32.gmra.mxu2 %v2443_v22  ;;  %2727 = vmatmul.f32.gmra.mxu0 %v2443_v22  ;;  %vm2059_vm13 = vweird.f32 %v5515_v23  ;;  %v2065_v62 = vand.u32 2147483648, %v5515_v23  ;;  %v5543_v63 = vadd.f32 1.0, %v2092_v50  ;;  %v6003_v50 = vld [vmem:[#allocation54_spill] sm:$0xff] }
 0x34d   : > { %v2018_v27 = vadd.f32 %v3355_v43, %v2017_v14  ;;  %v3357_v31 = vpop.eup %3356  ;;  %v2444_v21 = vmul.f32 %v2412_v25, %v5996_v54  ;;  %vm5546_vm14 = vcmp.eq.f32.partialorder %v2063_v40, 8.507059e+37  ;;  %v5550_v0 = vadd.f32 1.0, %v2132_v56 }
 0x34e   : > { %v2168_v53 = vmul.f32 %v2167_v41, %v4907_v59  ;;  %v2055_v8 = vmul.f32 %v3357_v31, %v5515_v23  ;;  %3358 = vrcp.f32 %v5543_v63  ;;  %v2206_v4 = vmul.f32 %v2205_v39, %v4917_v46 }
 0x34f   : > { %v2022_v9 = vsel %vm5536_vm12, %v3355_v43, %v2018_v27  ;;  %2662 = vmatmul.f32.gmra.mxu3 %v2444_v21  ;;  %2792 = vmatmul.f32.gmra.mxu1 %v2444_v21  ;;  %v2103_v45 = vand.u32 2147483647, %v5543_v63  ;;  %v2245_v11 = vadd.f32 0.001143296, %v2244_v35  ;;  %v2284_v3 = vmul.f32 3.8918573e-05, %v5019_v30 }
 0x350   : > { %v2027_v49 = vsel %vm5523_vm10, %v2026_v26, %v2022_v9  ;;  %v2056_v17 = vsub.f32 1.0, %v2055_v8  ;;  %vm2060_vm15 = vweird.f32 %v3357_v31  ;;  %3360 = vrcp.f32 %v5550_v0 }
 0x351   : > { %v2028_v19 = vmul.f32 %v2027_v49, %v4941_v58  ;;  %v2066_v43 = vor.u32 1.1754944e-38, %v2065_v62  ;;  %vm2099_vm0 = vweird.f32 %v5543_v63  ;;  %v2105_v34 = vand.u32 2147483648, %v5543_v63  ;;  %vm5569_vm2 = vmor %vm2059_vm13, %vm2060_vm15  ;;  %v6014_v49 = vld [vmem:[#allocation62_spill] sm:$0xff] }
 0x352   : > { %vm2139_vm1 = vweird.f32 %v5550_v0  ;;  %v2057_v57 = vmul.f32 %v3357_v31, %v2056_v17  ;;  %v2169_v38 = vadd.f32 0.112945676, %v2168_v53  ;;  %v2207_v55 = vadd.f32 0.014752088, %v2206_v4 }
 0x353   : > { %v3123_v12 = vclamps-f32 %v2028_v19, 1.0  ;;  %vm5573_vm3 = vcmp.eq.f32.partialorder %v2103_v45, 8.507059e+37  ;;  %v2143_v26 = vand.u32 2147483647, %v5550_v0  ;;  %v2145_v48 = vand.u32 2147483648, %v5550_v0 }
 0x354   : > { %v2246_v6 = vmul.f32 %v2245_v11, %v5007_v52  ;;  %v2285_v37 = vadd.f32 0.001143296, %v2284_v3  ;;  %v3359_v33 = vpop.eup %3358  ;;  %v2058_v40 = vadd.f32 %v3357_v31, %v2057_v57  ;;  %v2170_v23 = vmul.f32 %v2169_v38, %v4907_v59 }
 0x355   : > { %v2413_v42 = vadd.f32 1.0, %v3123_v12  ;;  %v2208_v15 = vmul.f32 %v2207_v55, %v4917_v46  ;;  %v2095_v7 = vmul.f32 %v3359_v33, %v5543_v63  ;;  %vm2100_vm4 = vweird.f32 %v3359_v33 }
 0x356   : > { %v2247_v29 = vadd.f32 0.014752088, %v2246_v6  ;;  %v2286_v22 = vmul.f32 %v2285_v37, %v5019_v30  ;;  %v3361_v14 = vpop.eup %3360  ;;  %v2062_v25 = vsel %vm5569_vm2, %v3357_v31, %v2058_v40  ;;  %v2171_v5 = vadd.f32 0.4994258, %v2170_v23  ;;  %vm5598_vm6 = vmor %vm2099_vm0, %vm2100_vm4  ;;  %v6012_v23 = vld [vmem:[#allocation71_spill] sm:$0xff] }
 0x357   : > { %v2445_v35 = vmul.f32 %v2413_v42, %v6003_v50  ;;  %v2209_v56 = vadd.f32 0.112945676, %v2208_v15  ;;  %v2067_v41 = vsel %vm5546_vm14, %v2066_v43, %v2062_v25  ;;  %v2096_v39 = vsub.f32 1.0, %v2095_v7  ;;  %v6011_v42 = vld [vmem:[#allocation66_spill] sm:$0xff] }
 0x358   : > { %v2135_v27 = vmul.f32 %v3361_v14, %v5550_v0  ;;  %vm2140_vm5 = vweird.f32 %v3361_v14  ;;  %v2068_v62 = vmul.f32 %v2067_v41, %v4975_v60  ;;  %v2172_v54 = vmul.f32 %v2171_v5, %v4907_v59  ;;  %v6010_v0 = vld [vmem:[#allocation55_spill] sm:$0xff] }
 0x359   : > { %2600 = vmatmul.f32.gmra.mxu2 %v2445_v35  ;;  %2730 = vmatmul.f32.gmra.mxu0 %v2445_v35  ;;  %v2210_v21 = vmul.f32 %v2209_v56, %v4917_v46  ;;  %v2287_v53 = vadd.f32 0.014752088, %v2286_v22  ;;  %v2097_v9 = vmul.f32 %v3359_v33, %v2096_v39  ;;  %v2248_v8 = vmul.f32 %v2247_v29, %v5007_v52  ;;  %vm5611_vm8 = vmor %vm2139_vm1, %vm2140_vm5 }
 0x35a   : > { %v2136_v31 = vsub.f32 1.0, %v2135_v27  ;;  %v2324_v2 = vmul.f32 3.8918573e-05, %v5102_v20  ;;  %v3124_v4 = vclamps-f32 %v2068_v62, 1.0  ;;  %v2106_v60 = vor.u32 1.1754944e-38, %v2105_v34 }
 0x35b   : > { %v5602_v45 = vadd.f32 1.0, %v2172_v54  ;;  %v2211_v59 = vadd.f32 0.4994258, %v2210_v21  ;;  %v2098_v11 = vadd.f32 %v3359_v33, %v2097_v9  ;;  %vm5604_vm7 = vcmp.eq.f32.partialorder %v2143_v26, 8.507059e+37  ;;  %v6013_v54 = vld [vmem:[#allocation61_spill] sm:$0xff] }
 0x35c   : > { %v2137_v3 = vmul.f32 %v3361_v14, %v2136_v31  ;;  %v2249_v17 = vadd.f32 0.112945676, %v2248_v8  ;;  %v2414_v43 = vadd.f32 1.0, %v3124_v4  ;;  %v2146_v12 = vor.u32 1.1754944e-38, %v2145_v48 }
 0x35d   : > { %3362 = vrcp.f32 %v5602_v45  ;;  %v2288_v34 = vmul.f32 %v2287_v53, %v5019_v30  ;;  %v2102_v57 = vsel %vm5598_vm6, %v3359_v33, %v2098_v11  ;;  %v2212_v55 = vmul.f32 %v2211_v59, %v4917_v46 }
 0x35e   : > { %v2138_v38 = vadd.f32 %v3361_v14, %v2137_v3  ;;  %v2325_v32 = vadd.f32 0.001143296, %v2324_v2  ;;  %v2317_v26 = vmul.f32 %v5447_v18, %v5102_v20  ;;  %v2446_v6 = vmul.f32 %v2414_v43, %v6010_v0 }
 0x35f   : > { %v2107_v37 = vsel %vm5573_vm3, %v2106_v60, %v2102_v57  ;;  %v2250_v48 = vmul.f32 %v2249_v17, %v5007_v52  ;;  %v5628_v40 = vmul.f32 %v5139_v16, %v6011_v42  ;;  %v5633_v15 = vadd.f32 1.0, %v2212_v55 }
 0x360   : > { %v2108_v33 = vmul.f32 %v2107_v37, %v6012_v23  ;;  %v2142_v46 = vsel %vm5611_vm8, %v3361_v14, %v2138_v38  ;;  %v2355_v18 = vmul.f32 %v5512_v51, %v5154_v1  ;;  %2665 = vmatmul.f32.gmra.mxu3 %v2446_v6  ;;  %2795 = vmatmul.f32.gmra.mxu1 %v2446_v6  ;;  %v2289_v29 = vadd.f32 0.112945676, %v2288_v34 }
 0x361   : > { %v2147_v58 = vsel %vm5604_vm7, %v2146_v12, %v2142_v46  ;;  %v2251_v7 = vadd.f32 0.4994258, %v2250_v48  ;;  %3364 = vrcp.f32 %v5633_v15  ;;  %v2326_v50 = vmul.f32 %v2325_v32, %v5102_v20  ;;  %v2455_v46 = vld [vmem:[#allocation3 + $0xa8] sm:$0xff] }
 0x362   : > { %v3125_v22 = vclamps-f32 %v2108_v33, 1.0  ;;  %v2148_v16 = vmul.f32 %v2147_v58, %v5113_v13  ;;  %v2318_v35 = vadd.f32 0.05243302, %v2317_v26  ;;  %vm2179_vm9 = vweird.f32 %v5602_v45  ;;  %v2568_v33 = vpop.f32.mrf.mxu2 }
 0x363   : > { %v3363_v14 = vpop.eup %3362  ;;  %v2252_v51 = vmul.f32 %v2251_v7, %v5007_v52  ;;  %v2290_v25 = vmul.f32 %v2289_v29, %v5019_v30  ;;  %v2183_v39 = vand.u32 2147483647, %v5602_v45  ;;  %v2185_v13 = vand.u32 2147483648, %v5602_v45 }
 0x364   : > { %v2415_v5 = vadd.f32 1.0, %v3125_v22  ;;  %v3126_v56 = vclamps-f32 %v2148_v16, 1.0  ;;  %v2175_v41 = vmul.f32 %v3363_v14, %v5602_v45  ;;  %vm2180_vm10 = vweird.f32 %v3363_v14 }
 0x365   : > { %v5648_v27 = vadd.f32 1.0, %v2252_v51  ;;  %v2291_v62 = vadd.f32 0.4994258, %v2290_v25  ;;  %v2327_v31 = vadd.f32 0.014752088, %v2326_v50  ;;  %v5655_v8 = vmul.f32 %v2318_v35, %v5102_v20  ;;  %vm5664_vm11 = vmor %vm2179_vm9, %vm2180_vm10 }
 0x366   : > { %v2447_v21 = vmul.f32 %v2415_v5, %v6013_v54  ;;  %v2416_v53 = vadd.f32 1.0, %v3126_v56  ;;  %v2176_v9 = vsub.f32 1.0, %v2175_v41  ;;  %v5652_v52 = vadd.f32 1.1283791, %v5147_v61 }
 0x367   : > { %v2356_v2 = vadd.f32 0.0036580483, %v2355_v18  ;;  %3366 = vrcp.f32 %v5648_v27  ;;  %v3365_v4 = vpop.eup %3364  ;;  %v2292_v11 = vmul.f32 %v2291_v62, %v5019_v30  ;;  %v2364_v3 = vmul.f32 3.8918573e-05, %v5154_v1 }
 0x368   : > { %2603 = vmatmul.f32.gmra.mxu2 %v2447_v21  ;;  %v2448_v60 = vmul.f32 %v2416_v53, %v6014_v49  ;;  %2733 = vmatmul.f32.gmra.mxu0 %v2447_v21  ;;  %v2177_v59 = vmul.f32 %v3363_v14, %v2176_v9  ;;  %vm5668_vm12 = vcmp.eq.f32.partialorder %v2183_v39, 8.507059e+37  ;;  %v2186_v17 = vor.u32 1.1754944e-38, %v2185_v13  ;;  %v6027_v53 = vld [vmem:[#allocation69_spill] sm:$0xff] }
 0x369   : > { %v2215_v43 = vmul.f32 %v3365_v4, %v5633_v15  ;;  %v2223_v63 = vand.u32 2147483647, %v5633_v15  ;;  %v2225_v12 = vand.u32 2147483648, %v5633_v15  ;;  %v5675_v34 = vadd.f32 1.0, %v2292_v11 }
 0x36a   : > { %2668 = vmatmul.f32.gmra.mxu3 %v2448_v60  ;;  %2798 = vmatmul.f32.gmra.mxu1 %v2448_v60  ;;  %v2178_v30 = vadd.f32 %v3363_v14, %v2177_v59  ;;  %v2328_v45 = vmul.f32 %v2327_v31, %v5102_v20  ;;  %vm2219_vm13 = vweird.f32 %v5633_v15  ;;  %vm2220_vm14 = vweird.f32 %v3365_v4 }
 0x36b   : > { %v2216_v57 = vsub.f32 1.0, %v2215_v43  ;;  %v2365_v38 = vadd.f32 0.001143296, %v2364_v3  ;;  %v2357_v55 = vmul.f32 %v2356_v2, %v5154_v1  ;;  %v2263_v26 = vand.u32 2147483647, %v5648_v27  ;;  %vm5688_vm15 = vmor %vm2219_vm13, %vm2220_vm14 }
 0x36c   : > { %v2182_v32 = vsel %vm5664_vm11, %v3363_v14, %v2178_v30  ;;  %3368 = vrcp.f32 %v5675_v34  ;;  %v2265_v48 = vand.u32 2147483648, %v5648_v27  ;;  %v2329_v42 = vadd.f32 0.112945676, %v2328_v45  ;;  %v6031_v45 = vld [vmem:[#allocation70_spill] sm:$0xff] }
 0x36d   : > { %v3367_v0 = vpop.eup %3366  ;;  %v2187_v6 = vsel %vm5668_vm12, %v2186_v17, %v2182_v32  ;;  %v2217_v37 = vmul.f32 %v3365_v4, %v2216_v57  ;;  %vm5692_vm0 = vcmp.eq.f32.partialorder %v2223_v63, 8.507059e+37  ;;  %v2226_v15 = vor.u32 1.1754944e-38, %v2225_v12  ;;  %v6028_v17 = vld [vmem:[#allocation68_spill] sm:$0xff] }
 0x36e   : > { %v2188_v23 = vmul.f32 %v2187_v6, %v5128_v44  ;;  %v2255_v18 = vmul.f32 %v3367_v0, %v5648_v27  ;;  %vm2259_vm1 = vweird.f32 %v5648_v27  ;;  %v2330_v7 = vmul.f32 %v2329_v42, %v5102_v20  ;;  %v2456_v6 = vld [vmem:[#allocation3 + $0x68] sm:$0xff] }
 0x36f   : > { %v2218_v58 = vadd.f32 %v3365_v4, %v2217_v37  ;;  %v2366_v29 = vmul.f32 %v2365_v38, %v5154_v1  ;;  %vm2260_vm2 = vweird.f32 %v3367_v0  ;;  %vm5700_vm3 = vcmp.eq.f32.partialorder %v2263_v26, 8.507059e+37 }
 0x370   : > { %v3127_v22 = vclamps-f32 %v2188_v23, 1.0  ;;  %v2256_v44 = vsub.f32 1.0, %v2255_v18  ;;  %v2266_v14 = vor.u32 1.1754944e-38, %v2265_v48  ;;  %v2331_v35 = vadd.f32 0.4994258, %v2330_v7  ;;  %vm5712_vm5 = vmor %vm2259_vm1, %vm2260_vm2 }
 0x371   : > { %v2222_v50 = vsel %vm5688_vm15, %v3365_v4, %v2218_v58  ;;  %v2367_v51 = vadd.f32 0.014752088, %v2366_v29  ;;  %vm2299_vm4 = vweird.f32 %v5675_v34  ;;  %v2303_v54 = vand.u32 2147483647, %v5675_v34 }
 0x372   : > { %v3369_v25 = vpop.eup %3368  ;;  %v2417_v5 = vadd.f32 1.0, %v3127_v22  ;;  %v2227_v56 = vsel %vm5692_vm0, %v2226_v15, %v2222_v50  ;;  %v2257_v41 = vmul.f32 %v3367_v0, %v2256_v44  ;;  %v2332_v21 = vmul.f32 %v2331_v35, %v5102_v20  ;;  %v2633_v15 = vpop.f32.mrf.mxu3  ;;  %v6035_v50 = vld [vmem:[#allocation67_spill] sm:$0xff] }
 0x373   : > { %v2228_v39 = vmul.f32 %v2227_v56, %v5133_v28  ;;  %v2295_v62 = vmul.f32 %v3369_v25, %v5675_v34  ;;  %v2305_v2 = vand.u32 2147483648, %v5675_v34  ;;  %v2368_v4 = vmul.f32 %v2367_v51, %v5154_v1  ;;  %v2763_v34 = vpop.f32.mrf.mxu1 }
 0x374   : > { %v2449_v9 = vmul.f32 %v2417_v5, %v6027_v53  ;;  %v2258_v31 = vadd.f32 %v3367_v0, %v2257_v41  ;;  %vm2300_vm6 = vweird.f32 %v3369_v25  ;;  %v5722_v27 = vadd.f32 1.0, %v2332_v21 }
 0x375   : > { %v3128_v28 = vclamps-f32 %v2228_v39, 1.0  ;;  %v2296_v49 = vsub.f32 1.0, %v2295_v62  ;;  %v2320_v60 = vadd.f32 0.18741608, %v5655_v8  ;;  %v2369_v11 = vadd.f32 0.112945676, %v2368_v4  ;;  %vm5735_vm7 = vmor %vm2299_vm4, %vm2300_vm6 }
 0x376   : > { %2606 = vmatmul.f32.gmra.mxu2 %v2449_v9  ;;  %2736 = vmatmul.f32.gmra.mxu0 %v2449_v9  ;;  %v2262_v59 = vsel %vm5712_vm5, %v3367_v0, %v2258_v31  ;;  %3370 = vrcp.f32 %v5722_v27  ;;  %v2283_v43 = vmul.f32 %v5652_v52, %v6028_v17  ;;  %v2358_v63 = vadd.f32 0.05243302, %v2357_v55  ;;  %v6034_v52 = vld [vmem:[#allocation65_spill] sm:$0xff]  ;;  %v2458_v31 = vld [vmem:[#allocation3 + $0xc0] sm:$0xff] }
 0x377   : > { %v2418_v3 = vadd.f32 1.0, %v3128_v28  ;;  %v2267_v61 = vsel %vm5700_vm3, %v2266_v14, %v2262_v59  ;;  %v2297_v19 = vmul.f32 %v3369_v25, %v2296_v49  ;;  %v2306_v12 = vor.u32 1.1754944e-38, %v2305_v2  ;;  %v2571_v59 = vpop.f32.mrf.mxu2 }
 0x378   : > { %v2268_v30 = vmul.f32 %v2267_v61, %v5628_v40  ;;  %vm5740_vm8 = vcmp.eq.f32.partialorder %v2303_v54, 8.507059e+37  ;;  %v2370_v26 = vmul.f32 %v2369_v11, %v5154_v1  ;;  %v1075_v55 = vmul.f32 0.5, %v6034_v52  ;;  %v2698_v40 = vpop.f32.mrf.mxu0  ;;  %v2457_v11 = vld [vmem:[#allocation3 + $0x10] sm:$0xff] }
 0x379   : > { %v2450_v57 = vmul.f32 %v2418_v3, %v6031_v45  ;;  %v2298_v38 = vadd.f32 %v3369_v25, %v2297_v19  ;;  %v2321_v37 = vmul.f32 %v2320_v60, %v5102_v20  ;;  %v2764_v23 = vadd.f32 %v2763_v34, %v2698_v40 }
 0x37a   : > { %v3129_v0 = vclamps-f32 %v2268_v30, 1.0  ;;  %v2371_v42 = vadd.f32 0.4994258, %v2370_v26  ;;  %v2634_v7 = vadd.f32 %v2633_v15, %v2568_v33  ;;  %v2359_v22 = vmul.f32 %v2358_v63, %v5154_v1  ;;  %v2636_v3 = vpop.f32.mrf.mxu3 }
 0x37b   : > { %2671 = vmatmul.f32.gmra.mxu3 %v2450_v57  ;;  %2801 = vmatmul.f32.gmra.mxu1 %v2450_v57  ;;  %v2302_v48 = vsel %vm5735_vm7, %v3369_v25, %v2298_v38  ;;  %v2812_v16 = vadd.f32 %v2764_v23, %v2456_v6  ;;  %v1076_v14 = vmul.f32 0.5, %v6035_v50  ;;  %v2322_v5 = vadd.f32 1.1283791, %v2321_v37  ;;  %v2766_v2 = vpop.f32.mrf.mxu1  ;;  %v2459_v37 = vld [vmem:[#allocation3 + $0xc8] sm:$0xff] }
 0x37c   : > { %v2419_v18 = vadd.f32 1.0, %v3129_v0  ;;  %v2307_v58 = vsel %vm5740_vm8, %v2306_v12, %v2302_v48  ;;  %v3371_v29 = vpop.eup %3370  ;;  %v2372_v20 = vmul.f32 %v2371_v42, %v5154_v1  ;;  %v2811_v25 = vadd.f32 %v2634_v7, %v2455_v46  ;;  %v2460_v0 = vld [vmem:[#allocation3 + $0xb0] sm:$0xff] }
 0x37d   : > { %v2308_v44 = vmul.f32 %v2307_v58, %v2283_v43  ;;  %v2335_v51 = vmul.f32 %v3371_v29, %v5722_v27  ;;  %v2345_v41 = vand.u32 2147483648, %v5722_v27  ;;  %2844 = vst [vmem:[#allocation3 + $0x68] sm:$0xff] %v2812_v16  ;;  %vm2339_vm9 = vweird.f32 %v5722_v27  ;;  %v2462_v16 = vld [vmem:[#allocation3 + $0x38] sm:$0xff] }
 0x37e   : > { %v2451_v35 = vmul.f32 %v2419_v18, %v1075_v55  ;;  %v5756_v39 = vadd.f32 1.0, %v2372_v20  ;;  %vm2340_vm10 = vweird.f32 %v3371_v29  ;;  %v2343_v62 = vand.u32 2147483647, %v5722_v27  ;;  %2843 = vst [vmem:[#allocation3 + $0xa8] sm:$0xff] %v2811_v25 }
 0x37f   : > { %v3130_v56 = vclamps-f32 %v2308_v44, 1.0  ;;  %v2336_v13 = vsub.f32 1.0, %v2335_v51  ;;  %v2360_v54 = vadd.f32 0.18741608, %v2359_v22  ;;  %vm5761_vm11 = vmor %vm2339_vm9, %vm2340_vm10  ;;  %v2346_v49 = vor.u32 1.1754944e-38, %v2345_v41  ;;  %v2574_v34 = vpop.f32.mrf.mxu2 }
 0x380   : > { %2609 = vmatmul.f32.gmra.mxu2 %v2451_v35  ;;  %2739 = vmatmul.f32.gmra.mxu0 %v2451_v35  ;;  %3372 = vrcp.f32 %v5756_v39  ;;  %v2701_v9 = vpop.f32.mrf.mxu0  ;;  %v2323_v27 = vmul.f32 %v2322_v5, %v5073_v10  ;;  %vm2344_vm12 = vcmp.eq.f32.partialorder %v2343_v62, 8.507059e+37  ;;  %v2637_v19 = vadd.f32 %v2636_v3, %v2571_v59  ;;  %v2461_v35 = vld [vmem:[#allocation3 + $0x70] sm:$0xff]  ;;  %v2466_v59 = vld [vmem:[#allocation3 + $0x88] sm:$0xff] }
 0x381   : > { %v2420_v21 = vadd.f32 1.0, %v3130_v56  ;;  %v2337_v53 = vmul.f32 %v3371_v29, %v2336_v13  ;;  %v2767_v60 = vadd.f32 %v2766_v2, %v2701_v9  ;;  %v2361_v17 = vmul.f32 %v2360_v54, %v5154_v1  ;;  %v2463_v2 = vld [vmem:[#allocation3 + $0x48] sm:$0xff] }
 0x382   : > { %v2813_v30 = vadd.f32 %v2637_v19, %v2457_v11  ;;  %v1077_v10 = vmul.f32 0.5, %v5055_v47  ;;  %vm2379_vm13 = vweird.f32 %v5756_v39  ;;  %v2385_v1 = vand.u32 2147483648, %v5756_v39  ;;  %v2639_v48 = vpop.f32.mrf.mxu3 }
 0x383   : > { %v2452_v4 = vmul.f32 %v2420_v21, %v1076_v14  ;;  %v2338_v61 = vadd.f32 %v3371_v29, %v2337_v53  ;;  %v2814_v43 = vadd.f32 %v2767_v60, %v2458_v31  ;;  %v2362_v38 = vadd.f32 1.1283791, %v2361_v17  ;;  %v2769_v40 = vpop.f32.mrf.mxu1  ;;  %v2464_v21 = vld [vmem:[#allocation3 + $0xf8] sm:$0xff] }
 0x384   : > { %2845 = vst [vmem:[#allocation3 + $0x10] sm:$0xff] %v2813_v30  ;;  %v2383_v52 = vand.u32 2147483647, %v5756_v39  ;;  %v2640_v47 = vadd.f32 %v2639_v48, %v2574_v34  ;;  %v2386_v46 = vor.u32 1.1754944e-38, %v2385_v1  ;;  %v1078_v25 = vmul.f32 0.5, %v5091_v24  ;;  %v2469_v34 = vld [vmem:[#allocation3 + $0x30] sm:$0xff] }
 0x385   : > { %2674 = vmatmul.f32.gmra.mxu3 %v2452_v4  ;;  %2804 = vmatmul.f32.gmra.mxu1 %v2452_v4  ;;  %v2342_v63 = vsel %vm5761_vm11, %v3371_v29, %v2338_v61  ;;  %2846 = vst [vmem:[#allocation3 + $0xc0] sm:$0xff] %v2814_v43  ;;  %v2363_v33 = vmul.f32 %v2362_v38, %v5107_v36  ;;  %v2465_v61 = vld [vmem:[#allocation3 + $0x78] sm:$0xff] }
 0x386   : > { %v3373_v8 = vpop.eup %3372  ;;  %v2347_v12 = vsel %vm2344_vm12, %v2346_v49, %v2342_v63  ;;  %vm2384_vm0 = vcmp.eq.f32.partialorder %v2383_v52, 8.507059e+37  ;;  %v2815_v7 = vadd.f32 %v2640_v47, %v2459_v37 }
 0x387   : > { %v2348_v45 = vmul.f32 %v2347_v12, %v2323_v27  ;;  %v2375_v57 = vmul.f32 %v3373_v8, %v5756_v39  ;;  %vm2380_vm14 = vweird.f32 %v3373_v8  ;;  %v2577_v14 = vpop.f32.mrf.mxu2 }
 0x388   : > { %v2704_v55 = vpop.f32.mrf.mxu0  ;;  %vm2381_vm15 = vmor %vm2379_vm13, %vm2380_vm14  ;;  %2847 = vst [vmem:[#allocation3 + $0xc8] sm:$0xff] %v2815_v7 }
 0x389   : > { %v3131_v32 = vclamps-f32 %v2348_v45, 1.0  ;;  %v2376_v26 = vsub.f32 1.0, %v2375_v57  ;;  %v2770_v6 = vadd.f32 %v2769_v40, %v2704_v55  ;;  %v2470_v55 = vld [vmem:[#allocation3 + $0x50] sm:$0xff] }
 0x38a   : > { %v2642_v51 = vpop.f32.mrf.mxu3 }
 0x38b   : > { %v2421_v42 = vadd.f32 1.0, %v3131_v32  ;;  %v2377_v23 = vmul.f32 %v3373_v8, %v2376_v26  ;;  %v2816_v15 = vadd.f32 %v2770_v6, %v2460_v0  ;;  %v2772_v50 = vpop.f32.mrf.mxu1  ;;  %v2643_v56 = vadd.f32 %v2642_v51, %v2577_v14  ;;  %v2473_v51 = vld [vmem:[#allocation3 + $0xd8] sm:$0xff] }
 0x38d   : > { %v2453_v18 = vmul.f32 %v2421_v42, %v1077_v10  ;;  %v2378_v58 = vadd.f32 %v3373_v8, %v2377_v23  ;;  %2848 = vst [vmem:[#allocation3 + $0xb0] sm:$0xff] %v2816_v15  ;;  %v2817_v13 = vadd.f32 %v2643_v56, %v2461_v35  ;;  %v2467_v10 = vld [vmem:[#allocation3 + $0xf0] sm:$0xff] }
 0x38f   : > { %2612 = vmatmul.f32.gmra.mxu2 %v2453_v18  ;;  %v2382_v29 = vsel %vm2381_vm15, %v3373_v8, %v2378_v58  ;;  %2742 = vmatmul.f32.gmra.mxu0 %v2453_v18  ;;  %2849 = vst [vmem:[#allocation3 + $0x70] sm:$0xff] %v2817_v13  ;;  %v2580_v31 = vpop.f32.mrf.mxu2  ;;  %v2468_v8 = vld [vmem:[#allocation3 + $0x18] sm:$0xff] }
 0x390   : > { %v2387_v22 = vsel %vm2384_vm0, %v2386_v46, %v2382_v29  ;;  %v2707_v20 = vpop.f32.mrf.mxu0  ;;  %v2471_v58 = vld [vmem:[#allocation3 + $0xb8] sm:$0xff] }
 0x391   : > { %v2388_v44 = vmul.f32 %v2387_v22, %v2363_v33  ;;  %v2773_v36 = vadd.f32 %v2772_v50, %v2707_v20  ;;  %v2472_v33 = vld [vmem:[#allocation3 + $0xd0] sm:$0xff] }
 0x392   : > { %v2645_v4 = vpop.f32.mrf.mxu3 }
 0x393   : > { %v3132_v5 = vclamps-f32 %v2388_v44, 1.0  ;;  %v2818_v41 = vadd.f32 %v2773_v36, %v2462_v16  ;;  %v2775_v53 = vpop.f32.mrf.mxu1  ;;  %v2646_v28 = vadd.f32 %v2645_v4, %v2580_v31  ;;  %v2474_v16 = vld [vmem:[#allocation3 + $0x58] sm:$0xff] }
 0x395   : > { %v2422_v39 = vadd.f32 1.0, %v3132_v5  ;;  %2850 = vst [vmem:[#allocation3 + $0x38] sm:$0xff] %v2818_v41  ;;  %v2819_v24 = vadd.f32 %v2646_v28, %v2463_v2  ;;  %v2478_v28 = vld [vmem:[#allocation3] sm:$0xff] }
 0x397   : > { %v2454_v62 = vmul.f32 %v2422_v39, %v1078_v25  ;;  %2851 = vst [vmem:[#allocation3 + $0x48] sm:$0xff] %v2819_v24  ;;  %v2583_v27 = vpop.f32.mrf.mxu2  ;;  %v2476_v39 = vld [vmem:[#allocation3 + $0x40] sm:$0xff] }
 0x398   : > { %v2710_v54 = vpop.f32.mrf.mxu0 }
 0x399   : > { %2677 = vmatmul.f32.gmra.mxu3 %v2454_v62  ;;  %2807 = vmatmul.f32.gmra.mxu1 %v2454_v62  ;;  %v2776_v9 = vadd.f32 %v2775_v53, %v2710_v54  ;;  %v2475_v53 = vld [vmem:[#allocation3 + $0x80] sm:$0xff] }
 0x39a   : > { %v2648_v19 = vpop.f32.mrf.mxu3 }
 0x39b   : > { %v2820_v49 = vadd.f32 %v2776_v9, %v2464_v21  ;;  %v2778_v11 = vpop.f32.mrf.mxu1  ;;  %v2649_v17 = vadd.f32 %v2648_v19, %v2583_v27 }
 0x39d   : > { %2852 = vst [vmem:[#allocation3 + $0xf8] sm:$0xff] %v2820_v49  ;;  %v2821_v63 = vadd.f32 %v2649_v17, %v2465_v61  ;;  %v2480_v17 = vld [vmem:[#allocation3 + $0xe8] sm:$0xff] }
 0x39f   : > { %2853 = vst [vmem:[#allocation3 + $0x78] sm:$0xff] %v2821_v63  ;;  %v2586_v57 = vpop.f32.mrf.mxu2 }
 0x3a0   : > { %v2713_v60 = vpop.f32.mrf.mxu0 }
 0x3a1   : > { %v2779_v3 = vadd.f32 %v2778_v11, %v2713_v60  ;;  %v2477_v11 = vld [vmem:[#allocation3 + $0x28] sm:$0xff] }
 0x3a2   : > { %v2651_v38 = vpop.f32.mrf.mxu3 }
 0x3a3   : > { %v2822_v43 = vadd.f32 %v2779_v3, %v2466_v59  ;;  %v2781_v12 = vpop.f32.mrf.mxu1  ;;  %v2652_v1 = vadd.f32 %v2651_v38, %v2586_v57 }
 0x3a5   : > { %2854 = vst [vmem:[#allocation3 + $0x88] sm:$0xff] %v2822_v43  ;;  %v2823_v26 = vadd.f32 %v2652_v1, %v2467_v10  ;;  %v2482_v1 = vld [vmem:[#allocation3 + $0x20] sm:$0xff] }
 0x3a7   : > { %2855 = vst [vmem:[#allocation3 + $0xf0] sm:$0xff] %v2823_v26 }
 0x3a8   : > { %v2716_v30 = vpop.f32.mrf.mxu0  ;;  %v2589_v6 = vpop.f32.mrf.mxu2 }
 0x3a9   : > { %v2782_v45 = vadd.f32 %v2781_v12, %v2716_v30  ;;  %v2479_v12 = vld [vmem:[#allocation3 + $0x90] sm:$0xff] }
 0x3aa   : > { %v2654_v37 = vpop.f32.mrf.mxu3 }
 0x3ab   : > { %v2824_v32 = vadd.f32 %v2782_v45, %v2468_v8  ;;  %v2784_v0 = vpop.f32.mrf.mxu1  ;;  %v2655_v48 = vadd.f32 %v2654_v37, %v2589_v6 }
 0x3ad   : > { %2856 = vst [vmem:[#allocation3 + $0x18] sm:$0xff] %v2824_v32  ;;  %v2825_v23 = vadd.f32 %v2655_v48, %v2469_v34  ;;  %v2484_v48 = vld [vmem:[#allocation3 + $0xe0] sm:$0xff] }
 0x3af   : > { %2857 = vst [vmem:[#allocation3 + $0x30] sm:$0xff] %v2825_v23 }
 0x3b0   : > { %v2719_v52 = vpop.f32.mrf.mxu0  ;;  %v2592_v18 = vpop.f32.mrf.mxu2 }
 0x3b1   : > { %v2785_v40 = vadd.f32 %v2784_v0, %v2719_v52  ;;  %v2481_v0 = vld [vmem:[#allocation3 + $0xa0] sm:$0xff] }
 0x3b3   : > { %v2826_v42 = vadd.f32 %v2785_v40, %v2470_v55  ;;  %v2787_v46 = vpop.f32.mrf.mxu1 }
 0x3b5   : > { %2858 = vst [vmem:[#allocation3 + $0x50] sm:$0xff] %v2826_v42 }
 0x3b8   : > { %v2722_v47 = vpop.f32.mrf.mxu0 }
 0x3b9   : > { %v2788_v15 = vadd.f32 %v2787_v46, %v2722_v47  ;;  %v2657_v7 = vpop.f32.mrf.mxu3  ;;  %v2483_v46 = vld [vmem:[#allocation3 + $0x8] sm:$0xff] }
 0x3ba   : > { %v2658_v29 = vadd.f32 %v2657_v7, %v2592_v18 }
 0x3bb   : > { %v2828_v22 = vadd.f32 %v2788_v15, %v2472_v33 }
 0x3bc   : > { %v2827_v44 = vadd.f32 %v2658_v29, %v2471_v58  ;;  %v2486_v29 = vld [vmem:[#allocation3 + $0x98] sm:$0xff] }
 0x3bd   : > { %2860 = vst [vmem:[#allocation3 + $0xd0] sm:$0xff] %v2828_v22 }
 0x3be   : > { %2859 = vst [vmem:[#allocation3 + $0xb8] sm:$0xff] %v2827_v44 }
 0x3c0   : > { %v2725_v20 = vpop.f32.mrf.mxu0  ;;  %v2790_v50 = vpop.f32.mrf.mxu1 }
 0x3c1   : > { %v2791_v36 = vadd.f32 %v2790_v50, %v2725_v20  ;;  %v2595_v35 = vpop.f32.mrf.mxu2  ;;  %v2485_v50 = vld [vmem:[#allocation3 + $0x60] sm:$0xff] }
 0x3c3   : > { %v2830_v14 = vadd.f32 %v2791_v36, %v2474_v16 }
 0x3c5   : > { %2862 = vst [vmem:[#allocation3 + $0x58] sm:$0xff] %v2830_v14 }
 0x3c6   : > { %v2660_v25 = vpop.f32.mrf.mxu3 }
 0x3c7   : > { %v2661_v5 = vadd.f32 %v2660_v25, %v2595_v35 }
 0x3c9   : > { %v2829_v56 = vadd.f32 %v2661_v5, %v2473_v51  ;;  %v2728_v41 = vpop.f32.mrf.mxu0 }
 0x3cb   : > { %2861 = vst [vmem:[#allocation3 + $0xd8] sm:$0xff] %v2829_v56 }
 0x3cc   : > { %v2793_v13 = vpop.f32.mrf.mxu1 }
 0x3cd   : > { %v2794_v62 = vadd.f32 %v2793_v13, %v2728_v41 }
 0x3cf   : > { %v2832_v54 = vadd.f32 %v2794_v62, %v2476_v39  ;;  %v2598_v21 = vpop.f32.mrf.mxu2 }
 0x3d1   : > { %2864 = vst [vmem:[#allocation3 + $0x40] sm:$0xff] %v2832_v54 }
 0x3d2   : > { %v2663_v9 = vpop.f32.mrf.mxu3 }
 0x3d3   : > { %v2664_v31 = vadd.f32 %v2663_v9, %v2598_v21 }
 0x3d5   : > { %v2831_v2 = vadd.f32 %v2664_v31, %v2475_v53 }
 0x3d6   : > { %v2731_v4 = vpop.f32.mrf.mxu0 }
 0x3d7   : > { %2863 = vst [vmem:[#allocation3 + $0x80] sm:$0xff] %v2831_v2 }
 0x3dc   : > { %v2601_v59 = vpop.f32.mrf.mxu2 }
 0x3dd   : > { %v2796_v49 = vpop.f32.mrf.mxu1 }
 0x3de   : > { %v2797_v24 = vadd.f32 %v2796_v49, %v2731_v4 }
 0x3e0   : > { %v2834_v60 = vadd.f32 %v2797_v24, %v2478_v28 }
 0x3e2   : > { %2866 = vst [vmem:[#allocation3] sm:$0xff] %v2834_v60 }
 0x3e3   : > { %v2666_v3 = vpop.f32.mrf.mxu3 }
 0x3e4   : > { %v2667_v27 = vadd.f32 %v2666_v3, %v2601_v59 }
 0x3e5   : > { %v2734_v61 = vpop.f32.mrf.mxu0 }
 0x3e6   : > { %v2833_v19 = vadd.f32 %v2667_v27, %v2477_v11 }
 0x3e7   : > { %v2799_v43 = vpop.f32.mrf.mxu1 }
 0x3e8   : > { %v2800_v63 = vadd.f32 %v2799_v43, %v2734_v61  ;;  %2865 = vst [vmem:[#allocation3 + $0x28] sm:$0xff] %v2833_v19 }
 0x3ea   : > { %v2836_v30 = vadd.f32 %v2800_v63, %v2480_v17 }
 0x3eb   : > { %v2604_v8 = vpop.f32.mrf.mxu2 }
 0x3ec   : > { %2868 = vst [vmem:[#allocation3 + $0xe8] sm:$0xff] %v2836_v30 }
 0x3ed   : > { %v2669_v45 = vpop.f32.mrf.mxu3 }
 0x3ee   : > { %v2670_v57 = vadd.f32 %v2669_v45, %v2604_v8 }
 0x3f0   : > { %v2835_v10 = vadd.f32 %v2670_v57, %v2479_v12 }
 0x3f2   : > { %2867 = vst [vmem:[#allocation3 + $0x90] sm:$0xff] %v2835_v10 }
 0x3f3   : > { %v2737_v38 = vpop.f32.mrf.mxu0 }
 0x3f8   : > { %v2802_v32 = vpop.f32.mrf.mxu1 }
 0x3f9   : > { %v2803_v26 = vadd.f32 %v2802_v32, %v2737_v38  ;;  %v2607_v55 = vpop.f32.mrf.mxu2 }
 0x3fb   : > { %v2838_v52 = vadd.f32 %v2803_v26, %v2482_v1 }
 0x3fd   : > { %2870 = vst [vmem:[#allocation3 + $0x20] sm:$0xff] %v2838_v52  ;;  %v2740_v34 = vpop.f32.mrf.mxu0 }
 0x3fe   : > { %v2672_v40 = vpop.f32.mrf.mxu3 }
 0x3ff   : > { %v2673_v6 = vadd.f32 %v2672_v40, %v2607_v55 }
 0x401   : > { %v2837_v37 = vadd.f32 %v2673_v6, %v2481_v0 }
 0x402   : > { %v2805_v42 = vpop.f32.mrf.mxu1 }
 0x403   : > { %2869 = vst [vmem:[#allocation3 + $0xa0] sm:$0xff] %v2837_v37  ;;  %v2806_v23 = vadd.f32 %v2805_v42, %v2740_v34  ;;  %v2610_v33 = vpop.f32.mrf.mxu2 }
 0x405   : > { %v2840_v47 = vadd.f32 %v2806_v23, %v2484_v48 }
 0x407   : > { %2872 = vst [vmem:[#allocation3 + $0xe0] sm:$0xff] %v2840_v47 }
 0x408   : > { %v2675_v15 = vpop.f32.mrf.mxu3 }
 0x409   : > { %v2676_v18 = vadd.f32 %v2675_v15, %v2610_v33 }
 0x40b   : > { %v2839_v58 = vadd.f32 %v2676_v18, %v2483_v46 }
 0x40c   : > { %v2743_v7 = vpop.f32.mrf.mxu0 }
 0x40d   : > { %2871 = vst [vmem:[#allocation3 + $0x8] sm:$0xff] %v2839_v58 }
 0x412   : > { %v2613_v16 = vpop.f32.mrf.mxu2 }
 0x416   : > { %v2808_v22 = vpop.f32.mrf.mxu1 }
 0x417   : > { %v2809_v44 = vadd.f32 %v2808_v22, %v2743_v7 }
 0x419   : > { %v2842_v20 = vadd.f32 %v2809_v44, %v2486_v29 }
 0x41b   : > { %2874 = vst [vmem:[#allocation3 + $0x98] sm:$0xff] %v2842_v20 }
 0x41c   : > { %v2678_v36 = vpop.f32.mrf.mxu3 }
 0x41d   : > { %v2679_v14 = vadd.f32 %v2678_v36, %v2613_v16  ;;  %2878 = sbr.rel (%p3133_p2) target bundleno = 1091 (0x443), region = 76 }
 0x41f   : > { %v2841_v35 = vadd.f32 %v2679_v14, %v2485_v50 }
 0x421   : > { %2873 = vst [vmem:[#allocation3 + $0x60] sm:$0xff] %v2841_v35 }
 0x422   : > { %v2879_v51 = vld [vmem:[#allocation3 + $0xa8] sm:$0xff]  ;;  %v2881_v5 = vld [vmem:[#allocation3 + $0x10] sm:$0xff]  ;;  %v2882_v56 = vld [vmem:[#allocation3 + $0xc0] sm:$0xff] }
 0x423   : > { %v2880_v25 = vld [vmem:[#allocation3 + $0x68] sm:$0xff]  ;;  %2911 = vst [vmem:[#allocation12] sm:$0xff] %v2879_v51  ;;  %v2884_v39 = vld [vmem:[#allocation3 + $0xb0] sm:$0xff]  ;;  %v2886_v62 = vld [vmem:[#allocation3 + $0x38] sm:$0xff] }
 0x424   : > { %2912 = vst [vmem:[#allocation12 + $0x8] sm:$0xff] %v2880_v25  ;;  %v2883_v41 = vld [vmem:[#allocation3 + $0xc8] sm:$0xff]  ;;  %v2885_v13 = vld [vmem:[#allocation3 + $0x70] sm:$0xff]  ;;  %v2888_v21 = vld [vmem:[#allocation3 + $0xf8] sm:$0xff] }
 0x425   : > { %2913 = vst [vmem:[#allocation12 + $0x10] sm:$0xff] %v2881_v5  ;;  %v2887_v54 = vld [vmem:[#allocation3 + $0x48] sm:$0xff]  ;;  %v2889_v53 = vld [vmem:[#allocation3 + $0x78] sm:$0xff]  ;;  %v2891_v31 = vld [vmem:[#allocation3 + $0xf0] sm:$0xff] }
 0x426   : > { %2914 = vst [vmem:[#allocation12 + $0x18] sm:$0xff] %v2882_v56  ;;  %v2890_v9 = vld [vmem:[#allocation3 + $0x88] sm:$0xff]  ;;  %v2892_v2 = vld [vmem:[#allocation3 + $0x18] sm:$0xff]  ;;  %v2893_v4 = vld [vmem:[#allocation3 + $0x30] sm:$0xff] }
 0x427   : > { %2915 = vst [vmem:[#allocation12 + $0x20] sm:$0xff] %v2883_v41  ;;  %v2894_v28 = vld [vmem:[#allocation3 + $0x50] sm:$0xff]  ;;  %v2895_v49 = vld [vmem:[#allocation3 + $0xb8] sm:$0xff]  ;;  %v2899_v11 = vld [vmem:[#allocation3 + $0x80] sm:$0xff] }
 0x428   : > { %2916 = vst [vmem:[#allocation12 + $0x28] sm:$0xff] %v2884_v39  ;;  %v2896_v24 = vld [vmem:[#allocation3 + $0xd0] sm:$0xff]  ;;  %v2897_v60 = vld [vmem:[#allocation3 + $0xd8] sm:$0xff]  ;;  %v2900_v3 = vld [vmem:[#allocation3 + $0x40] sm:$0xff] }
 0x429   : > { %2917 = vst [vmem:[#allocation12 + $0x30] sm:$0xff] %v2885_v13  ;;  %v2898_v59 = vld [vmem:[#allocation3 + $0x58] sm:$0xff]  ;;  %v2901_v27 = vld [vmem:[#allocation3 + $0x28] sm:$0xff]  ;;  %v2902_v61 = vld [vmem:[#allocation3] sm:$0xff] }
 0x42a   : > { %2918 = vst [vmem:[#allocation12 + $0x38] sm:$0xff] %v2886_v62  ;;  %v2903_v19 = vld [vmem:[#allocation3 + $0x90] sm:$0xff]  ;;  %v2904_v17 = vld [vmem:[#allocation3 + $0xe8] sm:$0xff]  ;;  %v2905_v43 = vld [vmem:[#allocation3 + $0xa0] sm:$0xff] }
 0x42b   : > { %2919 = vst [vmem:[#allocation12 + $0x40] sm:$0xff] %v2887_v54  ;;  %v2906_v63 = vld [vmem:[#allocation3 + $0x20] sm:$0xff]  ;;  %v2907_v30 = vld [vmem:[#allocation3 + $0x8] sm:$0xff]  ;;  %v2910_v45 = vld [vmem:[#allocation3 + $0x98] sm:$0xff] }
 0x42c   : > { %2920 = vst [vmem:[#allocation12 + $0x48] sm:$0xff] %v2888_v21  ;;  %v2908_v8 = vld [vmem:[#allocation3 + $0xe0] sm:$0xff] }
 0x42d   : > { %2921 = vst [vmem:[#allocation12 + $0x50] sm:$0xff] %v2889_v53  ;;  %v2909_v12 = vld [vmem:[#allocation3 + $0x60] sm:$0xff] }
 0x42e   : > { %2922 = vst [vmem:[#allocation12 + $0x58] sm:$0xff] %v2890_v9 }
 0x42f   : > { %2923 = vst [vmem:[#allocation12 + $0x60] sm:$0xff] %v2891_v31 }
 0x430   : > { %2924 = vst [vmem:[#allocation12 + $0x68] sm:$0xff] %v2892_v2 }
 0x431   : > { %2925 = vst [vmem:[#allocation12 + $0x70] sm:$0xff] %v2893_v4 }
 0x432   : > { %2926 = vst [vmem:[#allocation12 + $0x78] sm:$0xff] %v2894_v28 }
 0x433   : > { %2927 = vst [vmem:[#allocation12 + $0x80] sm:$0xff] %v2895_v49 }
 0x434   : > { %2928 = vst [vmem:[#allocation12 + $0x88] sm:$0xff] %v2896_v24 }
 0x435   : > { %2929 = vst [vmem:[#allocation12 + $0x90] sm:$0xff] %v2897_v60 }
 0x436   : > { %2930 = vst [vmem:[#allocation12 + $0x98] sm:$0xff] %v2898_v59 }
 0x437   : > { %2931 = vst [vmem:[#allocation12 + $0xa0] sm:$0xff] %v2899_v11 }
 0x438   : > { %2932 = vst [vmem:[#allocation12 + $0xa8] sm:$0xff] %v2900_v3 }
 0x439   : > { %2933 = vst [vmem:[#allocation12 + $0xb0] sm:$0xff] %v2901_v27 }
 0x43a   : > { %2934 = vst [vmem:[#allocation12 + $0xb8] sm:$0xff] %v2902_v61 }
 0x43b   : > { %2935 = vst [vmem:[#allocation12 + $0xc0] sm:$0xff] %v2903_v19 }
 0x43c   : > { %2936 = vst [vmem:[#allocation12 + $0xc8] sm:$0xff] %v2904_v17 }
 0x43d   : > { %2937 = vst [vmem:[#allocation12 + $0xd0] sm:$0xff] %v2905_v43 }
 0x43e   : > { %2938 = vst [vmem:[#allocation12 + $0xd8] sm:$0xff] %v2906_v63 }
 0x43f   : > { %2939 = vst [vmem:[#allocation12 + $0xe0] sm:$0xff] %v2907_v30 }
 0x440   : > { %2940 = vst [vmem:[#allocation12 + $0xe8] sm:$0xff] %v2908_v8 }
 0x441   : > { %2941 = vst [vmem:[#allocation12 + $0xf0] sm:$0xff] %v2909_v12 }
 0x442   : > { %2942 = vst [vmem:[#allocation12 + $0xf8] sm:$0xff] %v2910_v45 }
 0x443 PF: > { %p3213_p3 = scmp.eq.s32.totalorder %s3696_s30, 1  ;;  %s6038_s24 = sld [smem:[#allocation74_spill]] }
 0x444   : > { %s3624_s9 = smov [#allocation12]   ;;  %s3625_s15 = smov 256  }
 0x445   : > { %s2952_s13 = sshll.u32 %s3624_s9, 4  ;;  %s3626_s3 = smov 16   ;;  %s2953_s13 = int_to_ptr.vmem [resolvable:$true] %s2952_s13 }
 0x449   : > { %s2954_s12 = sshll.u32 %s6038_s24, 4  ;;  %s2955_s12 = int_to_ptr.hbm [resolvable:$true] %s2954_s12 }
 0x44a   : > { %3188 = dma.vmem_to_hbm [thread:$0]  (%p3213_p3), %s2953_s13, 4096, %s2955_s12, [#allocation6], %s3625_s15, %s3625_s15, %s3626_s3  }
 0x44b   : > { %3589 = dma.done.wait (%p3213_p3), [#allocation6], 4096  }
 0x44c   : > { %3591 = vsyncadd (%p3213_p3), [#allocation6], 4294963200 }
 0x44d PF: > { %s6039_s19 = sld [smem:[#allocation17_spill]]  ;;  %s6042_s24 = smov %s3598_s25 }
 0x44e   : > { %s6040_s30 = sld [smem:[#allocation19_spill]]  ;;  %s6043_s25 = smov %s3602_s26 }
 0x44f   : > { %s6041_s7 = sld [smem:[#allocation18_spill]]  ;;  %s6045_s27 = smov %s3610_s28 }
 0x453   : > { %s20_s29 = sadd.s32 1, %s6039_s19  }
 0x454   : > { %p17_p4 = scmp.ge.s32.totalorder %s20_s29, 4   ;;  %s6044_s26 = smov %s6040_s30 }
 0x455   : > { %s6046_s28 = smov %s6041_s7 }
 0x456   :  { %19 = sbr.rel (!%p17_p4) target bundleno = 9 (0x9), region = 124 }
 0x45b   :  { %2971 = vsyncpa [#allocation5], 1 }
 0x45c   :  { %2973 = vsyncpa [#allocation5 + $0x1], 1 }
 0x45d   :  { %2974 = vsyncpa [#allocation8], 1 }
 0x45e   :  { %2975 = vsyncpa [#allocation6], 1 }
 0x45f   :  { %2977 = vsyncpa [#allocation6 + $0x1], 1 }

</bundles_post_ra>
